<compile_context>
chip_gen: v6e
topology: v6e:2x2x1
jax: 0.10.0
libtpu: 0.0.40
codegen_flags: <defaults>
</compile_context>

<pallas_src>
import numpy as np
import jax
import jax.numpy as jnp
from jax import lax
from jax.experimental import pallas as pl
from jax.experimental.pallas import tpu as pltpu

_PHASES = ((0, 0), (0, 1), (1, 0), (1, 1))            # (ry,rx) and (dy,dx) order
_TAPS3 = tuple((ky, kx) for ky in range(3) for kx in range(3))


# ----------------------------------------------------------------------------
# Geometry of the flattened, zero-padded "canvases" each layer reads from.
# ----------------------------------------------------------------------------
def _geom(c, h, w):
    assert h % 4 == 0 and w % 4 == 0, "UBlock needs H, W divisible by 4"
    g = {"c": c, "h": h, "w": w,
         "h1": h // 2, "w1": w // 2, "h2": h // 4, "w2": w // 4}
    g["hp0"], g["wp0"] = h + 2, w + 2          # x padded by 1 (down1 input)
    g["hp1"], g["wp1"] = g["h1"] + 2, g["w1"] + 2   # d1/u1 padded (down2 & up2 input)
    g["hp2"], g["wp2"] = g["h2"] + 2, g["w2"] + 2   # d2 padded (up1 input)
    g["l0"] = g["hp0"] * g["wp0"]
    g["l1"] = g["hp1"] * g["wp1"]
    g["l2"] = g["hp2"] * g["wp2"]
    # zero tail so every sliding-window slice [off : off+L] stays in bounds
    g["tail0"], g["tail1"], g["tail2"] = 2 * g["wp0"] + 2, 2 * g["wp1"] + 2, 2 * g["wp2"] + 2
    g["cw0"] = g["l0"] + g["tail0"]
    g["cw1"] = g["l1"] + g["tail1"]
    g["cw2"] = g["l2"] + g["tail2"]
    return g


# ----------------------------------------------------------------------------
# One-time parameter / constant packing (runs OUTSIDE the jitted forward).
# ----------------------------------------------------------------------------
def _sel(rows, cols, pairs):
    s = np.zeros((rows, cols), np.float32)
    for r, cc in pairs:
        s[r, cc] = 1.0
    return jnp.asarray(s)


def prepare_ublock_inputs(params, h, w):
    """Pre-pack per-tap weights, biases and the constant 0/1 selection
    ("layout") matrices that do pad / stride-2 gather / phase scatter."""
    c = params["down1_w"].shape[0]
    g = _geom(c, h, w)

    # per-tap (Cout, Cin) weights for the two 3x3 stride-2 convs
    w1 = jnp.stack([params["down1_w"][:, :, ky, kx] for ky, kx in _TAPS3])
    w2 = jnp.stack([params["down2_w"][:, :, ky, kx] for ky, kx in _TAPS3])

    # per-(phase, tap) (Cout, Cin) weights for the 4x4 stride-2 transposed convs
    def t_taps(wt, lo, hi):
        mats = []
        for ry, rx in _PHASES:
            for dy, dx in _PHASES:
                mats.append(wt[lo:hi, :, 3 - 2 * dy - ry, 3 - 2 * dx - rx].T)
        return jnp.stack(mats)                          # (16, Cout, Cin_slice)

    wu1 = t_taps(params["up1_w"], 0, c)
    wu2u = t_taps(params["up2_w"], 0, c)                # channels of u1
    wu2d = t_taps(params["up2_w"], c, 2 * c)            # channels of d1

    b1 = params["down1_b"].reshape(c, 1)
    b2 = params["down2_b"].reshape(c, 1)
    bu1 = params["up1_b"].reshape(c, 1)
    bu2 = params["up2_b"].reshape(c, 1)

    # selection matrices (one 1 per column at most; unselected columns stay 0,
    # which is exactly the zero padding / zero tail of the target canvas)
    sin = _sel(h * w, g["cw0"],
               [(y * w + x, (y + 1) * g["wp0"] + (x + 1))
                for y in range(h) for x in range(w)])
    s1 = _sel(g["l0"], g["cw1"],
              [(2 * a * g["wp0"] + 2 * b, (a + 1) * g["wp1"] + (b + 1))
               for a in range(g["h1"]) for b in range(g["w1"])])
    s2 = _sel(g["l1"], g["cw2"],
              [(2 * a * g["wp1"] + 2 * b, (a + 1) * g["wp2"] + (b + 1))
               for a in range(g["h2"]) for b in range(g["w2"])])
    su1 = jnp.stack([
        _sel(g["l2"], g["cw1"],
             [(y * g["wp2"] + x, (2 * y + ry + 1) * g["wp1"] + (2 * x + rx + 1))
              for y in range(g["h2"]) for x in range(g["w2"])])
        for ry, rx in _PHASES])
    sout = jnp.stack([
        _sel(g["l1"], h * w,
             [(y * g["wp1"] + x, (2 * y + ry) * w + (2 * x + rx))
              for y in range(g["h1"]) for x in range(g["w1"])])
        for ry, rx in _PHASES])

    return dict(w1=w1, b1=b1, w2=w2, b2=b2, wu1=wu1, bu1=bu1,
                wu2u=wu2u, wu2d=wu2d, bu2=bu2,
                sin=sin, s1=s1, s2=s2, su1=su1, sout=sout)


# ----------------------------------------------------------------------------
# The fused UBlock kernel (one image per grid step).
# ----------------------------------------------------------------------------
def _make_ublock_kernel(g):
    c = g["c"]
    wp0, wp1, wp2 = g["wp0"], g["wp1"], g["wp2"]
    l0, l1, l2 = g["l0"], g["l1"], g["l2"]
    hw = g["h"] * g["w"]

    off3_0 = [ky * wp0 + kx for ky, kx in _TAPS3]
    off3_1 = [ky * wp1 + kx for ky, kx in _TAPS3]
    offT_1 = sorted({a * wp1 + b for a in range(3) for b in range(3)})
    offT_2 = sorted({a * wp2 + b for a in range(3) for b in range(3)})
    # tie every canvas zero-tail to the largest tap offset (review concern)
    assert max(off3_0) + l0 == g["cw0"]
    assert max(off3_1) + l1 == g["cw1"] and max(offT_1) + l1 == g["cw1"]
    assert max(offT_2) + l2 == g["cw2"]

    def dot(a, b):
        return jnp.dot(a, b, preferred_element_type=jnp.float32)

    def kernel(x_ref, sin_ref, w1_ref, b1_ref, s1_ref, w2_ref, b2_ref, s2_ref,
               wu1_ref, bu1_ref, su1_ref, wu2u_ref, wu2d_ref, bu2_ref,
               sout_ref, o_ref):
        # ---- layout-in: x (c, h*w) -> zero-padded flattened canvas (c, cw0)
        canvas0 = dot(x_ref[0], sin_ref[...])

        # ---- down1: Conv2d(c,c,3,2,1) + ReLU  (stride-1 taps, stride-2 gather)
        acc = dot(w1_ref[0], canvas0[:, off3_0[0]:off3_0[0] + l0])
        for t in range(1, 9):
            o = off3_0[t]
            acc = acc + dot(w1_ref[t], canvas0[:, o:o + l0])
        z = jnp.maximum(acc + b1_ref[...], 0.0)
        d1_canvas = dot(z, s1_ref[...])                       # (c, cw1), VMEM-resident

        # d1 tap slices are shared by down2 and by the d1 half of up2
        d1_sl = {o: d1_canvas[:, o:o + l1] for o in offT_1}

        # ---- down2: Conv2d(c,c,3,2,1) + ReLU
        acc = dot(w2_ref[0], d1_sl[off3_1[0]])
        for t in range(1, 9):
            acc = acc + dot(w2_ref[t], d1_sl[off3_1[t]])
        z = jnp.maximum(acc + b2_ref[...], 0.0)
        d2_canvas = dot(z, s2_ref[...])                       # (c, cw2)

        d2_sl = {o: d2_canvas[:, o:o + l2] for o in offT_2}

        # ---- up1: ConvTranspose2d(c,c,4,2,1) + ReLU  (sub-pixel phases)
        u1_canvas = jnp.zeros((c, g["cw1"]), jnp.float32)
        for p, (ry, rx) in enumerate(_PHASES):
            acc = None
            for t, (dy, dx) in enumerate(_PHASES):
                o = (ry + dy) * wp2 + (rx + dx)
                term = dot(wu1_ref[4 * p + t], d2_sl[o])
                acc = term if acc is None else acc + term
            z = jnp.maximum(acc + bu1_ref[...], 0.0)
            u1_canvas = u1_canvas + dot(z, su1_ref[p])        # phase scatter

        u1_sl = {o: u1_canvas[:, o:o + l1] for o in offT_1}

        # ---- up2 on cat([u1, d1], 1): split contraction over channel halves
        out = jnp.zeros((c, hw), jnp.float32)
        for p, (ry, rx) in enumerate(_PHASES):
            acc = None
            for t, (dy, dx) in enumerate(_PHASES):
                o = (ry + dy) * wp1 + (rx + dx)
                term = dot(wu2u_ref[4 * p + t], u1_sl[o]) + dot(wu2d_ref[4 * p + t], d1_sl[o])
                acc = term if acc is None else acc + term
            z = jnp.maximum(acc + bu2_ref[...], 0.0)
            out = out + dot(z, sout_ref[p])                   # phase interleave

        o_ref[0] = out                                        # lane-dense (c, h*w)

    return kernel


def _full_spec(a):
    return pl.BlockSpec(a.shape, lambda *_: (0,) * a.ndim)


# ----------------------------------------------------------------------------
# Forward wrapper (jit this): one pallas_call, grid over the batch.
# ----------------------------------------------------------------------------
def ublock_forward(x, packed):
    n, c, h, w = x.shape
    g = _geom(c, h, w)
    kernel = _make_ublock_kernel(g)
    x_flat = x.reshape(n, c, h * w)                           # free reshape

    order = ("sin", "w1", "b1", "s1", "w2", "b2", "s2",
             "wu1", "bu1", "su1", "wu2u", "wu2d", "bu2", "sout")
    consts = [packed[k] for k in order]

    out = pl.pallas_call(
        kernel,
        out_shape=jax.ShapeDtypeStruct((n, c, h * w), jnp.float32),
        grid=(n,),
        in_specs=[pl.BlockSpec((1, c, h * w), lambda i: (i, 0, 0))]
                 + [_full_spec(a) for a in consts],
        out_specs=pl.BlockSpec((1, c, h * w), lambda i: (i, 0, 0)),
        compiler_params=pltpu.CompilerParams(
            dimension_semantics=("parallel",),       # v7x: one image per core
            vmem_limit_bytes=32 * 1024 * 1024,
        ),
    )(x_flat, *consts)
    return out.reshape(n, c, h, w)


# ----------------------------------------------------------------------------
# PyTorch-style parameter init and a pure-JAX (lax.conv) reference.
# ----------------------------------------------------------------------------
def init_params(key, c):
    def u(k, shape, fan_in):
        bound = 1.0 / jnp.sqrt(jnp.float32(fan_in))
        return jax.random.uniform(k, shape, jnp.float32, -bound, bound)
    ks = jax.random.split(key, 8)
    return {
        "down1_w": u(ks[0], (c, c, 3, 3), c * 9),
        "down1_b": u(ks[1], (c,), c * 9),
        "down2_w": u(ks[2], (c, c, 3, 3), c * 9),
        "down2_b": u(ks[3], (c,), c * 9),
        "up1_w":   u(ks[4], (c, c, 4, 4), c * 16),
        "up1_b":   u(ks[5], (c,), c * 16),
        "up2_w":   u(ks[6], (2 * c, c, 4, 4), 2 * c * 16),
        "up2_b":   u(ks[7], (c,), 2 * c * 16),
    }


def _ref_conv(x, w, b, stride, pad):
    y = lax.conv_general_dilated(x, w, (stride, stride), ((pad, pad), (pad, pad)),
                                 dimension_numbers=("NCHW", "OIHW", "NCHW"))
    return jnp.maximum(y + b[None, :, None, None], 0.0)


def _ref_convT(x, w, b, stride, pad):
    kh = w.shape[2]
    w_oihw = jnp.transpose(jnp.flip(jnp.flip(w, 2), 3), (1, 0, 2, 3))
    pp = kh - 1 - pad
    y = lax.conv_general_dilated(x, w_oihw, (1, 1), ((pp, pp), (pp, pp)),
                                 lhs_dilation=(stride, stride),
                                 dimension_numbers=("NCHW", "OIHW", "NCHW"))
    return jnp.maximum(y + b[None, :, None, None], 0.0)


def ublock_reference(x, p):
    d1 = _ref_conv(x, p["down1_w"], p["down1_b"], 2, 1)
    d2 = _ref_conv(d1, p["down2_w"], p["down2_b"], 2, 1)
    u1 = _ref_convT(d2, p["up1_w"], p["up1_b"], 2, 1)
    u2 = _ref_convT(jnp.concatenate([u1, d1], axis=1), p["up2_w"], p["up2_b"], 2, 1)
    return u2


if __name__ == "__main__":
    key = jax.random.PRNGKey(0)
    kx, kp = jax.random.split(key)
    c = 4
    x = jax.random.normal(kx, (2, c, 16, 16), jnp.float32)    # NCHW like PyTorch
    params = init_params(kp, c)

    packed = prepare_ublock_inputs(params, 16, 16)             # one-time pre-pack
    fwd = jax.jit(ublock_forward)

    out = jax.block_until_ready(fwd(x, packed))
    assert out.shape == (2, c, 16, 16), out.shape

    ref = jax.block_until_ready(ublock_reference(x, params))
    err = float(jnp.max(jnp.abs(out - ref)))
    assert jnp.allclose(out, ref, atol=5e-4, rtol=1e-4), err

    print("KERNEL_OK")
</pallas_src>

<mosaic_0001>
module attributes {stable_mosaic.version = 11 : i64} {
  func.func @kernel(%arg0: i32, %arg1: memref<1x4x256xf32, #tpu.memory_space<vmem>>, %arg2: memref<256x362xf32, #tpu.memory_space<vmem>>, %arg3: memref<9x4x4xf32, #tpu.memory_space<vmem>>, %arg4: memref<4x1xf32, #tpu.memory_space<vmem>>, %arg5: memref<324x122xf32, #tpu.memory_space<vmem>>, %arg6: memref<9x4x4xf32, #tpu.memory_space<vmem>>, %arg7: memref<4x1xf32, #tpu.memory_space<vmem>>, %arg8: memref<100x50xf32, #tpu.memory_space<vmem>>, %arg9: memref<16x4x4xf32, #tpu.memory_space<vmem>>, %arg10: memref<4x1xf32, #tpu.memory_space<vmem>>, %arg11: memref<4x36x122xf32, #tpu.memory_space<vmem>>, %arg12: memref<16x4x4xf32, #tpu.memory_space<vmem>>, %arg13: memref<16x4x4xf32, #tpu.memory_space<vmem>>, %arg14: memref<4x1xf32, #tpu.memory_space<vmem>>, %arg15: memref<4x100x256xf32, #tpu.memory_space<vmem>>, %arg16: memref<1x4x256xf32, #tpu.memory_space<vmem>>) attributes {dimension_semantics = [#tpu.dimension_semantics<parallel>], iteration_bounds = array<i64: 2>, scalar_prefetch = 0 : i64, scratch_operands = 0 : i64, tpu.core_type = #tpu.core_type<tc>, window_params = [{transform_indices = @transform_0, window_bounds = array<i64: 1, 4, 256>}, {pipeline_mode = #tpu.pipeline_mode<synchronous>, transform_indices = @transform_1, window_bounds = array<i64: 256, 362>}, {pipeline_mode = #tpu.pipeline_mode<synchronous>, transform_indices = @transform_2, window_bounds = array<i64: 9, 4, 4>}, {pipeline_mode = #tpu.pipeline_mode<synchronous>, transform_indices = @transform_3, window_bounds = array<i64: 4, 1>}, {pipeline_mode = #tpu.pipeline_mode<synchronous>, transform_indices = @transform_4, window_bounds = array<i64: 324, 122>}, {pipeline_mode = #tpu.pipeline_mode<synchronous>, transform_indices = @transform_5, window_bounds = array<i64: 9, 4, 4>}, {pipeline_mode = #tpu.pipeline_mode<synchronous>, transform_indices = @transform_6, window_bounds = array<i64: 4, 1>}, {pipeline_mode = #tpu.pipeline_mode<synchronous>, transform_indices = @transform_7, window_bounds = array<i64: 100, 50>}, {pipeline_mode = #tpu.pipeline_mode<synchronous>, transform_indices = @transform_8, window_bounds = array<i64: 16, 4, 4>}, {pipeline_mode = #tpu.pipeline_mode<synchronous>, transform_indices = @transform_9, window_bounds = array<i64: 4, 1>}, {pipeline_mode = #tpu.pipeline_mode<synchronous>, transform_indices = @transform_10, window_bounds = array<i64: 4, 36, 122>}, {pipeline_mode = #tpu.pipeline_mode<synchronous>, transform_indices = @transform_11, window_bounds = array<i64: 16, 4, 4>}, {pipeline_mode = #tpu.pipeline_mode<synchronous>, transform_indices = @transform_12, window_bounds = array<i64: 16, 4, 4>}, {pipeline_mode = #tpu.pipeline_mode<synchronous>, transform_indices = @transform_13, window_bounds = array<i64: 4, 1>}, {pipeline_mode = #tpu.pipeline_mode<synchronous>, transform_indices = @transform_14, window_bounds = array<i64: 4, 100, 256>}, {transform_indices = @transform_15, window_bounds = array<i64: 1, 4, 256>}]} {
    %c0 = arith.constant 0 : index
    %c0_0 = arith.constant 0 : index
    %c0_1 = arith.constant 0 : index
    %0 = vector.load %arg1[%c0, %c0_0, %c0_1] : memref<1x4x256xf32, #tpu.memory_space<vmem>>, vector<1x4x256xf32>
    %1 = vector.shape_cast %0 : vector<1x4x256xf32> to vector<4x256xf32>
    %c0_2 = arith.constant 0 : index
    %c0_3 = arith.constant 0 : index
    %2 = vector.load %arg2[%c0_2, %c0_3] : memref<256x362xf32, #tpu.memory_space<vmem>>, vector<256x362xf32>
    %cst = arith.constant dense<0.000000e+00> : vector<4x362xf32>
    %3 = tpu.matmul %1, %2, %cst {dimension_numbers = #tpu.dot_dimension_numbers<[1], [0], [0], [1], [0, 0, 1, 1], [], []>} : vector<4x256xf32>, vector<256x362xf32>, vector<4x362xf32> -> vector<4x362xf32>
    %c0_4 = arith.constant 0 : index
    %c0_5 = arith.constant 0 : index
    %c0_6 = arith.constant 0 : index
    %4 = vector.load %arg3[%c0_4, %c0_5, %c0_6] : memref<9x4x4xf32, #tpu.memory_space<vmem>>, vector<1x4x4xf32>
    %5 = vector.shape_cast %4 : vector<1x4x4xf32> to vector<4x4xf32>
    %6 = vector.extract_strided_slice %3 {offsets = [0, 0], sizes = [4, 324], strides = [1, 1]} : vector<4x362xf32> to vector<4x324xf32>
    %cst_7 = arith.constant dense<0.000000e+00> : vector<4x324xf32>
    %7 = tpu.matmul %5, %6, %cst_7 {dimension_numbers = #tpu.dot_dimension_numbers<[1], [0], [0], [1], [0, 0, 1, 1], [], []>} : vector<4x4xf32>, vector<4x324xf32>, vector<4x324xf32> -> vector<4x324xf32>
    %c1 = arith.constant 1 : index
    %c0_8 = arith.constant 0 : index
    %c0_9 = arith.constant 0 : index
    %8 = vector.load %arg3[%c1, %c0_8, %c0_9] : memref<9x4x4xf32, #tpu.memory_space<vmem>>, vector<1x4x4xf32>
    %9 = vector.shape_cast %8 : vector<1x4x4xf32> to vector<4x4xf32>
    %10 = vector.extract_strided_slice %3 {offsets = [0, 1], sizes = [4, 324], strides = [1, 1]} : vector<4x362xf32> to vector<4x324xf32>
    %cst_10 = arith.constant dense<0.000000e+00> : vector<4x324xf32>
    %11 = tpu.matmul %9, %10, %cst_10 {dimension_numbers = #tpu.dot_dimension_numbers<[1], [0], [0], [1], [0, 0, 1, 1], [], []>} : vector<4x4xf32>, vector<4x324xf32>, vector<4x324xf32> -> vector<4x324xf32>
    %12 = arith.addf %7, %11 : vector<4x324xf32>
    %c2 = arith.constant 2 : index
    %c0_11 = arith.constant 0 : index
    %c0_12 = arith.constant 0 : index
    %13 = vector.load %arg3[%c2, %c0_11, %c0_12] : memref<9x4x4xf32, #tpu.memory_space<vmem>>, vector<1x4x4xf32>
    %14 = vector.shape_cast %13 : vector<1x4x4xf32> to vector<4x4xf32>
    %15 = vector.extract_strided_slice %3 {offsets = [0, 2], sizes = [4, 324], strides = [1, 1]} : vector<4x362xf32> to vector<4x324xf32>
    %cst_13 = arith.constant dense<0.000000e+00> : vector<4x324xf32>
    %16 = tpu.matmul %14, %15, %cst_13 {dimension_numbers = #tpu.dot_dimension_numbers<[1], [0], [0], [1], [0, 0, 1, 1], [], []>} : vector<4x4xf32>, vector<4x324xf32>, vector<4x324xf32> -> vector<4x324xf32>
    %17 = arith.addf %12, %16 : vector<4x324xf32>
    %c3 = arith.constant 3 : index
    %c0_14 = arith.constant 0 : index
    %c0_15 = arith.constant 0 : index
    %18 = vector.load %arg3[%c3, %c0_14, %c0_15] : memref<9x4x4xf32, #tpu.memory_space<vmem>>, vector<1x4x4xf32>
    %19 = vector.shape_cast %18 : vector<1x4x4xf32> to vector<4x4xf32>
    %20 = vector.extract_strided_slice %3 {offsets = [0, 18], sizes = [4, 324], strides = [1, 1]} : vector<4x362xf32> to vector<4x324xf32>
    %cst_16 = arith.constant dense<0.000000e+00> : vector<4x324xf32>
    %21 = tpu.matmul %19, %20, %cst_16 {dimension_numbers = #tpu.dot_dimension_numbers<[1], [0], [0], [1], [0, 0, 1, 1], [], []>} : vector<4x4xf32>, vector<4x324xf32>, vector<4x324xf32> -> vector<4x324xf32>
    %22 = arith.addf %17, %21 : vector<4x324xf32>
    %c4 = arith.constant 4 : index
    %c0_17 = arith.constant 0 : index
    %c0_18 = arith.constant 0 : index
    %23 = vector.load %arg3[%c4, %c0_17, %c0_18] : memref<9x4x4xf32, #tpu.memory_space<vmem>>, vector<1x4x4xf32>
    %24 = vector.shape_cast %23 : vector<1x4x4xf32> to vector<4x4xf32>
    %25 = vector.extract_strided_slice %3 {offsets = [0, 19], sizes = [4, 324], strides = [1, 1]} : vector<4x362xf32> to vector<4x324xf32>
    %cst_19 = arith.constant dense<0.000000e+00> : vector<4x324xf32>
    %26 = tpu.matmul %24, %25, %cst_19 {dimension_numbers = #tpu.dot_dimension_numbers<[1], [0], [0], [1], [0, 0, 1, 1], [], []>} : vector<4x4xf32>, vector<4x324xf32>, vector<4x324xf32> -> vector<4x324xf32>
    %27 = arith.addf %22, %26 : vector<4x324xf32>
    %c5 = arith.constant 5 : index
    %c0_20 = arith.constant 0 : index
    %c0_21 = arith.constant 0 : index
    %28 = vector.load %arg3[%c5, %c0_20, %c0_21] : memref<9x4x4xf32, #tpu.memory_space<vmem>>, vector<1x4x4xf32>
    %29 = vector.shape_cast %28 : vector<1x4x4xf32> to vector<4x4xf32>
    %30 = vector.extract_strided_slice %3 {offsets = [0, 20], sizes = [4, 324], strides = [1, 1]} : vector<4x362xf32> to vector<4x324xf32>
    %cst_22 = arith.constant dense<0.000000e+00> : vector<4x324xf32>
    %31 = tpu.matmul %29, %30, %cst_22 {dimension_numbers = #tpu.dot_dimension_numbers<[1], [0], [0], [1], [0, 0, 1, 1], [], []>} : vector<4x4xf32>, vector<4x324xf32>, vector<4x324xf32> -> vector<4x324xf32>
    %32 = arith.addf %27, %31 : vector<4x324xf32>
    %c6 = arith.constant 6 : index
    %c0_23 = arith.constant 0 : index
    %c0_24 = arith.constant 0 : index
    %33 = vector.load %arg3[%c6, %c0_23, %c0_24] : memref<9x4x4xf32, #tpu.memory_space<vmem>>, vector<1x4x4xf32>
    %34 = vector.shape_cast %33 : vector<1x4x4xf32> to vector<4x4xf32>
    %35 = vector.extract_strided_slice %3 {offsets = [0, 36], sizes = [4, 324], strides = [1, 1]} : vector<4x362xf32> to vector<4x324xf32>
    %cst_25 = arith.constant dense<0.000000e+00> : vector<4x324xf32>
    %36 = tpu.matmul %34, %35, %cst_25 {dimension_numbers = #tpu.dot_dimension_numbers<[1], [0], [0], [1], [0, 0, 1, 1], [], []>} : vector<4x4xf32>, vector<4x324xf32>, vector<4x324xf32> -> vector<4x324xf32>
    %37 = arith.addf %32, %36 : vector<4x324xf32>
    %c7 = arith.constant 7 : index
    %c0_26 = arith.constant 0 : index
    %c0_27 = arith.constant 0 : index
    %38 = vector.load %arg3[%c7, %c0_26, %c0_27] : memref<9x4x4xf32, #tpu.memory_space<vmem>>, vector<1x4x4xf32>
    %39 = vector.shape_cast %38 : vector<1x4x4xf32> to vector<4x4xf32>
    %40 = vector.extract_strided_slice %3 {offsets = [0, 37], sizes = [4, 324], strides = [1, 1]} : vector<4x362xf32> to vector<4x324xf32>
    %cst_28 = arith.constant dense<0.000000e+00> : vector<4x324xf32>
    %41 = tpu.matmul %39, %40, %cst_28 {dimension_numbers = #tpu.dot_dimension_numbers<[1], [0], [0], [1], [0, 0, 1, 1], [], []>} : vector<4x4xf32>, vector<4x324xf32>, vector<4x324xf32> -> vector<4x324xf32>
    %42 = arith.addf %37, %41 : vector<4x324xf32>
    %c8 = arith.constant 8 : index
    %c0_29 = arith.constant 0 : index
    %c0_30 = arith.constant 0 : index
    %43 = vector.load %arg3[%c8, %c0_29, %c0_30] : memref<9x4x4xf32, #tpu.memory_space<vmem>>, vector<1x4x4xf32>
    %44 = vector.shape_cast %43 : vector<1x4x4xf32> to vector<4x4xf32>
    %45 = vector.extract_strided_slice %3 {offsets = [0, 38], sizes = [4, 324], strides = [1, 1]} : vector<4x362xf32> to vector<4x324xf32>
    %cst_31 = arith.constant dense<0.000000e+00> : vector<4x324xf32>
    %46 = tpu.matmul %44, %45, %cst_31 {dimension_numbers = #tpu.dot_dimension_numbers<[1], [0], [0], [1], [0, 0, 1, 1], [], []>} : vector<4x4xf32>, vector<4x324xf32>, vector<4x324xf32> -> vector<4x324xf32>
    %47 = arith.addf %42, %46 : vector<4x324xf32>
    %c0_32 = arith.constant 0 : index
    %c0_33 = arith.constant 0 : index
    %48 = vector.load %arg4[%c0_32, %c0_33] : memref<4x1xf32, #tpu.memory_space<vmem>>, vector<4x1xf32>
    %49 = vector.broadcast %48 : vector<4x1xf32> to vector<4x324xf32>
    %50 = arith.addf %47, %49 : vector<4x324xf32>
    %cst_34 = arith.constant 0.000000e+00 : f32
    %51 = vector.broadcast %cst_34 : f32 to vector<4x324xf32>
    %52 = arith.maximumf %50, %51 : vector<4x324xf32>
    %c0_35 = arith.constant 0 : index
    %c0_36 = arith.constant 0 : index
    %53 = vector.load %arg5[%c0_35, %c0_36] : memref<324x122xf32, #tpu.memory_space<vmem>>, vector<324x122xf32>
    %cst_37 = arith.constant dense<0.000000e+00> : vector<4x122xf32>
    %54 = tpu.matmul %52, %53, %cst_37 {dimension_numbers = #tpu.dot_dimension_numbers<[1], [0], [0], [1], [0, 0, 1, 1], [], []>} : vector<4x324xf32>, vector<324x122xf32>, vector<4x122xf32> -> vector<4x122xf32>
    %55 = vector.extract_strided_slice %54 {offsets = [0, 0], sizes = [4, 100], strides = [1, 1]} : vector<4x122xf32> to vector<4x100xf32>
    %56 = vector.extract_strided_slice %54 {offsets = [0, 1], sizes = [4, 100], strides = [1, 1]} : vector<4x122xf32> to vector<4x100xf32>
    %57 = vector.extract_strided_slice %54 {offsets = [0, 2], sizes = [4, 100], strides = [1, 1]} : vector<4x122xf32> to vector<4x100xf32>
    %58 = vector.extract_strided_slice %54 {offsets = [0, 10], sizes = [4, 100], strides = [1, 1]} : vector<4x122xf32> to vector<4x100xf32>
    %59 = vector.extract_strided_slice %54 {offsets = [0, 11], sizes = [4, 100], strides = [1, 1]} : vector<4x122xf32> to vector<4x100xf32>
    %60 = vector.extract_strided_slice %54 {offsets = [0, 12], sizes = [4, 100], strides = [1, 1]} : vector<4x122xf32> to vector<4x100xf32>
    %61 = vector.extract_strided_slice %54 {offsets = [0, 20], sizes = [4, 100], strides = [1, 1]} : vector<4x122xf32> to vector<4x100xf32>
    %62 = vector.extract_strided_slice %54 {offsets = [0, 21], sizes = [4, 100], strides = [1, 1]} : vector<4x122xf32> to vector<4x100xf32>
    %63 = vector.extract_strided_slice %54 {offsets = [0, 22], sizes = [4, 100], strides = [1, 1]} : vector<4x122xf32> to vector<4x100xf32>
    %c0_38 = arith.constant 0 : index
    %c0_39 = arith.constant 0 : index
    %c0_40 = arith.constant 0 : index
    %64 = vector.load %arg6[%c0_38, %c0_39, %c0_40] : memref<9x4x4xf32, #tpu.memory_space<vmem>>, vector<1x4x4xf32>
    %65 = vector.shape_cast %64 : vector<1x4x4xf32> to vector<4x4xf32>
    %cst_41 = arith.constant dense<0.000000e+00> : vector<4x100xf32>
    %66 = tpu.matmul %65, %55, %cst_41 {dimension_numbers = #tpu.dot_dimension_numbers<[1], [0], [0], [1], [0, 0, 1, 1], [], []>} : vector<4x4xf32>, vector<4x100xf32>, vector<4x100xf32> -> vector<4x100xf32>
    %c1_42 = arith.constant 1 : index
    %c0_43 = arith.constant 0 : index
    %c0_44 = arith.constant 0 : index
    %67 = vector.load %arg6[%c1_42, %c0_43, %c0_44] : memref<9x4x4xf32, #tpu.memory_space<vmem>>, vector<1x4x4xf32>
    %68 = vector.shape_cast %67 : vector<1x4x4xf32> to vector<4x4xf32>
    %cst_45 = arith.constant dense<0.000000e+00> : vector<4x100xf32>
    %69 = tpu.matmul %68, %56, %cst_45 {dimension_numbers = #tpu.dot_dimension_numbers<[1], [0], [0], [1], [0, 0, 1, 1], [], []>} : vector<4x4xf32>, vector<4x100xf32>, vector<4x100xf32> -> vector<4x100xf32>
    %70 = arith.addf %66, %69 : vector<4x100xf32>
    %c2_46 = arith.constant 2 : index
    %c0_47 = arith.constant 0 : index
    %c0_48 = arith.constant 0 : index
    %71 = vector.load %arg6[%c2_46, %c0_47, %c0_48] : memref<9x4x4xf32, #tpu.memory_space<vmem>>, vector<1x4x4xf32>
    %72 = vector.shape_cast %71 : vector<1x4x4xf32> to vector<4x4xf32>
    %cst_49 = arith.constant dense<0.000000e+00> : vector<4x100xf32>
    %73 = tpu.matmul %72, %57, %cst_49 {dimension_numbers = #tpu.dot_dimension_numbers<[1], [0], [0], [1], [0, 0, 1, 1], [], []>} : vector<4x4xf32>, vector<4x100xf32>, vector<4x100xf32> -> vector<4x100xf32>
    %74 = arith.addf %70, %73 : vector<4x100xf32>
    %c3_50 = arith.constant 3 : index
    %c0_51 = arith.constant 0 : index
    %c0_52 = arith.constant 0 : index
    %75 = vector.load %arg6[%c3_50, %c0_51, %c0_52] : memref<9x4x4xf32, #tpu.memory_space<vmem>>, vector<1x4x4xf32>
    %76 = vector.shape_cast %75 : vector<1x4x4xf32> to vector<4x4xf32>
    %cst_53 = arith.constant dense<0.000000e+00> : vector<4x100xf32>
    %77 = tpu.matmul %76, %58, %cst_53 {dimension_numbers = #tpu.dot_dimension_numbers<[1], [0], [0], [1], [0, 0, 1, 1], [], []>} : vector<4x4xf32>, vector<4x100xf32>, vector<4x100xf32> -> vector<4x100xf32>
    %78 = arith.addf %74, %77 : vector<4x100xf32>
    %c4_54 = arith.constant 4 : index
    %c0_55 = arith.constant 0 : index
    %c0_56 = arith.constant 0 : index
    %79 = vector.load %arg6[%c4_54, %c0_55, %c0_56] : memref<9x4x4xf32, #tpu.memory_space<vmem>>, vector<1x4x4xf32>
    %80 = vector.shape_cast %79 : vector<1x4x4xf32> to vector<4x4xf32>
    %cst_57 = arith.constant dense<0.000000e+00> : vector<4x100xf32>
    %81 = tpu.matmul %80, %59, %cst_57 {dimension_numbers = #tpu.dot_dimension_numbers<[1], [0], [0], [1], [0, 0, 1, 1], [], []>} : vector<4x4xf32>, vector<4x100xf32>, vector<4x100xf32> -> vector<4x100xf32>
    %82 = arith.addf %78, %81 : vector<4x100xf32>
    %c5_58 = arith.constant 5 : index
    %c0_59 = arith.constant 0 : index
    %c0_60 = arith.constant 0 : index
    %83 = vector.load %arg6[%c5_58, %c0_59, %c0_60] : memref<9x4x4xf32, #tpu.memory_space<vmem>>, vector<1x4x4xf32>
    %84 = vector.shape_cast %83 : vector<1x4x4xf32> to vector<4x4xf32>
    %cst_61 = arith.constant dense<0.000000e+00> : vector<4x100xf32>
    %85 = tpu.matmul %84, %60, %cst_61 {dimension_numbers = #tpu.dot_dimension_numbers<[1], [0], [0], [1], [0, 0, 1, 1], [], []>} : vector<4x4xf32>, vector<4x100xf32>, vector<4x100xf32> -> vector<4x100xf32>
    %86 = arith.addf %82, %85 : vector<4x100xf32>
    %c6_62 = arith.constant 6 : index
    %c0_63 = arith.constant 0 : index
    %c0_64 = arith.constant 0 : index
    %87 = vector.load %arg6[%c6_62, %c0_63, %c0_64] : memref<9x4x4xf32, #tpu.memory_space<vmem>>, vector<1x4x4xf32>
    %88 = vector.shape_cast %87 : vector<1x4x4xf32> to vector<4x4xf32>
    %cst_65 = arith.constant dense<0.000000e+00> : vector<4x100xf32>
    %89 = tpu.matmul %88, %61, %cst_65 {dimension_numbers = #tpu.dot_dimension_numbers<[1], [0], [0], [1], [0, 0, 1, 1], [], []>} : vector<4x4xf32>, vector<4x100xf32>, vector<4x100xf32> -> vector<4x100xf32>
    %90 = arith.addf %86, %89 : vector<4x100xf32>
    %c7_66 = arith.constant 7 : index
    %c0_67 = arith.constant 0 : index
    %c0_68 = arith.constant 0 : index
    %91 = vector.load %arg6[%c7_66, %c0_67, %c0_68] : memref<9x4x4xf32, #tpu.memory_space<vmem>>, vector<1x4x4xf32>
    %92 = vector.shape_cast %91 : vector<1x4x4xf32> to vector<4x4xf32>
    %cst_69 = arith.constant dense<0.000000e+00> : vector<4x100xf32>
    %93 = tpu.matmul %92, %62, %cst_69 {dimension_numbers = #tpu.dot_dimension_numbers<[1], [0], [0], [1], [0, 0, 1, 1], [], []>} : vector<4x4xf32>, vector<4x100xf32>, vector<4x100xf32> -> vector<4x100xf32>
    %94 = arith.addf %90, %93 : vector<4x100xf32>
    %c8_70 = arith.constant 8 : index
    %c0_71 = arith.constant 0 : index
    %c0_72 = arith.constant 0 : index
    %95 = vector.load %arg6[%c8_70, %c0_71, %c0_72] : memref<9x4x4xf32, #tpu.memory_space<vmem>>, vector<1x4x4xf32>
    %96 = vector.shape_cast %95 : vector<1x4x4xf32> to vector<4x4xf32>
    %cst_73 = arith.constant dense<0.000000e+00> : vector<4x100xf32>
    %97 = tpu.matmul %96, %63, %cst_73 {dimension_numbers = #tpu.dot_dimension_numbers<[1], [0], [0], [1], [0, 0, 1, 1], [], []>} : vector<4x4xf32>, vector<4x100xf32>, vector<4x100xf32> -> vector<4x100xf32>
    %98 = arith.addf %94, %97 : vector<4x100xf32>
    %c0_74 = arith.constant 0 : index
    %c0_75 = arith.constant 0 : index
    %99 = vector.load %arg7[%c0_74, %c0_75] : memref<4x1xf32, #tpu.memory_space<vmem>>, vector<4x1xf32>
    %100 = vector.broadcast %99 : vector<4x1xf32> to vector<4x100xf32>
    %101 = arith.addf %98, %100 : vector<4x100xf32>
    %cst_76 = arith.constant 0.000000e+00 : f32
    %102 = vector.broadcast %cst_76 : f32 to vector<4x100xf32>
    %103 = arith.maximumf %101, %102 : vector<4x100xf32>
    %c0_77 = arith.constant 0 : index
    %c0_78 = arith.constant 0 : index
    %104 = vector.load %arg8[%c0_77, %c0_78] : memref<100x50xf32, #tpu.memory_space<vmem>>, vector<100x50xf32>
    %cst_79 = arith.constant dense<0.000000e+00> : vector<4x50xf32>
    %105 = tpu.matmul %103, %104, %cst_79 {dimension_numbers = #tpu.dot_dimension_numbers<[1], [0], [0], [1], [0, 0, 1, 1], [], []>} : vector<4x100xf32>, vector<100x50xf32>, vector<4x50xf32> -> vector<4x50xf32>
    %106 = vector.extract_strided_slice %105 {offsets = [0, 0], sizes = [4, 36], strides = [1, 1]} : vector<4x50xf32> to vector<4x36xf32>
    %107 = vector.extract_strided_slice %105 {offsets = [0, 1], sizes = [4, 36], strides = [1, 1]} : vector<4x50xf32> to vector<4x36xf32>
    %108 = vector.extract_strided_slice %105 {offsets = [0, 2], sizes = [4, 36], strides = [1, 1]} : vector<4x50xf32> to vector<4x36xf32>
    %109 = vector.extract_strided_slice %105 {offsets = [0, 6], sizes = [4, 36], strides = [1, 1]} : vector<4x50xf32> to vector<4x36xf32>
    %110 = vector.extract_strided_slice %105 {offsets = [0, 7], sizes = [4, 36], strides = [1, 1]} : vector<4x50xf32> to vector<4x36xf32>
    %111 = vector.extract_strided_slice %105 {offsets = [0, 8], sizes = [4, 36], strides = [1, 1]} : vector<4x50xf32> to vector<4x36xf32>
    %112 = vector.extract_strided_slice %105 {offsets = [0, 12], sizes = [4, 36], strides = [1, 1]} : vector<4x50xf32> to vector<4x36xf32>
    %113 = vector.extract_strided_slice %105 {offsets = [0, 13], sizes = [4, 36], strides = [1, 1]} : vector<4x50xf32> to vector<4x36xf32>
    %114 = vector.extract_strided_slice %105 {offsets = [0, 14], sizes = [4, 36], strides = [1, 1]} : vector<4x50xf32> to vector<4x36xf32>
    %cst_80 = arith.constant 0.000000e+00 : f32
    %115 = vector.broadcast %cst_80 : f32 to vector<4x122xf32>
    %c0_81 = arith.constant 0 : index
    %c0_82 = arith.constant 0 : index
    %c0_83 = arith.constant 0 : index
    %116 = vector.load %arg9[%c0_81, %c0_82, %c0_83] : memref<16x4x4xf32, #tpu.memory_space<vmem>>, vector<1x4x4xf32>
    %117 = vector.shape_cast %116 : vector<1x4x4xf32> to vector<4x4xf32>
    %cst_84 = arith.constant dense<0.000000e+00> : vector<4x36xf32>
    %118 = tpu.matmul %117, %106, %cst_84 {dimension_numbers = #tpu.dot_dimension_numbers<[1], [0], [0], [1], [0, 0, 1, 1], [], []>} : vector<4x4xf32>, vector<4x36xf32>, vector<4x36xf32> -> vector<4x36xf32>
    %c1_85 = arith.constant 1 : index
    %c0_86 = arith.constant 0 : index
    %c0_87 = arith.constant 0 : index
    %119 = vector.load %arg9[%c1_85, %c0_86, %c0_87] : memref<16x4x4xf32, #tpu.memory_space<vmem>>, vector<1x4x4xf32>
    %120 = vector.shape_cast %119 : vector<1x4x4xf32> to vector<4x4xf32>
    %cst_88 = arith.constant dense<0.000000e+00> : vector<4x36xf32>
    %121 = tpu.matmul %120, %107, %cst_88 {dimension_numbers = #tpu.dot_dimension_numbers<[1], [0], [0], [1], [0, 0, 1, 1], [], []>} : vector<4x4xf32>, vector<4x36xf32>, vector<4x36xf32> -> vector<4x36xf32>
    %122 = arith.addf %118, %121 : vector<4x36xf32>
    %c2_89 = arith.constant 2 : index
    %c0_90 = arith.constant 0 : index
    %c0_91 = arith.constant 0 : index
    %123 = vector.load %arg9[%c2_89, %c0_90, %c0_91] : memref<16x4x4xf32, #tpu.memory_space<vmem>>, vector<1x4x4xf32>
    %124 = vector.shape_cast %123 : vector<1x4x4xf32> to vector<4x4xf32>
    %cst_92 = arith.constant dense<0.000000e+00> : vector<4x36xf32>
    %125 = tpu.matmul %124, %109, %cst_92 {dimension_numbers = #tpu.dot_dimension_numbers<[1], [0], [0], [1], [0, 0, 1, 1], [], []>} : vector<4x4xf32>, vector<4x36xf32>, vector<4x36xf32> -> vector<4x36xf32>
    %126 = arith.addf %122, %125 : vector<4x36xf32>
    %c3_93 = arith.constant 3 : index
    %c0_94 = arith.constant 0 : index
    %c0_95 = arith.constant 0 : index
    %127 = vector.load %arg9[%c3_93, %c0_94, %c0_95] : memref<16x4x4xf32, #tpu.memory_space<vmem>>, vector<1x4x4xf32>
    %128 = vector.shape_cast %127 : vector<1x4x4xf32> to vector<4x4xf32>
    %cst_96 = arith.constant dense<0.000000e+00> : vector<4x36xf32>
    %129 = tpu.matmul %128, %110, %cst_96 {dimension_numbers = #tpu.dot_dimension_numbers<[1], [0], [0], [1], [0, 0, 1, 1], [], []>} : vector<4x4xf32>, vector<4x36xf32>, vector<4x36xf32> -> vector<4x36xf32>
    %130 = arith.addf %126, %129 : vector<4x36xf32>
    %c0_97 = arith.constant 0 : index
    %c0_98 = arith.constant 0 : index
    %131 = vector.load %arg10[%c0_97, %c0_98] : memref<4x1xf32, #tpu.memory_space<vmem>>, vector<4x1xf32>
    %132 = vector.broadcast %131 : vector<4x1xf32> to vector<4x36xf32>
    %133 = arith.addf %130, %132 : vector<4x36xf32>
    %cst_99 = arith.constant 0.000000e+00 : f32
    %134 = vector.broadcast %cst_99 : f32 to vector<4x36xf32>
    %135 = arith.maximumf %133, %134 : vector<4x36xf32>
    %c0_100 = arith.constant 0 : index
    %c0_101 = arith.constant 0 : index
    %c0_102 = arith.constant 0 : index
    %136 = vector.load %arg11[%c0_100, %c0_101, %c0_102] : memref<4x36x122xf32, #tpu.memory_space<vmem>>, vector<1x36x122xf32>
    %137 = vector.shape_cast %136 : vector<1x36x122xf32> to vector<36x122xf32>
    %cst_103 = arith.constant dense<0.000000e+00> : vector<4x122xf32>
    %138 = tpu.matmul %135, %137, %cst_103 {dimension_numbers = #tpu.dot_dimension_numbers<[1], [0], [0], [1], [0, 0, 1, 1], [], []>} : vector<4x36xf32>, vector<36x122xf32>, vector<4x122xf32> -> vector<4x122xf32>
    %139 = arith.addf %115, %138 : vector<4x122xf32>
    %c4_104 = arith.constant 4 : index
    %c0_105 = arith.constant 0 : index
    %c0_106 = arith.constant 0 : index
    %140 = vector.load %arg9[%c4_104, %c0_105, %c0_106] : memref<16x4x4xf32, #tpu.memory_space<vmem>>, vector<1x4x4xf32>
    %141 = vector.shape_cast %140 : vector<1x4x4xf32> to vector<4x4xf32>
    %cst_107 = arith.constant dense<0.000000e+00> : vector<4x36xf32>
    %142 = tpu.matmul %141, %107, %cst_107 {dimension_numbers = #tpu.dot_dimension_numbers<[1], [0], [0], [1], [0, 0, 1, 1], [], []>} : vector<4x4xf32>, vector<4x36xf32>, vector<4x36xf32> -> vector<4x36xf32>
    %c5_108 = arith.constant 5 : index
    %c0_109 = arith.constant 0 : index
    %c0_110 = arith.constant 0 : index
    %143 = vector.load %arg9[%c5_108, %c0_109, %c0_110] : memref<16x4x4xf32, #tpu.memory_space<vmem>>, vector<1x4x4xf32>
    %144 = vector.shape_cast %143 : vector<1x4x4xf32> to vector<4x4xf32>
    %cst_111 = arith.constant dense<0.000000e+00> : vector<4x36xf32>
    %145 = tpu.matmul %144, %108, %cst_111 {dimension_numbers = #tpu.dot_dimension_numbers<[1], [0], [0], [1], [0, 0, 1, 1], [], []>} : vector<4x4xf32>, vector<4x36xf32>, vector<4x36xf32> -> vector<4x36xf32>
    %146 = arith.addf %142, %145 : vector<4x36xf32>
    %c6_112 = arith.constant 6 : index
    %c0_113 = arith.constant 0 : index
    %c0_114 = arith.constant 0 : index
    %147 = vector.load %arg9[%c6_112, %c0_113, %c0_114] : memref<16x4x4xf32, #tpu.memory_space<vmem>>, vector<1x4x4xf32>
    %148 = vector.shape_cast %147 : vector<1x4x4xf32> to vector<4x4xf32>
    %cst_115 = arith.constant dense<0.000000e+00> : vector<4x36xf32>
    %149 = tpu.matmul %148, %110, %cst_115 {dimension_numbers = #tpu.dot_dimension_numbers<[1], [0], [0], [1], [0, 0, 1, 1], [], []>} : vector<4x4xf32>, vector<4x36xf32>, vector<4x36xf32> -> vector<4x36xf32>
    %150 = arith.addf %146, %149 : vector<4x36xf32>
    %c7_116 = arith.constant 7 : index
    %c0_117 = arith.constant 0 : index
    %c0_118 = arith.constant 0 : index
    %151 = vector.load %arg9[%c7_116, %c0_117, %c0_118] : memref<16x4x4xf32, #tpu.memory_space<vmem>>, vector<1x4x4xf32>
    %152 = vector.shape_cast %151 : vector<1x4x4xf32> to vector<4x4xf32>
    %cst_119 = arith.constant dense<0.000000e+00> : vector<4x36xf32>
    %153 = tpu.matmul %152, %111, %cst_119 {dimension_numbers = #tpu.dot_dimension_numbers<[1], [0], [0], [1], [0, 0, 1, 1], [], []>} : vector<4x4xf32>, vector<4x36xf32>, vector<4x36xf32> -> vector<4x36xf32>
    %154 = arith.addf %150, %153 : vector<4x36xf32>
    %c0_120 = arith.constant 0 : index
    %c0_121 = arith.constant 0 : index
    %155 = vector.load %arg10[%c0_120, %c0_121] : memref<4x1xf32, #tpu.memory_space<vmem>>, vector<4x1xf32>
    %156 = vector.broadcast %155 : vector<4x1xf32> to vector<4x36xf32>
    %157 = arith.addf %154, %156 : vector<4x36xf32>
    %cst_122 = arith.constant 0.000000e+00 : f32
    %158 = vector.broadcast %cst_122 : f32 to vector<4x36xf32>
    %159 = arith.maximumf %157, %158 : vector<4x36xf32>
    %c1_123 = arith.constant 1 : index
    %c0_124 = arith.constant 0 : index
    %c0_125 = arith.constant 0 : index
    %160 = vector.load %arg11[%c1_123, %c0_124, %c0_125] : memref<4x36x122xf32, #tpu.memory_space<vmem>>, vector<1x36x122xf32>
    %161 = vector.shape_cast %160 : vector<1x36x122xf32> to vector<36x122xf32>
    %cst_126 = arith.constant dense<0.000000e+00> : vector<4x122xf32>
    %162 = tpu.matmul %159, %161, %cst_126 {dimension_numbers = #tpu.dot_dimension_numbers<[1], [0], [0], [1], [0, 0, 1, 1], [], []>} : vector<4x36xf32>, vector<36x122xf32>, vector<4x122xf32> -> vector<4x122xf32>
    %163 = arith.addf %139, %162 : vector<4x122xf32>
    %c8_127 = arith.constant 8 : index
    %c0_128 = arith.constant 0 : index
    %c0_129 = arith.constant 0 : index
    %164 = vector.load %arg9[%c8_127, %c0_128, %c0_129] : memref<16x4x4xf32, #tpu.memory_space<vmem>>, vector<1x4x4xf32>
    %165 = vector.shape_cast %164 : vector<1x4x4xf32> to vector<4x4xf32>
    %cst_130 = arith.constant dense<0.000000e+00> : vector<4x36xf32>
    %166 = tpu.matmul %165, %109, %cst_130 {dimension_numbers = #tpu.dot_dimension_numbers<[1], [0], [0], [1], [0, 0, 1, 1], [], []>} : vector<4x4xf32>, vector<4x36xf32>, vector<4x36xf32> -> vector<4x36xf32>
    %c9 = arith.constant 9 : index
    %c0_131 = arith.constant 0 : index
    %c0_132 = arith.constant 0 : index
    %167 = vector.load %arg9[%c9, %c0_131, %c0_132] : memref<16x4x4xf32, #tpu.memory_space<vmem>>, vector<1x4x4xf32>
    %168 = vector.shape_cast %167 : vector<1x4x4xf32> to vector<4x4xf32>
    %cst_133 = arith.constant dense<0.000000e+00> : vector<4x36xf32>
    %169 = tpu.matmul %168, %110, %cst_133 {dimension_numbers = #tpu.dot_dimension_numbers<[1], [0], [0], [1], [0, 0, 1, 1], [], []>} : vector<4x4xf32>, vector<4x36xf32>, vector<4x36xf32> -> vector<4x36xf32>
    %170 = arith.addf %166, %169 : vector<4x36xf32>
    %c10 = arith.constant 10 : index
    %c0_134 = arith.constant 0 : index
    %c0_135 = arith.constant 0 : index
    %171 = vector.load %arg9[%c10, %c0_134, %c0_135] : memref<16x4x4xf32, #tpu.memory_space<vmem>>, vector<1x4x4xf32>
    %172 = vector.shape_cast %171 : vector<1x4x4xf32> to vector<4x4xf32>
    %cst_136 = arith.constant dense<0.000000e+00> : vector<4x36xf32>
    %173 = tpu.matmul %172, %112, %cst_136 {dimension_numbers = #tpu.dot_dimension_numbers<[1], [0], [0], [1], [0, 0, 1, 1], [], []>} : vector<4x4xf32>, vector<4x36xf32>, vector<4x36xf32> -> vector<4x36xf32>
    %174 = arith.addf %170, %173 : vector<4x36xf32>
    %c11 = arith.constant 11 : index
    %c0_137 = arith.constant 0 : index
    %c0_138 = arith.constant 0 : index
    %175 = vector.load %arg9[%c11, %c0_137, %c0_138] : memref<16x4x4xf32, #tpu.memory_space<vmem>>, vector<1x4x4xf32>
    %176 = vector.shape_cast %175 : vector<1x4x4xf32> to vector<4x4xf32>
    %cst_139 = arith.constant dense<0.000000e+00> : vector<4x36xf32>
    %177 = tpu.matmul %176, %113, %cst_139 {dimension_numbers = #tpu.dot_dimension_numbers<[1], [0], [0], [1], [0, 0, 1, 1], [], []>} : vector<4x4xf32>, vector<4x36xf32>, vector<4x36xf32> -> vector<4x36xf32>
    %178 = arith.addf %174, %177 : vector<4x36xf32>
    %c0_140 = arith.constant 0 : index
    %c0_141 = arith.constant 0 : index
    %179 = vector.load %arg10[%c0_140, %c0_141] : memref<4x1xf32, #tpu.memory_space<vmem>>, vector<4x1xf32>
    %180 = vector.broadcast %179 : vector<4x1xf32> to vector<4x36xf32>
    %181 = arith.addf %178, %180 : vector<4x36xf32>
    %cst_142 = arith.constant 0.000000e+00 : f32
    %182 = vector.broadcast %cst_142 : f32 to vector<4x36xf32>
    %183 = arith.maximumf %181, %182 : vector<4x36xf32>
    %c2_143 = arith.constant 2 : index
    %c0_144 = arith.constant 0 : index
    %c0_145 = arith.constant 0 : index
    %184 = vector.load %arg11[%c2_143, %c0_144, %c0_145] : memref<4x36x122xf32, #tpu.memory_space<vmem>>, vector<1x36x122xf32>
    %185 = vector.shape_cast %184 : vector<1x36x122xf32> to vector<36x122xf32>
    %cst_146 = arith.constant dense<0.000000e+00> : vector<4x122xf32>
    %186 = tpu.matmul %183, %185, %cst_146 {dimension_numbers = #tpu.dot_dimension_numbers<[1], [0], [0], [1], [0, 0, 1, 1], [], []>} : vector<4x36xf32>, vector<36x122xf32>, vector<4x122xf32> -> vector<4x122xf32>
    %187 = arith.addf %163, %186 : vector<4x122xf32>
    %c12 = arith.constant 12 : index
    %c0_147 = arith.constant 0 : index
    %c0_148 = arith.constant 0 : index
    %188 = vector.load %arg9[%c12, %c0_147, %c0_148] : memref<16x4x4xf32, #tpu.memory_space<vmem>>, vector<1x4x4xf32>
    %189 = vector.shape_cast %188 : vector<1x4x4xf32> to vector<4x4xf32>
    %cst_149 = arith.constant dense<0.000000e+00> : vector<4x36xf32>
    %190 = tpu.matmul %189, %110, %cst_149 {dimension_numbers = #tpu.dot_dimension_numbers<[1], [0], [0], [1], [0, 0, 1, 1], [], []>} : vector<4x4xf32>, vector<4x36xf32>, vector<4x36xf32> -> vector<4x36xf32>
    %c13 = arith.constant 13 : index
    %c0_150 = arith.constant 0 : index
    %c0_151 = arith.constant 0 : index
    %191 = vector.load %arg9[%c13, %c0_150, %c0_151] : memref<16x4x4xf32, #tpu.memory_space<vmem>>, vector<1x4x4xf32>
    %192 = vector.shape_cast %191 : vector<1x4x4xf32> to vector<4x4xf32>
    %cst_152 = arith.constant dense<0.000000e+00> : vector<4x36xf32>
    %193 = tpu.matmul %192, %111, %cst_152 {dimension_numbers = #tpu.dot_dimension_numbers<[1], [0], [0], [1], [0, 0, 1, 1], [], []>} : vector<4x4xf32>, vector<4x36xf32>, vector<4x36xf32> -> vector<4x36xf32>
    %194 = arith.addf %190, %193 : vector<4x36xf32>
    %c14 = arith.constant 14 : index
    %c0_153 = arith.constant 0 : index
    %c0_154 = arith.constant 0 : index
    %195 = vector.load %arg9[%c14, %c0_153, %c0_154] : memref<16x4x4xf32, #tpu.memory_space<vmem>>, vector<1x4x4xf32>
    %196 = vector.shape_cast %195 : vector<1x4x4xf32> to vector<4x4xf32>
    %cst_155 = arith.constant dense<0.000000e+00> : vector<4x36xf32>
    %197 = tpu.matmul %196, %113, %cst_155 {dimension_numbers = #tpu.dot_dimension_numbers<[1], [0], [0], [1], [0, 0, 1, 1], [], []>} : vector<4x4xf32>, vector<4x36xf32>, vector<4x36xf32> -> vector<4x36xf32>
    %198 = arith.addf %194, %197 : vector<4x36xf32>
    %c15 = arith.constant 15 : index
    %c0_156 = arith.constant 0 : index
    %c0_157 = arith.constant 0 : index
    %199 = vector.load %arg9[%c15, %c0_156, %c0_157] : memref<16x4x4xf32, #tpu.memory_space<vmem>>, vector<1x4x4xf32>
    %200 = vector.shape_cast %199 : vector<1x4x4xf32> to vector<4x4xf32>
    %cst_158 = arith.constant dense<0.000000e+00> : vector<4x36xf32>
    %201 = tpu.matmul %200, %114, %cst_158 {dimension_numbers = #tpu.dot_dimension_numbers<[1], [0], [0], [1], [0, 0, 1, 1], [], []>} : vector<4x4xf32>, vector<4x36xf32>, vector<4x36xf32> -> vector<4x36xf32>
    %202 = arith.addf %198, %201 : vector<4x36xf32>
    %c0_159 = arith.constant 0 : index
    %c0_160 = arith.constant 0 : index
    %203 = vector.load %arg10[%c0_159, %c0_160] : memref<4x1xf32, #tpu.memory_space<vmem>>, vector<4x1xf32>
    %204 = vector.broadcast %203 : vector<4x1xf32> to vector<4x36xf32>
    %205 = arith.addf %202, %204 : vector<4x36xf32>
    %cst_161 = arith.constant 0.000000e+00 : f32
    %206 = vector.broadcast %cst_161 : f32 to vector<4x36xf32>
    %207 = arith.maximumf %205, %206 : vector<4x36xf32>
    %c3_162 = arith.constant 3 : index
    %c0_163 = arith.constant 0 : index
    %c0_164 = arith.constant 0 : index
    %208 = vector.load %arg11[%c3_162, %c0_163, %c0_164] : memref<4x36x122xf32, #tpu.memory_space<vmem>>, vector<1x36x122xf32>
    %209 = vector.shape_cast %208 : vector<1x36x122xf32> to vector<36x122xf32>
    %cst_165 = arith.constant dense<0.000000e+00> : vector<4x122xf32>
    %210 = tpu.matmul %207, %209, %cst_165 {dimension_numbers = #tpu.dot_dimension_numbers<[1], [0], [0], [1], [0, 0, 1, 1], [], []>} : vector<4x36xf32>, vector<36x122xf32>, vector<4x122xf32> -> vector<4x122xf32>
    %211 = arith.addf %187, %210 : vector<4x122xf32>
    %212 = vector.extract_strided_slice %211 {offsets = [0, 0], sizes = [4, 100], strides = [1, 1]} : vector<4x122xf32> to vector<4x100xf32>
    %213 = vector.extract_strided_slice %211 {offsets = [0, 1], sizes = [4, 100], strides = [1, 1]} : vector<4x122xf32> to vector<4x100xf32>
    %214 = vector.extract_strided_slice %211 {offsets = [0, 2], sizes = [4, 100], strides = [1, 1]} : vector<4x122xf32> to vector<4x100xf32>
    %215 = vector.extract_strided_slice %211 {offsets = [0, 10], sizes = [4, 100], strides = [1, 1]} : vector<4x122xf32> to vector<4x100xf32>
    %216 = vector.extract_strided_slice %211 {offsets = [0, 11], sizes = [4, 100], strides = [1, 1]} : vector<4x122xf32> to vector<4x100xf32>
    %217 = vector.extract_strided_slice %211 {offsets = [0, 12], sizes = [4, 100], strides = [1, 1]} : vector<4x122xf32> to vector<4x100xf32>
    %218 = vector.extract_strided_slice %211 {offsets = [0, 20], sizes = [4, 100], strides = [1, 1]} : vector<4x122xf32> to vector<4x100xf32>
    %219 = vector.extract_strided_slice %211 {offsets = [0, 21], sizes = [4, 100], strides = [1, 1]} : vector<4x122xf32> to vector<4x100xf32>
    %220 = vector.extract_strided_slice %211 {offsets = [0, 22], sizes = [4, 100], strides = [1, 1]} : vector<4x122xf32> to vector<4x100xf32>
    %cst_166 = arith.constant 0.000000e+00 : f32
    %221 = vector.broadcast %cst_166 : f32 to vector<4x256xf32>
    %c0_167 = arith.constant 0 : index
    %c0_168 = arith.constant 0 : index
    %c0_169 = arith.constant 0 : index
    %222 = vector.load %arg12[%c0_167, %c0_168, %c0_169] : memref<16x4x4xf32, #tpu.memory_space<vmem>>, vector<1x4x4xf32>
    %223 = vector.shape_cast %222 : vector<1x4x4xf32> to vector<4x4xf32>
    %cst_170 = arith.constant dense<0.000000e+00> : vector<4x100xf32>
    %224 = tpu.matmul %223, %212, %cst_170 {dimension_numbers = #tpu.dot_dimension_numbers<[1], [0], [0], [1], [0, 0, 1, 1], [], []>} : vector<4x4xf32>, vector<4x100xf32>, vector<4x100xf32> -> vector<4x100xf32>
    %c0_171 = arith.constant 0 : index
    %c0_172 = arith.constant 0 : index
    %c0_173 = arith.constant 0 : index
    %225 = vector.load %arg13[%c0_171, %c0_172, %c0_173] : memref<16x4x4xf32, #tpu.memory_space<vmem>>, vector<1x4x4xf32>
    %226 = vector.shape_cast %225 : vector<1x4x4xf32> to vector<4x4xf32>
    %cst_174 = arith.constant dense<0.000000e+00> : vector<4x100xf32>
    %227 = tpu.matmul %226, %55, %cst_174 {dimension_numbers = #tpu.dot_dimension_numbers<[1], [0], [0], [1], [0, 0, 1, 1], [], []>} : vector<4x4xf32>, vector<4x100xf32>, vector<4x100xf32> -> vector<4x100xf32>
    %228 = arith.addf %224, %227 : vector<4x100xf32>
    %c1_175 = arith.constant 1 : index
    %c0_176 = arith.constant 0 : index
    %c0_177 = arith.constant 0 : index
    %229 = vector.load %arg12[%c1_175, %c0_176, %c0_177] : memref<16x4x4xf32, #tpu.memory_space<vmem>>, vector<1x4x4xf32>
    %230 = vector.shape_cast %229 : vector<1x4x4xf32> to vector<4x4xf32>
    %cst_178 = arith.constant dense<0.000000e+00> : vector<4x100xf32>
    %231 = tpu.matmul %230, %213, %cst_178 {dimension_numbers = #tpu.dot_dimension_numbers<[1], [0], [0], [1], [0, 0, 1, 1], [], []>} : vector<4x4xf32>, vector<4x100xf32>, vector<4x100xf32> -> vector<4x100xf32>
    %c1_179 = arith.constant 1 : index
    %c0_180 = arith.constant 0 : index
    %c0_181 = arith.constant 0 : index
    %232 = vector.load %arg13[%c1_179, %c0_180, %c0_181] : memref<16x4x4xf32, #tpu.memory_space<vmem>>, vector<1x4x4xf32>
    %233 = vector.shape_cast %232 : vector<1x4x4xf32> to vector<4x4xf32>
    %cst_182 = arith.constant dense<0.000000e+00> : vector<4x100xf32>
    %234 = tpu.matmul %233, %56, %cst_182 {dimension_numbers = #tpu.dot_dimension_numbers<[1], [0], [0], [1], [0, 0, 1, 1], [], []>} : vector<4x4xf32>, vector<4x100xf32>, vector<4x100xf32> -> vector<4x100xf32>
    %235 = arith.addf %231, %234 : vector<4x100xf32>
    %236 = arith.addf %228, %235 : vector<4x100xf32>
    %c2_183 = arith.constant 2 : index
    %c0_184 = arith.constant 0 : index
    %c0_185 = arith.constant 0 : index
    %237 = vector.load %arg12[%c2_183, %c0_184, %c0_185] : memref<16x4x4xf32, #tpu.memory_space<vmem>>, vector<1x4x4xf32>
    %238 = vector.shape_cast %237 : vector<1x4x4xf32> to vector<4x4xf32>
    %cst_186 = arith.constant dense<0.000000e+00> : vector<4x100xf32>
    %239 = tpu.matmul %238, %215, %cst_186 {dimension_numbers = #tpu.dot_dimension_numbers<[1], [0], [0], [1], [0, 0, 1, 1], [], []>} : vector<4x4xf32>, vector<4x100xf32>, vector<4x100xf32> -> vector<4x100xf32>
    %c2_187 = arith.constant 2 : index
    %c0_188 = arith.constant 0 : index
    %c0_189 = arith.constant 0 : index
    %240 = vector.load %arg13[%c2_187, %c0_188, %c0_189] : memref<16x4x4xf32, #tpu.memory_space<vmem>>, vector<1x4x4xf32>
    %241 = vector.shape_cast %240 : vector<1x4x4xf32> to vector<4x4xf32>
    %cst_190 = arith.constant dense<0.000000e+00> : vector<4x100xf32>
    %242 = tpu.matmul %241, %58, %cst_190 {dimension_numbers = #tpu.dot_dimension_numbers<[1], [0], [0], [1], [0, 0, 1, 1], [], []>} : vector<4x4xf32>, vector<4x100xf32>, vector<4x100xf32> -> vector<4x100xf32>
    %243 = arith.addf %239, %242 : vector<4x100xf32>
    %244 = arith.addf %236, %243 : vector<4x100xf32>
    %c3_191 = arith.constant 3 : index
    %c0_192 = arith.constant 0 : index
    %c0_193 = arith.constant 0 : index
    %245 = vector.load %arg12[%c3_191, %c0_192, %c0_193] : memref<16x4x4xf32, #tpu.memory_space<vmem>>, vector<1x4x4xf32>
    %246 = vector.shape_cast %245 : vector<1x4x4xf32> to vector<4x4xf32>
    %cst_194 = arith.constant dense<0.000000e+00> : vector<4x100xf32>
    %247 = tpu.matmul %246, %216, %cst_194 {dimension_numbers = #tpu.dot_dimension_numbers<[1], [0], [0], [1], [0, 0, 1, 1], [], []>} : vector<4x4xf32>, vector<4x100xf32>, vector<4x100xf32> -> vector<4x100xf32>
    %c3_195 = arith.constant 3 : index
    %c0_196 = arith.constant 0 : index
    %c0_197 = arith.constant 0 : index
    %248 = vector.load %arg13[%c3_195, %c0_196, %c0_197] : memref<16x4x4xf32, #tpu.memory_space<vmem>>, vector<1x4x4xf32>
    %249 = vector.shape_cast %248 : vector<1x4x4xf32> to vector<4x4xf32>
    %cst_198 = arith.constant dense<0.000000e+00> : vector<4x100xf32>
    %250 = tpu.matmul %249, %59, %cst_198 {dimension_numbers = #tpu.dot_dimension_numbers<[1], [0], [0], [1], [0, 0, 1, 1], [], []>} : vector<4x4xf32>, vector<4x100xf32>, vector<4x100xf32> -> vector<4x100xf32>
    %251 = arith.addf %247, %250 : vector<4x100xf32>
    %252 = arith.addf %244, %251 : vector<4x100xf32>
    %c0_199 = arith.constant 0 : index
    %c0_200 = arith.constant 0 : index
    %253 = vector.load %arg14[%c0_199, %c0_200] : memref<4x1xf32, #tpu.memory_space<vmem>>, vector<4x1xf32>
    %254 = vector.broadcast %253 : vector<4x1xf32> to vector<4x100xf32>
    %255 = arith.addf %252, %254 : vector<4x100xf32>
    %cst_201 = arith.constant 0.000000e+00 : f32
    %256 = vector.broadcast %cst_201 : f32 to vector<4x100xf32>
    %257 = arith.maximumf %255, %256 : vector<4x100xf32>
    %c0_202 = arith.constant 0 : index
    %c0_203 = arith.constant 0 : index
    %c0_204 = arith.constant 0 : index
    %258 = vector.load %arg15[%c0_202, %c0_203, %c0_204] : memref<4x100x256xf32, #tpu.memory_space<vmem>>, vector<1x100x256xf32>
    %259 = vector.shape_cast %258 : vector<1x100x256xf32> to vector<100x256xf32>
    %cst_205 = arith.constant dense<0.000000e+00> : vector<4x256xf32>
    %260 = tpu.matmul %257, %259, %cst_205 {dimension_numbers = #tpu.dot_dimension_numbers<[1], [0], [0], [1], [0, 0, 1, 1], [], []>} : vector<4x100xf32>, vector<100x256xf32>, vector<4x256xf32> -> vector<4x256xf32>
    %261 = arith.addf %221, %260 : vector<4x256xf32>
    %c4_206 = arith.constant 4 : index
    %c0_207 = arith.constant 0 : index
    %c0_208 = arith.constant 0 : index
    %262 = vector.load %arg12[%c4_206, %c0_207, %c0_208] : memref<16x4x4xf32, #tpu.memory_space<vmem>>, vector<1x4x4xf32>
    %263 = vector.shape_cast %262 : vector<1x4x4xf32> to vector<4x4xf32>
    %cst_209 = arith.constant dense<0.000000e+00> : vector<4x100xf32>
    %264 = tpu.matmul %263, %213, %cst_209 {dimension_numbers = #tpu.dot_dimension_numbers<[1], [0], [0], [1], [0, 0, 1, 1], [], []>} : vector<4x4xf32>, vector<4x100xf32>, vector<4x100xf32> -> vector<4x100xf32>
    %c4_210 = arith.constant 4 : index
    %c0_211 = arith.constant 0 : index
    %c0_212 = arith.constant 0 : index
    %265 = vector.load %arg13[%c4_210, %c0_211, %c0_212] : memref<16x4x4xf32, #tpu.memory_space<vmem>>, vector<1x4x4xf32>
    %266 = vector.shape_cast %265 : vector<1x4x4xf32> to vector<4x4xf32>
    %cst_213 = arith.constant dense<0.000000e+00> : vector<4x100xf32>
    %267 = tpu.matmul %266, %56, %cst_213 {dimension_numbers = #tpu.dot_dimension_numbers<[1], [0], [0], [1], [0, 0, 1, 1], [], []>} : vector<4x4xf32>, vector<4x100xf32>, vector<4x100xf32> -> vector<4x100xf32>
    %268 = arith.addf %264, %267 : vector<4x100xf32>
    %c5_214 = arith.constant 5 : index
    %c0_215 = arith.constant 0 : index
    %c0_216 = arith.constant 0 : index
    %269 = vector.load %arg12[%c5_214, %c0_215, %c0_216] : memref<16x4x4xf32, #tpu.memory_space<vmem>>, vector<1x4x4xf32>
    %270 = vector.shape_cast %269 : vector<1x4x4xf32> to vector<4x4xf32>
    %cst_217 = arith.constant dense<0.000000e+00> : vector<4x100xf32>
    %271 = tpu.matmul %270, %214, %cst_217 {dimension_numbers = #tpu.dot_dimension_numbers<[1], [0], [0], [1], [0, 0, 1, 1], [], []>} : vector<4x4xf32>, vector<4x100xf32>, vector<4x100xf32> -> vector<4x100xf32>
    %c5_218 = arith.constant 5 : index
    %c0_219 = arith.constant 0 : index
    %c0_220 = arith.constant 0 : index
    %272 = vector.load %arg13[%c5_218, %c0_219, %c0_220] : memref<16x4x4xf32, #tpu.memory_space<vmem>>, vector<1x4x4xf32>
    %273 = vector.shape_cast %272 : vector<1x4x4xf32> to vector<4x4xf32>
    %cst_221 = arith.constant dense<0.000000e+00> : vector<4x100xf32>
    %274 = tpu.matmul %273, %57, %cst_221 {dimension_numbers = #tpu.dot_dimension_numbers<[1], [0], [0], [1], [0, 0, 1, 1], [], []>} : vector<4x4xf32>, vector<4x100xf32>, vector<4x100xf32> -> vector<4x100xf32>
    %275 = arith.addf %271, %274 : vector<4x100xf32>
    %276 = arith.addf %268, %275 : vector<4x100xf32>
    %c6_222 = arith.constant 6 : index
    %c0_223 = arith.constant 0 : index
    %c0_224 = arith.constant 0 : index
    %277 = vector.load %arg12[%c6_222, %c0_223, %c0_224] : memref<16x4x4xf32, #tpu.memory_space<vmem>>, vector<1x4x4xf32>
    %278 = vector.shape_cast %277 : vector<1x4x4xf32> to vector<4x4xf32>
    %cst_225 = arith.constant dense<0.000000e+00> : vector<4x100xf32>
    %279 = tpu.matmul %278, %216, %cst_225 {dimension_numbers = #tpu.dot_dimension_numbers<[1], [0], [0], [1], [0, 0, 1, 1], [], []>} : vector<4x4xf32>, vector<4x100xf32>, vector<4x100xf32> -> vector<4x100xf32>
    %c6_226 = arith.constant 6 : index
    %c0_227 = arith.constant 0 : index
    %c0_228 = arith.constant 0 : index
    %280 = vector.load %arg13[%c6_226, %c0_227, %c0_228] : memref<16x4x4xf32, #tpu.memory_space<vmem>>, vector<1x4x4xf32>
    %281 = vector.shape_cast %280 : vector<1x4x4xf32> to vector<4x4xf32>
    %cst_229 = arith.constant dense<0.000000e+00> : vector<4x100xf32>
    %282 = tpu.matmul %281, %59, %cst_229 {dimension_numbers = #tpu.dot_dimension_numbers<[1], [0], [0], [1], [0, 0, 1, 1], [], []>} : vector<4x4xf32>, vector<4x100xf32>, vector<4x100xf32> -> vector<4x100xf32>
    %283 = arith.addf %279, %282 : vector<4x100xf32>
    %284 = arith.addf %276, %283 : vector<4x100xf32>
    %c7_230 = arith.constant 7 : index
    %c0_231 = arith.constant 0 : index
    %c0_232 = arith.constant 0 : index
    %285 = vector.load %arg12[%c7_230, %c0_231, %c0_232] : memref<16x4x4xf32, #tpu.memory_space<vmem>>, vector<1x4x4xf32>
    %286 = vector.shape_cast %285 : vector<1x4x4xf32> to vector<4x4xf32>
    %cst_233 = arith.constant dense<0.000000e+00> : vector<4x100xf32>
    %287 = tpu.matmul %286, %217, %cst_233 {dimension_numbers = #tpu.dot_dimension_numbers<[1], [0], [0], [1], [0, 0, 1, 1], [], []>} : vector<4x4xf32>, vector<4x100xf32>, vector<4x100xf32> -> vector<4x100xf32>
    %c7_234 = arith.constant 7 : index
    %c0_235 = arith.constant 0 : index
    %c0_236 = arith.constant 0 : index
    %288 = vector.load %arg13[%c7_234, %c0_235, %c0_236] : memref<16x4x4xf32, #tpu.memory_space<vmem>>, vector<1x4x4xf32>
    %289 = vector.shape_cast %288 : vector<1x4x4xf32> to vector<4x4xf32>
    %cst_237 = arith.constant dense<0.000000e+00> : vector<4x100xf32>
    %290 = tpu.matmul %289, %60, %cst_237 {dimension_numbers = #tpu.dot_dimension_numbers<[1], [0], [0], [1], [0, 0, 1, 1], [], []>} : vector<4x4xf32>, vector<4x100xf32>, vector<4x100xf32> -> vector<4x100xf32>
    %291 = arith.addf %287, %290 : vector<4x100xf32>
    %292 = arith.addf %284, %291 : vector<4x100xf32>
    %c0_238 = arith.constant 0 : index
    %c0_239 = arith.constant 0 : index
    %293 = vector.load %arg14[%c0_238, %c0_239] : memref<4x1xf32, #tpu.memory_space<vmem>>, vector<4x1xf32>
    %294 = vector.broadcast %293 : vector<4x1xf32> to vector<4x100xf32>
    %295 = arith.addf %292, %294 : vector<4x100xf32>
    %cst_240 = arith.constant 0.000000e+00 : f32
    %296 = vector.broadcast %cst_240 : f32 to vector<4x100xf32>
    %297 = arith.maximumf %295, %296 : vector<4x100xf32>
    %c1_241 = arith.constant 1 : index
    %c0_242 = arith.constant 0 : index
    %c0_243 = arith.constant 0 : index
    %298 = vector.load %arg15[%c1_241, %c0_242, %c0_243] : memref<4x100x256xf32, #tpu.memory_space<vmem>>, vector<1x100x256xf32>
    %299 = vector.shape_cast %298 : vector<1x100x256xf32> to vector<100x256xf32>
    %cst_244 = arith.constant dense<0.000000e+00> : vector<4x256xf32>
    %300 = tpu.matmul %297, %299, %cst_244 {dimension_numbers = #tpu.dot_dimension_numbers<[1], [0], [0], [1], [0, 0, 1, 1], [], []>} : vector<4x100xf32>, vector<100x256xf32>, vector<4x256xf32> -> vector<4x256xf32>
    %301 = arith.addf %261, %300 : vector<4x256xf32>
    %c8_245 = arith.constant 8 : index
    %c0_246 = arith.constant 0 : index
    %c0_247 = arith.constant 0 : index
    %302 = vector.load %arg12[%c8_245, %c0_246, %c0_247] : memref<16x4x4xf32, #tpu.memory_space<vmem>>, vector<1x4x4xf32>
    %303 = vector.shape_cast %302 : vector<1x4x4xf32> to vector<4x4xf32>
    %cst_248 = arith.constant dense<0.000000e+00> : vector<4x100xf32>
    %304 = tpu.matmul %303, %215, %cst_248 {dimension_numbers = #tpu.dot_dimension_numbers<[1], [0], [0], [1], [0, 0, 1, 1], [], []>} : vector<4x4xf32>, vector<4x100xf32>, vector<4x100xf32> -> vector<4x100xf32>
    %c8_249 = arith.constant 8 : index
    %c0_250 = arith.constant 0 : index
    %c0_251 = arith.constant 0 : index
    %305 = vector.load %arg13[%c8_249, %c0_250, %c0_251] : memref<16x4x4xf32, #tpu.memory_space<vmem>>, vector<1x4x4xf32>
    %306 = vector.shape_cast %305 : vector<1x4x4xf32> to vector<4x4xf32>
    %cst_252 = arith.constant dense<0.000000e+00> : vector<4x100xf32>
    %307 = tpu.matmul %306, %58, %cst_252 {dimension_numbers = #tpu.dot_dimension_numbers<[1], [0], [0], [1], [0, 0, 1, 1], [], []>} : vector<4x4xf32>, vector<4x100xf32>, vector<4x100xf32> -> vector<4x100xf32>
    %308 = arith.addf %304, %307 : vector<4x100xf32>
    %c9_253 = arith.constant 9 : index
    %c0_254 = arith.constant 0 : index
    %c0_255 = arith.constant 0 : index
    %309 = vector.load %arg12[%c9_253, %c0_254, %c0_255] : memref<16x4x4xf32, #tpu.memory_space<vmem>>, vector<1x4x4xf32>
    %310 = vector.shape_cast %309 : vector<1x4x4xf32> to vector<4x4xf32>
    %cst_256 = arith.constant dense<0.000000e+00> : vector<4x100xf32>
    %311 = tpu.matmul %310, %216, %cst_256 {dimension_numbers = #tpu.dot_dimension_numbers<[1], [0], [0], [1], [0, 0, 1, 1], [], []>} : vector<4x4xf32>, vector<4x100xf32>, vector<4x100xf32> -> vector<4x100xf32>
    %c9_257 = arith.constant 9 : index
    %c0_258 = arith.constant 0 : index
    %c0_259 = arith.constant 0 : index
    %312 = vector.load %arg13[%c9_257, %c0_258, %c0_259] : memref<16x4x4xf32, #tpu.memory_space<vmem>>, vector<1x4x4xf32>
    %313 = vector.shape_cast %312 : vector<1x4x4xf32> to vector<4x4xf32>
    %cst_260 = arith.constant dense<0.000000e+00> : vector<4x100xf32>
    %314 = tpu.matmul %313, %59, %cst_260 {dimension_numbers = #tpu.dot_dimension_numbers<[1], [0], [0], [1], [0, 0, 1, 1], [], []>} : vector<4x4xf32>, vector<4x100xf32>, vector<4x100xf32> -> vector<4x100xf32>
    %315 = arith.addf %311, %314 : vector<4x100xf32>
    %316 = arith.addf %308, %315 : vector<4x100xf32>
    %c10_261 = arith.constant 10 : index
    %c0_262 = arith.constant 0 : index
    %c0_263 = arith.constant 0 : index
    %317 = vector.load %arg12[%c10_261, %c0_262, %c0_263] : memref<16x4x4xf32, #tpu.memory_space<vmem>>, vector<1x4x4xf32>
    %318 = vector.shape_cast %317 : vector<1x4x4xf32> to vector<4x4xf32>
    %cst_264 = arith.constant dense<0.000000e+00> : vector<4x100xf32>
    %319 = tpu.matmul %318, %218, %cst_264 {dimension_numbers = #tpu.dot_dimension_numbers<[1], [0], [0], [1], [0, 0, 1, 1], [], []>} : vector<4x4xf32>, vector<4x100xf32>, vector<4x100xf32> -> vector<4x100xf32>
    %c10_265 = arith.constant 10 : index
    %c0_266 = arith.constant 0 : index
    %c0_267 = arith.constant 0 : index
    %320 = vector.load %arg13[%c10_265, %c0_266, %c0_267] : memref<16x4x4xf32, #tpu.memory_space<vmem>>, vector<1x4x4xf32>
    %321 = vector.shape_cast %320 : vector<1x4x4xf32> to vector<4x4xf32>
    %cst_268 = arith.constant dense<0.000000e+00> : vector<4x100xf32>
    %322 = tpu.matmul %321, %61, %cst_268 {dimension_numbers = #tpu.dot_dimension_numbers<[1], [0], [0], [1], [0, 0, 1, 1], [], []>} : vector<4x4xf32>, vector<4x100xf32>, vector<4x100xf32> -> vector<4x100xf32>
    %323 = arith.addf %319, %322 : vector<4x100xf32>
    %324 = arith.addf %316, %323 : vector<4x100xf32>
    %c11_269 = arith.constant 11 : index
    %c0_270 = arith.constant 0 : index
    %c0_271 = arith.constant 0 : index
    %325 = vector.load %arg12[%c11_269, %c0_270, %c0_271] : memref<16x4x4xf32, #tpu.memory_space<vmem>>, vector<1x4x4xf32>
    %326 = vector.shape_cast %325 : vector<1x4x4xf32> to vector<4x4xf32>
    %cst_272 = arith.constant dense<0.000000e+00> : vector<4x100xf32>
    %327 = tpu.matmul %326, %219, %cst_272 {dimension_numbers = #tpu.dot_dimension_numbers<[1], [0], [0], [1], [0, 0, 1, 1], [], []>} : vector<4x4xf32>, vector<4x100xf32>, vector<4x100xf32> -> vector<4x100xf32>
    %c11_273 = arith.constant 11 : index
    %c0_274 = arith.constant 0 : index
    %c0_275 = arith.constant 0 : index
    %328 = vector.load %arg13[%c11_273, %c0_274, %c0_275] : memref<16x4x4xf32, #tpu.memory_space<vmem>>, vector<1x4x4xf32>
    %329 = vector.shape_cast %328 : vector<1x4x4xf32> to vector<4x4xf32>
    %cst_276 = arith.constant dense<0.000000e+00> : vector<4x100xf32>
    %330 = tpu.matmul %329, %62, %cst_276 {dimension_numbers = #tpu.dot_dimension_numbers<[1], [0], [0], [1], [0, 0, 1, 1], [], []>} : vector<4x4xf32>, vector<4x100xf32>, vector<4x100xf32> -> vector<4x100xf32>
    %331 = arith.addf %327, %330 : vector<4x100xf32>
    %332 = arith.addf %324, %331 : vector<4x100xf32>
    %c0_277 = arith.constant 0 : index
    %c0_278 = arith.constant 0 : index
    %333 = vector.load %arg14[%c0_277, %c0_278] : memref<4x1xf32, #tpu.memory_space<vmem>>, vector<4x1xf32>
    %334 = vector.broadcast %333 : vector<4x1xf32> to vector<4x100xf32>
    %335 = arith.addf %332, %334 : vector<4x100xf32>
    %cst_279 = arith.constant 0.000000e+00 : f32
    %336 = vector.broadcast %cst_279 : f32 to vector<4x100xf32>
    %337 = arith.maximumf %335, %336 : vector<4x100xf32>
    %c2_280 = arith.constant 2 : index
    %c0_281 = arith.constant 0 : index
    %c0_282 = arith.constant 0 : index
    %338 = vector.load %arg15[%c2_280, %c0_281, %c0_282] : memref<4x100x256xf32, #tpu.memory_space<vmem>>, vector<1x100x256xf32>
    %339 = vector.shape_cast %338 : vector<1x100x256xf32> to vector<100x256xf32>
    %cst_283 = arith.constant dense<0.000000e+00> : vector<4x256xf32>
    %340 = tpu.matmul %337, %339, %cst_283 {dimension_numbers = #tpu.dot_dimension_numbers<[1], [0], [0], [1], [0, 0, 1, 1], [], []>} : vector<4x100xf32>, vector<100x256xf32>, vector<4x256xf32> -> vector<4x256xf32>
    %341 = arith.addf %301, %340 : vector<4x256xf32>
    %c12_284 = arith.constant 12 : index
    %c0_285 = arith.constant 0 : index
    %c0_286 = arith.constant 0 : index
    %342 = vector.load %arg12[%c12_284, %c0_285, %c0_286] : memref<16x4x4xf32, #tpu.memory_space<vmem>>, vector<1x4x4xf32>
    %343 = vector.shape_cast %342 : vector<1x4x4xf32> to vector<4x4xf32>
    %cst_287 = arith.constant dense<0.000000e+00> : vector<4x100xf32>
    %344 = tpu.matmul %343, %216, %cst_287 {dimension_numbers = #tpu.dot_dimension_numbers<[1], [0], [0], [1], [0, 0, 1, 1], [], []>} : vector<4x4xf32>, vector<4x100xf32>, vector<4x100xf32> -> vector<4x100xf32>
    %c12_288 = arith.constant 12 : index
    %c0_289 = arith.constant 0 : index
    %c0_290 = arith.constant 0 : index
    %345 = vector.load %arg13[%c12_288, %c0_289, %c0_290] : memref<16x4x4xf32, #tpu.memory_space<vmem>>, vector<1x4x4xf32>
    %346 = vector.shape_cast %345 : vector<1x4x4xf32> to vector<4x4xf32>
    %cst_291 = arith.constant dense<0.000000e+00> : vector<4x100xf32>
    %347 = tpu.matmul %346, %59, %cst_291 {dimension_numbers = #tpu.dot_dimension_numbers<[1], [0], [0], [1], [0, 0, 1, 1], [], []>} : vector<4x4xf32>, vector<4x100xf32>, vector<4x100xf32> -> vector<4x100xf32>
    %348 = arith.addf %344, %347 : vector<4x100xf32>
    %c13_292 = arith.constant 13 : index
    %c0_293 = arith.constant 0 : index
    %c0_294 = arith.constant 0 : index
    %349 = vector.load %arg12[%c13_292, %c0_293, %c0_294] : memref<16x4x4xf32, #tpu.memory_space<vmem>>, vector<1x4x4xf32>
    %350 = vector.shape_cast %349 : vector<1x4x4xf32> to vector<4x4xf32>
    %cst_295 = arith.constant dense<0.000000e+00> : vector<4x100xf32>
    %351 = tpu.matmul %350, %217, %cst_295 {dimension_numbers = #tpu.dot_dimension_numbers<[1], [0], [0], [1], [0, 0, 1, 1], [], []>} : vector<4x4xf32>, vector<4x100xf32>, vector<4x100xf32> -> vector<4x100xf32>
    %c13_296 = arith.constant 13 : index
    %c0_297 = arith.constant 0 : index
    %c0_298 = arith.constant 0 : index
    %352 = vector.load %arg13[%c13_296, %c0_297, %c0_298] : memref<16x4x4xf32, #tpu.memory_space<vmem>>, vector<1x4x4xf32>
    %353 = vector.shape_cast %352 : vector<1x4x4xf32> to vector<4x4xf32>
    %cst_299 = arith.constant dense<0.000000e+00> : vector<4x100xf32>
    %354 = tpu.matmul %353, %60, %cst_299 {dimension_numbers = #tpu.dot_dimension_numbers<[1], [0], [0], [1], [0, 0, 1, 1], [], []>} : vector<4x4xf32>, vector<4x100xf32>, vector<4x100xf32> -> vector<4x100xf32>
    %355 = arith.addf %351, %354 : vector<4x100xf32>
    %356 = arith.addf %348, %355 : vector<4x100xf32>
    %c14_300 = arith.constant 14 : index
    %c0_301 = arith.constant 0 : index
    %c0_302 = arith.constant 0 : index
    %357 = vector.load %arg12[%c14_300, %c0_301, %c0_302] : memref<16x4x4xf32, #tpu.memory_space<vmem>>, vector<1x4x4xf32>
    %358 = vector.shape_cast %357 : vector<1x4x4xf32> to vector<4x4xf32>
    %cst_303 = arith.constant dense<0.000000e+00> : vector<4x100xf32>
    %359 = tpu.matmul %358, %219, %cst_303 {dimension_numbers = #tpu.dot_dimension_numbers<[1], [0], [0], [1], [0, 0, 1, 1], [], []>} : vector<4x4xf32>, vector<4x100xf32>, vector<4x100xf32> -> vector<4x100xf32>
    %c14_304 = arith.constant 14 : index
    %c0_305 = arith.constant 0 : index
    %c0_306 = arith.constant 0 : index
    %360 = vector.load %arg13[%c14_304, %c0_305, %c0_306] : memref<16x4x4xf32, #tpu.memory_space<vmem>>, vector<1x4x4xf32>
    %361 = vector.shape_cast %360 : vector<1x4x4xf32> to vector<4x4xf32>
    %cst_307 = arith.constant dense<0.000000e+00> : vector<4x100xf32>
    %362 = tpu.matmul %361, %62, %cst_307 {dimension_numbers = #tpu.dot_dimension_numbers<[1], [0], [0], [1], [0, 0, 1, 1], [], []>} : vector<4x4xf32>, vector<4x100xf32>, vector<4x100xf32> -> vector<4x100xf32>
    %363 = arith.addf %359, %362 : vector<4x100xf32>
    %364 = arith.addf %356, %363 : vector<4x100xf32>
    %c15_308 = arith.constant 15 : index
    %c0_309 = arith.constant 0 : index
    %c0_310 = arith.constant 0 : index
    %365 = vector.load %arg12[%c15_308, %c0_309, %c0_310] : memref<16x4x4xf32, #tpu.memory_space<vmem>>, vector<1x4x4xf32>
    %366 = vector.shape_cast %365 : vector<1x4x4xf32> to vector<4x4xf32>
    %cst_311 = arith.constant dense<0.000000e+00> : vector<4x100xf32>
    %367 = tpu.matmul %366, %220, %cst_311 {dimension_numbers = #tpu.dot_dimension_numbers<[1], [0], [0], [1], [0, 0, 1, 1], [], []>} : vector<4x4xf32>, vector<4x100xf32>, vector<4x100xf32> -> vector<4x100xf32>
    %c15_312 = arith.constant 15 : index
    %c0_313 = arith.constant 0 : index
    %c0_314 = arith.constant 0 : index
    %368 = vector.load %arg13[%c15_312, %c0_313, %c0_314] : memref<16x4x4xf32, #tpu.memory_space<vmem>>, vector<1x4x4xf32>
    %369 = vector.shape_cast %368 : vector<1x4x4xf32> to vector<4x4xf32>
    %cst_315 = arith.constant dense<0.000000e+00> : vector<4x100xf32>
    %370 = tpu.matmul %369, %63, %cst_315 {dimension_numbers = #tpu.dot_dimension_numbers<[1], [0], [0], [1], [0, 0, 1, 1], [], []>} : vector<4x4xf32>, vector<4x100xf32>, vector<4x100xf32> -> vector<4x100xf32>
    %371 = arith.addf %367, %370 : vector<4x100xf32>
    %372 = arith.addf %364, %371 : vector<4x100xf32>
    %c0_316 = arith.constant 0 : index
    %c0_317 = arith.constant 0 : index
    %373 = vector.load %arg14[%c0_316, %c0_317] : memref<4x1xf32, #tpu.memory_space<vmem>>, vector<4x1xf32>
    %374 = vector.broadcast %373 : vector<4x1xf32> to vector<4x100xf32>
    %375 = arith.addf %372, %374 : vector<4x100xf32>
    %cst_318 = arith.constant 0.000000e+00 : f32
    %376 = vector.broadcast %cst_318 : f32 to vector<4x100xf32>
    %377 = arith.maximumf %375, %376 : vector<4x100xf32>
    %c3_319 = arith.constant 3 : index
    %c0_320 = arith.constant 0 : index
    %c0_321 = arith.constant 0 : index
    %378 = vector.load %arg15[%c3_319, %c0_320, %c0_321] : memref<4x100x256xf32, #tpu.memory_space<vmem>>, vector<1x100x256xf32>
    %379 = vector.shape_cast %378 : vector<1x100x256xf32> to vector<100x256xf32>
    %cst_322 = arith.constant dense<0.000000e+00> : vector<4x256xf32>
    %380 = tpu.matmul %377, %379, %cst_322 {dimension_numbers = #tpu.dot_dimension_numbers<[1], [0], [0], [1], [0, 0, 1, 1], [], []>} : vector<4x100xf32>, vector<100x256xf32>, vector<4x256xf32> -> vector<4x256xf32>
    %381 = arith.addf %341, %380 : vector<4x256xf32>
    %c0_323 = arith.constant 0 : index
    %c0_324 = arith.constant 0 : index
    %c0_325 = arith.constant 0 : index
    %382 = vector.load %arg16[%c0_323, %c0_324, %c0_325] : memref<1x4x256xf32, #tpu.memory_space<vmem>>, vector<1x4x256xf32>
    %383 = vector.shape_cast %382 : vector<1x4x256xf32> to vector<4x256xf32>
    %384 = vector.shape_cast %381 : vector<4x256xf32> to vector<1x4x256xf32>
    tpu.vector_store %arg16[%c0_323, %c0_324, %c0_325], %384 {strides = array<i32>} : memref<1x4x256xf32, #tpu.memory_space<vmem>>, vector<1x4x256xf32>,
    return
  }
  func.func @transform_0(%arg0: i32) -> (i32, i32, i32) {
    %c0_i32 = arith.constant 0 : i32
    %c0_i32_0 = arith.constant 0 : i32
    %c0_i32_1 = arith.constant 0 : i32
    return %arg0, %c0_i32, %c0_i32_0 : i32, i32, i32
  }
  func.func @transform_1(%arg0: i32) -> (i32, i32) {
    %c0_i32 = arith.constant 0 : i32
    %c0_i32_0 = arith.constant 0 : i32
    %c0_i32_1 = arith.constant 0 : i32
    return %c0_i32, %c0_i32_0 : i32, i32
  }
  func.func @transform_2(%arg0: i32) -> (i32, i32, i32) {
    %c0_i32 = arith.constant 0 : i32
    %c0_i32_0 = arith.constant 0 : i32
    %c0_i32_1 = arith.constant 0 : i32
    %c0_i32_2 = arith.constant 0 : i32
    return %c0_i32, %c0_i32_0, %c0_i32_1 : i32, i32, i32
  }
  func.func @transform_3(%arg0: i32) -> (i32, i32) {
    %c0_i32 = arith.constant 0 : i32
    %c0_i32_0 = arith.constant 0 : i32
    %c0_i32_1 = arith.constant 0 : i32
    return %c0_i32, %c0_i32_0 : i32, i32
  }
  func.func @transform_4(%arg0: i32) -> (i32, i32) {
    %c0_i32 = arith.constant 0 : i32
    %c0_i32_0 = arith.constant 0 : i32
    %c0_i32_1 = arith.constant 0 : i32
    return %c0_i32, %c0_i32_0 : i32, i32
  }
  func.func @transform_5(%arg0: i32) -> (i32, i32, i32) {
    %c0_i32 = arith.constant 0 : i32
    %c0_i32_0 = arith.constant 0 : i32
    %c0_i32_1 = arith.constant 0 : i32
    %c0_i32_2 = arith.constant 0 : i32
    return %c0_i32, %c0_i32_0, %c0_i32_1 : i32, i32, i32
  }
  func.func @transform_6(%arg0: i32) -> (i32, i32) {
    %c0_i32 = arith.constant 0 : i32
    %c0_i32_0 = arith.constant 0 : i32
    %c0_i32_1 = arith.constant 0 : i32
    return %c0_i32, %c0_i32_0 : i32, i32
  }
  func.func @transform_7(%arg0: i32) -> (i32, i32) {
    %c0_i32 = arith.constant 0 : i32
    %c0_i32_0 = arith.constant 0 : i32
    %c0_i32_1 = arith.constant 0 : i32
    return %c0_i32, %c0_i32_0 : i32, i32
  }
  func.func @transform_8(%arg0: i32) -> (i32, i32, i32) {
    %c0_i32 = arith.constant 0 : i32
    %c0_i32_0 = arith.constant 0 : i32
    %c0_i32_1 = arith.constant 0 : i32
    %c0_i32_2 = arith.constant 0 : i32
    return %c0_i32, %c0_i32_0, %c0_i32_1 : i32, i32, i32
  }
  func.func @transform_9(%arg0: i32) -> (i32, i32) {
    %c0_i32 = arith.constant 0 : i32
    %c0_i32_0 = arith.constant 0 : i32
    %c0_i32_1 = arith.constant 0 : i32
    return %c0_i32, %c0_i32_0 : i32, i32
  }
  func.func @transform_10(%arg0: i32) -> (i32, i32, i32) {
    %c0_i32 = arith.constant 0 : i32
    %c0_i32_0 = arith.constant 0 : i32
    %c0_i32_1 = arith.constant 0 : i32
    %c0_i32_2 = arith.constant 0 : i32
    return %c0_i32, %c0_i32_0, %c0_i32_1 : i32, i32, i32
  }
  func.func @transform_11(%arg0: i32) -> (i32, i32, i32) {
    %c0_i32 = arith.constant 0 : i32
    %c0_i32_0 = arith.constant 0 : i32
    %c0_i32_1 = arith.constant 0 : i32
    %c0_i32_2 = arith.constant 0 : i32
    return %c0_i32, %c0_i32_0, %c0_i32_1 : i32, i32, i32
  }
  func.func @transform_12(%arg0: i32) -> (i32, i32, i32) {
    %c0_i32 = arith.constant 0 : i32
    %c0_i32_0 = arith.constant 0 : i32
    %c0_i32_1 = arith.constant 0 : i32
    %c0_i32_2 = arith.constant 0 : i32
    return %c0_i32, %c0_i32_0, %c0_i32_1 : i32, i32, i32
  }
  func.func @transform_13(%arg0: i32) -> (i32, i32) {
    %c0_i32 = arith.constant 0 : i32
    %c0_i32_0 = arith.constant 0 : i32
    %c0_i32_1 = arith.constant 0 : i32
    return %c0_i32, %c0_i32_0 : i32, i32
  }
  func.func @transform_14(%arg0: i32) -> (i32, i32, i32) {
    %c0_i32 = arith.constant 0 : i32
    %c0_i32_0 = arith.constant 0 : i32
    %c0_i32_1 = arith.constant 0 : i32
    %c0_i32_2 = arith.constant 0 : i32
    return %c0_i32, %c0_i32_0, %c0_i32_1 : i32, i32, i32
  }
  func.func @transform_15(%arg0: i32) -> (i32, i32, i32) {
    %c0_i32 = arith.constant 0 : i32
    %c0_i32_0 = arith.constant 0 : i32
    %c0_i32_1 = arith.constant 0 : i32
    return %arg0, %c0_i32, %c0_i32_0 : i32, i32, i32
  }
}

</mosaic_0001>

<bundles_post_ra>
// kernel: ublock_forward.1
= control target key start
LH: loop header
LB: loop body
LE: loop exit
PB: predicated region body
PF: predicated region fallthrough
CT: control target
= control target key end

     0   :  { %s8924_s18 = smov 0   ;;  %s10592_s0 = inlined_call_operand.vmem [shape: f32[2,4,256], index: 0, kind: input, shape index: {}]   ;;  %s10593_s1 = inlined_call_operand.vmem [shape: f32[256,362], index: 1, kind: input, shape index: {}]   ;;  %s10594_s2 = inlined_call_operand.vmem [shape: f32[9,4,4], index: 2, kind: input, shape index: {}]   ;;  %s10595_s3 = inlined_call_operand.vmem [shape: f32[4,1], index: 3, kind: input, shape index: {}]   ;;  %s10596_s4 = inlined_call_operand.vmem [shape: f32[324,122], index: 4, kind: input, shape index: {}]   ;;  %s10597_s5 = inlined_call_operand.vmem [shape: f32[9,4,4], index: 5, kind: input, shape index: {}]   ;;  %s10598_s6 = inlined_call_operand.vmem [shape: f32[4,1], index: 6, kind: input, shape index: {}]   ;;  %s10599_s7 = inlined_call_operand.vmem [shape: f32[100,50], index: 7, kind: input, shape index: {}]   ;;  %s10600_s8 = inlined_call_operand.vmem [shape: f32[16,4,4], index: 8, kind: input, shape index: {}]   ;;  %s10601_s9 = inlined_call_operand.vmem [shape: f32[4,1], index: 9, kind: input, shape index: {}]   ;;  %s10602_s10 = inlined_call_operand.vmem [shape: f32[4,36,122], index: 10, kind: input, shape index: {}]   ;;  %s10603_s11 = inlined_call_operand.vmem [shape: f32[16,4,4], index: 11, kind: input, shape index: {}]   ;;  %s10604_s12 = inlined_call_operand.vmem [shape: f32[16,4,4], index: 12, kind: input, shape index: {}]   ;;  %s10605_s13 = inlined_call_operand.vmem [shape: f32[4,1], index: 13, kind: input, shape index: {}]   ;;  %s10606_s14 = inlined_call_operand.vmem [shape: f32[4,100,256], index: 14, kind: input, shape index: {}]   ;;  %s10607_s15 = inlined_call_operand.vmem [shape: f32[2,4,256], index: 15, kind: output, shape index: {}]  }
   0x1 LB: > { %s7751_s19 = sadd.s32 4294967295, %s8821_s18   ;;  %p7755_p0 = scmp.ge.s32.totalorder %s8821_s18, 1  ;;  %s8821_s18 = sphi %s8924_s18, %s25_s18  }
   0x2   : > { %p437_p1 = scmp.lt.s32.totalorder %s8821_s18, 3 }
   0x4   : > { %p438_p2 = pnand %p7755_p0, %p437_p1 }
   0x5   : > { %p9051_p3 = scmp.lt.s32.totalorder (!%p438_p2), %s7751_s19, 1  ;;  %s8824_s30 = smov (!%p438_p2), 127  }
   0x6   : > { %441 = sbr.rel (%p438_p2) target bundleno = 3286 (0xcd6), region = 80  ;;  %s8825_s16 = smov (!%p438_p2), 126  }
   0x7   : > { %s8826_s17 = smov (!%p438_p2), 110   ;;  %s8827_s21 = smov (!%p438_p2), 109  }
   0x8   : > { %s10610_s22 = smov (!%p438_p2), 108   ;;  %s8829_s23 = smov (!%p438_p2), 92  }
   0x9   : > { %s8830_s24 = smov (!%p438_p2), 91   ;;  %s8831_s25 = smov (!%p438_p2), 90  }
   0xa   : > { %s8841_s26 = smov (!%p438_p2), 120   ;;  %s8843_s27 = smov (!%p438_p2), 114  }
   0xb   : > { %v542_v0 = vld [vmem:[%s10593_s1 + $0x170] sm:$0xff]  ;;  %v541_v1 = vld [vmem:[%s10593_s1 + $0x168] sm:$0xff]  ;;  %v539_v2 = vld [vmem:[%s10593_s1 + $0x158] sm:$0xff]  ;;  %s10618_s19 = smov (!%p9051_p3, %s7751_s19), 1  ;;  %vm748_vm0 = vcmask 1039360   ;;  %vm755_vm1 = vcmask 1043456  }
   0xc   : > { %595 = vmatprep.subr.mxu0 %v542_v0  ;;  %v538_v3 = vld [vmem:[%s10593_s1 + $0x150] sm:$0xff]  ;;  %v536_v4 = vld [vmem:[%s10593_s1 + $0x140] sm:$0xff]  ;;  %v535_v5 = vld [vmem:[%s10593_s1 + $0x138] sm:$0xff]  ;;  %s10608_s28 = sshll.u32 %s10618_s19, 3  ;;  %vm751_vm2 = vcmask 31744   ;;  %vm8833_vm3 = vmmov 0  }
   0xd   : > { %596 = vmatpush1.msra.mxu0 %v541_v1  ;;  %v533_v6 = vld [vmem:[%s10593_s1 + $0x128] sm:$0xff]  ;;  %v532_v7 = vld [vmem:[%s10593_s1 + $0x120] sm:$0xff]  ;;  %v530_v8 = vld [vmem:[%s10593_s1 + $0x110] sm:$0xff]  ;;  %s489_s20 = scalar_lea.vmem %s10592_s0, %s10608_s28  ;;  %vm1061_vm4 = vcmask 1031168   ;;  %vm1389_vm5 = vcmask 891904   ;;  %vm1225_vm6 = vcmask 900096  }
   0xe   : > { %597 = vmatprep.subr.mxu0 %v539_v2  ;;  %v529_v9 = vld [vmem:[%s10593_s1 + $0x108] sm:$0xff]  ;;  %v527_v10 = vld [vmem:[%s10593_s1 + $0xf8] sm:$0xff]  ;;  %v526_v11 = vld [vmem:[%s10593_s1 + $0xf0] sm:$0xff]  ;;  %vm1553_vm7 = vcmask 883712   ;;  %vm1717_vm8 = vcmask 752640   ;;  %vm1881_vm9 = vcmask 744448  }
   0xf   : > { %598 = vmatpush1.msra.mxu0 %v538_v3  ;;  %v524_v12 = vld [vmem:[%s10593_s1 + $0xe0] sm:$0xff]  ;;  %v523_v13 = vld [vmem:[%s10593_s1 + $0xd8] sm:$0xff]  ;;  %v521_v16 = vld [vmem:[%s10593_s1 + $0xc8] sm:$0xff]  ;;  %vm2045_vm10 = vcmask 736256   ;;  %vm2254_vm11 = vcmask 556032   ;;  %s10609_s28 = smov 106  }
  0x10   : > { %599 = vmatprep.subr.mxu0 %v536_v4  ;;  %v591_v14 = vld [vmem:[%s10593_s1 + $0x2f8] sm:$0xff]  ;;  %v588_v17 = vld [vmem:[%s10593_s1 + $0x2e0] sm:$0xff]  ;;  %v585_v20 = vld [vmem:[%s10593_s1 + $0x2c8] sm:$0xff]  ;;  %vm3138_vm12 = vcmask 818176   ;;  %vm3862_vm13 = vcmask 293888   ;;  %s10615_s29 = smov 106  }
  0x11   : > { %600 = vmatpush1.msra.mxu0 %v535_v5  ;;  %v543_v15 = vld [vmem:[%s10593_s1 + $0x178] sm:$0xff]  ;;  %8101 = vmatprep.subr.mxu1 %v591_v14  ;;  %v520_v18 = vld [vmem:[%s10593_s1 + $0xc0] sm:$0xff]  ;;  %v518_v21 = vld [vmem:[%s10593_s1 + $0xb0] sm:$0xff] }
  0x12   : > { %601 = vmatprep.subr.mxu0 %v533_v6  ;;  %8102 = vmatpush3.msra.mxu1 %v543_v15  ;;  %v540_v19 = vld [vmem:[%s10593_s1 + $0x160] sm:$0xff]  ;;  %v537_v22 = vld [vmem:[%s10593_s1 + $0x148] sm:$0xff]  ;;  %v582_v24 = vld [vmem:[%s10593_s1 + $0x2b0] sm:$0xff] }
  0x13   : > { %602 = vmatpush1.msra.mxu0 %v532_v7  ;;  %8103 = vmatprep.subr.mxu1 %v588_v17  ;;  %v517_v23 = vld [vmem:[%s10593_s1 + $0xa8] sm:$0xff]  ;;  %v515_v25 = vld [vmem:[%s10593_s1 + $0x98] sm:$0xff]  ;;  %v534_v26 = vld [vmem:[%s10593_s1 + $0x130] sm:$0xff] }
  0x14   : > { %603 = vmatprep.subr.mxu0 %v530_v8  ;;  %8104 = vmatpush3.msra.mxu1 %v540_v19  ;;  %v514_v27 = vld [vmem:[%s10593_s1 + $0x90] sm:$0xff]  ;;  %v579_v28 = vld [vmem:[%s10593_s1 + $0x298] sm:$0xff]  ;;  %v512_v29 = vld [vmem:[%s10593_s1 + $0x80] sm:$0xff] }
  0x15   : > { %604 = vmatpush1.msra.mxu0 %v529_v9  ;;  %8105 = vmatprep.subr.mxu1 %v585_v20  ;;  %v531_v30 = vld [vmem:[%s10593_s1 + $0x118] sm:$0xff]  ;;  %v576_v32 = vld [vmem:[%s10593_s1 + $0x280] sm:$0xff]  ;;  %v509_v33 = vld [vmem:[%s10593_s1 + $0x68] sm:$0xff] }
  0x16   : > { %605 = vmatprep.subr.mxu0 %v527_v10  ;;  %8106 = vmatpush3.msra.mxu1 %v537_v22  ;;  %v511_v31 = vld [vmem:[%s10593_s1 + $0x78] sm:$0xff]  ;;  %v528_v34 = vld [vmem:[%s10593_s1 + $0x100] sm:$0xff]  ;;  %v573_v36 = vld [vmem:[%s10593_s1 + $0x268] sm:$0xff] }
  0x17   : > { %606 = vmatpush1.msra.mxu0 %v526_v11  ;;  %8107 = vmatprep.subr.mxu1 %v582_v24  ;;  %v508_v35 = vld [vmem:[%s10593_s1 + $0x60] sm:$0xff]  ;;  %v506_v37 = vld [vmem:[%s10593_s1 + $0x50] sm:$0xff]  ;;  %v525_v38 = vld [vmem:[%s10593_s1 + $0xe8] sm:$0xff] }
  0x18   : > { %607 = vmatprep.subr.mxu0 %v524_v12  ;;  %8108 = vmatpush3.msra.mxu1 %v534_v26  ;;  %v505_v39 = vld [vmem:[%s10593_s1 + $0x48] sm:$0xff]  ;;  %v570_v40 = vld [vmem:[%s10593_s1 + $0x250] sm:$0xff]  ;;  %v503_v41 = vld [vmem:[%s10593_s1 + $0x38] sm:$0xff] }
  0x19   : > { %608 = vmatpush1.msra.mxu0 %v523_v13  ;;  %8109 = vmatprep.subr.mxu1 %v579_v28  ;;  %v522_v42 = vld [vmem:[%s10593_s1 + $0xd0] sm:$0xff]  ;;  %v567_v44 = vld [vmem:[%s10593_s1 + $0x238] sm:$0xff]  ;;  %v500_v45 = vld [vmem:[%s10593_s1 + $0x20] sm:$0xff] }
  0x1a   : > { %609 = vmatprep.subr.mxu0 %v521_v16  ;;  %8110 = vmatpush3.msra.mxu1 %v531_v30  ;;  %v502_v43 = vld [vmem:[%s10593_s1 + $0x30] sm:$0xff]  ;;  %v519_v46 = vld [vmem:[%s10593_s1 + $0xb8] sm:$0xff]  ;;  %v564_v48 = vld [vmem:[%s10593_s1 + $0x220] sm:$0xff] }
  0x1b   : > { %610 = vmatpush1.msra.mxu0 %v520_v18  ;;  %8111 = vmatprep.subr.mxu1 %v576_v32  ;;  %v499_v47 = vld [vmem:[%s10593_s1 + $0x18] sm:$0xff]  ;;  %v497_v49 = vld [vmem:[%s10593_s1 + $0x8] sm:$0xff]  ;;  %v516_v50 = vld [vmem:[%s10593_s1 + $0xa0] sm:$0xff] }
  0x1c   : > { %611 = vmatprep.subr.mxu0 %v518_v21  ;;  %8112 = vmatpush3.msra.mxu1 %v528_v34  ;;  %v496_v51 = vld [vmem:[%s10593_s1] sm:$0xff]  ;;  %v561_v52 = vld [vmem:[%s10593_s1 + $0x208] sm:$0xff]  ;;  %v590_v53 = vld [vmem:[%s10593_s1 + $0x2f0] sm:$0xff]  ;;  %v8823_v34 = vmov 0.0  }
  0x1d   : > { %612 = vmatpush1.msra.mxu0 %v517_v23  ;;  %8113 = vmatprep.subr.mxu1 %v573_v36  ;;  %v513_v54 = vld [vmem:[%s10593_s1 + $0x88] sm:$0xff]  ;;  %v558_v56 = vld [vmem:[%s10593_s1 + $0x1f0] sm:$0xff]  ;;  %v587_v57 = vld [vmem:[%s10593_s1 + $0x2d8] sm:$0xff] }
  0x1e   : > { %613 = vmatprep.subr.mxu0 %v515_v25  ;;  %8114 = vmatpush3.msra.mxu1 %v525_v38  ;;  %v589_v55 = vld [vmem:[%s10593_s1 + $0x2e8] sm:$0xff]  ;;  %v510_v58 = vld [vmem:[%s10593_s1 + $0x70] sm:$0xff]  ;;  %v555_v60 = vld [vmem:[%s10593_s1 + $0x1d8] sm:$0xff] }
  0x1f   : > { %614 = vmatpush1.msra.mxu0 %v514_v27  ;;  %8115 = vmatprep.subr.mxu1 %v570_v40  ;;  %v586_v59 = vld [vmem:[%s10593_s1 + $0x2d0] sm:$0xff]  ;;  %v584_v61 = vld [vmem:[%s10593_s1 + $0x2c0] sm:$0xff]  ;;  %v507_v62 = vld [vmem:[%s10593_s1 + $0x58] sm:$0xff]  ;;  %v8832_v40 = vmov 0  }
  0x20   : > { %615 = vmatprep.subr.mxu0 %v512_v29  ;;  %8116 = vmatpush3.msra.mxu1 %v522_v42  ;;  %v583_v63 = vld [vmem:[%s10593_s1 + $0x2b8] sm:$0xff]  ;;  %v552_v0 = vld [vmem:[%s10593_s1 + $0x1c0] sm:$0xff]  ;;  %v581_v1 = vld [vmem:[%s10593_s1 + $0x2a8] sm:$0xff] }
  0x21   : > { %616 = vmatpush1.msra.mxu0 %v511_v31  ;;  %8117 = vmatprep.subr.mxu1 %v567_v44  ;;  %v504_v2 = vld [vmem:[%s10593_s1 + $0x40] sm:$0xff]  ;;  %v549_v5 = vld [vmem:[%s10593_s1 + $0x1a8] sm:$0xff]  ;;  %v578_v6 = vld [vmem:[%s10593_s1 + $0x290] sm:$0xff] }
  0x22   : > { %617 = vmatprep.subr.mxu0 %v509_v33  ;;  %8118 = vmatpush3.msra.mxu1 %v519_v46  ;;  %v9151_v3 = vld [vmem:[%s489_s20] sm:$0xff]  ;;  %v501_v7 = vld [vmem:[%s10593_s1 + $0x28] sm:$0xff]  ;;  %v546_v9 = vld [vmem:[%s10593_s1 + $0x190] sm:$0xff]  ;;  %s10613_s20 = smov 107  }
  0x23   : > { %618 = vmatpush1.msra.mxu0 %v508_v35  ;;  %8119 = vmatprep.subr.mxu1 %v564_v48  ;;  %v580_v4 = vld [vmem:[%s10593_s1 + $0x2a0] sm:$0xff]  ;;  %v577_v8 = vld [vmem:[%s10593_s1 + $0x288] sm:$0xff]  ;;  %v593_v10 = vcombine.high %v9151_v3, %v9151_v3  ;;  %v575_v11 = vld [vmem:[%s10593_s1 + $0x278] sm:$0xff] }
  0x24   : > { %619 = vmatprep.subr.mxu0 %v506_v37  ;;  %8120 = vmatpush3.msra.mxu1 %v516_v50  ;;  %v574_v12 = vld [vmem:[%s10593_s1 + $0x270] sm:$0xff]  ;;  %v572_v14 = vld [vmem:[%s10593_s1 + $0x260] sm:$0xff]  ;;  %v571_v15 = vld [vmem:[%s10593_s1 + $0x258] sm:$0xff] }
  0x25   : > { %620 = vmatpush1.msra.mxu0 %v505_v39  ;;  %8121 = vmatprep.subr.mxu1 %v561_v52  ;;  %v498_v13 = vld [vmem:[%s10593_s1 + $0x10] sm:$0xff]  ;;  %v569_v16 = vld [vmem:[%s10593_s1 + $0x248] sm:$0xff]  ;;  %v568_v17 = vld [vmem:[%s10593_s1 + $0x240] sm:$0xff] }
  0x26   : > { %621 = vmatprep.subr.mxu0 %v503_v41  ;;  %8122 = vmatpush3.msra.mxu1 %v513_v54  ;;  %v566_v18 = vld [vmem:[%s10593_s1 + $0x230] sm:$0xff]  ;;  %v565_v19 = vld [vmem:[%s10593_s1 + $0x228] sm:$0xff]  ;;  %v563_v20 = vld [vmem:[%s10593_s1 + $0x218] sm:$0xff] }
  0x27   : > { %622 = vmatpush1.msra.mxu0 %v502_v43  ;;  %8123 = vmatprep.subr.mxu1 %v558_v56  ;;  %v562_v21 = vld [vmem:[%s10593_s1 + $0x210] sm:$0xff]  ;;  %v560_v22 = vld [vmem:[%s10593_s1 + $0x200] sm:$0xff]  ;;  %v559_v23 = vld [vmem:[%s10593_s1 + $0x1f8] sm:$0xff] }
  0x28   : > { %623 = vmatprep.subr.mxu0 %v500_v45  ;;  %8124 = vmatpush3.msra.mxu1 %v510_v58  ;;  %v557_v24 = vld [vmem:[%s10593_s1 + $0x1e8] sm:$0xff]  ;;  %v556_v25 = vld [vmem:[%s10593_s1 + $0x1e0] sm:$0xff]  ;;  %v554_v26 = vld [vmem:[%s10593_s1 + $0x1d0] sm:$0xff] }
  0x29   : > { %624 = vmatpush1.msra.mxu0 %v499_v47  ;;  %8125 = vmatprep.subr.mxu1 %v555_v60  ;;  %v553_v27 = vld [vmem:[%s10593_s1 + $0x1c8] sm:$0xff]  ;;  %v551_v28 = vld [vmem:[%s10593_s1 + $0x1b8] sm:$0xff]  ;;  %v550_v29 = vld [vmem:[%s10593_s1 + $0x1b0] sm:$0xff] }
  0x2a   : > { %625 = vmatprep.subr.mxu0 %v497_v49  ;;  %8126 = vmatpush3.msra.mxu1 %v507_v62  ;;  %v548_v30 = vld [vmem:[%s10593_s1 + $0x1a0] sm:$0xff]  ;;  %v547_v31 = vld [vmem:[%s10593_s1 + $0x198] sm:$0xff]  ;;  %v545_v32 = vld [vmem:[%s10593_s1 + $0x188] sm:$0xff] }
  0x2b   : > { %626 = vmatpush1.msra.mxu0 %v496_v51  ;;  %8127 = vmatprep.subr.mxu1 %v552_v0  ;;  %v544_v33 = vld [vmem:[%s10593_s1 + $0x180] sm:$0xff]  ;;  %v7771_v60 = vld [vmem:[%s10594_s2 + $0x8] sm:$0xf] }
  0x2c   : > { %627 = vmatprep.subr.mxu0 %v590_v53  ;;  %8128 = vmatpush3.msra.mxu1 %v504_v2  ;;  %v2201_v41 = vld [vmem:[%s10595_s3] sm:$0xf]  ;;  %v7760_v47 = vld [vmem:[%s10594_s2 + $0x4] sm:$0xf] }
  0x2d   : > { %628 = vmatpush2.msra.mxu0 %v589_v55  ;;  %8129 = vmatprep.subr.mxu1 %v549_v5  ;;  %v736_v53 = vld [vmem:[%s10594_s2] sm:$0xf] }
  0x2e   : > { %629 = vmatprep.subr.mxu0 %v587_v57  ;;  %8130 = vmatpush3.msra.mxu1 %v501_v7 }
  0x2f   : > { %630 = vmatpush2.msra.mxu0 %v586_v59  ;;  %8131 = vmatprep.subr.mxu1 %v546_v9 }
  0x30   : > { %631 = vmatprep.subr.mxu0 %v584_v61  ;;  %659 = vmatprep.mubr.f32.mxu0 %v593_v10 }
  0x31   : > { %632 = vmatpush2.msra.mxu0 %v583_v63  ;;  %8132 = vmatpush3.msra.mxu1 %v498_v13 }
  0x32   : > { %633 = vmatprep.subr.mxu0 %v581_v1  ;;  %730 = vmatprep.mubr.f32.mxu1 %v593_v10  ;;  %v7783_v1 = vld [vmem:[%s10594_s2 + $0x10] sm:$0xf] }
  0x33   : > { %634 = vmatpush2.msra.mxu0 %v580_v4  ;;  %731 = vmatmul.mubr.f32.vlgmr.msra.gmra.mxu1 %v9151_v3 }
  0x34   : > { %635 = vmatprep.subr.mxu0 %v578_v6  ;;  %826 = vmatprep.mubr.f32.mxu1 %v8823_v34  ;;  %v7777_v6 = vld [vmem:[%s10594_s2 + $0xc] sm:$0xf] }
  0x35   : > { %636 = vmatpush2.msra.mxu0 %v577_v8  ;;  %8812 = vset.pattern.permute.xlu0 %v8832_v40 }
  0x36   : > { %637 = vmatprep.subr.mxu0 %v575_v11  ;;  %8813 = vset.pattern.permute.xlu1 %v8832_v40  ;;  %v7789_v11 = vld [vmem:[%s10594_s2 + $0x14] sm:$0xf]  ;;  %v2238_v40 = vld [vmem:[%s10596_s4 + $0xc8] sm:$0xff] }
  0x37   : > { %638 = vmatpush2.msra.mxu0 %v574_v12 }
  0x38   : > { %639 = vmatprep.subr.mxu0 %v572_v14 }
  0x39   : > { %640 = vmatpush2.msra.mxu0 %v571_v15 }
  0x3a   : > { %641 = vmatprep.subr.mxu0 %v569_v16  ;;  %v7795_v16 = vld [vmem:[%s10594_s2 + $0x18] sm:$0xf] }
  0x3b   : > { %642 = vmatpush2.msra.mxu0 %v568_v17 }
  0x3c   : > { %643 = vmatprep.subr.mxu0 %v566_v18 }
  0x3d   : > { %644 = vmatpush2.msra.mxu0 %v565_v19 }
  0x3e   : > { %645 = vmatprep.subr.mxu0 %v563_v20 }
  0x3f   : > { %646 = vmatpush2.msra.mxu0 %v562_v21  ;;  %v7801_v21 = vld [vmem:[%s10594_s2 + $0x1c] sm:$0xf] }
  0x40   : > { %647 = vmatprep.subr.mxu0 %v560_v22 }
  0x41   : > { %648 = vmatpush2.msra.mxu0 %v559_v23 }
  0x42   : > { %649 = vmatprep.subr.mxu0 %v557_v24 }
  0x43   : > { %650 = vmatpush2.msra.mxu0 %v556_v25  ;;  %v7807_v25 = vld [vmem:[%s10594_s2 + $0x20] sm:$0xf] }
  0x44   : > { %651 = vmatprep.subr.mxu0 %v554_v26 }
  0x45   : > { %652 = vmatpush2.msra.mxu0 %v553_v27  ;;  %v2244_v27 = vld [vmem:[%s10596_s4 + $0xf8] sm:$0xff] }
  0x46   : > { %653 = vmatprep.subr.mxu0 %v551_v28  ;;  %v2228_v28 = vld [vmem:[%s10596_s4 + $0x78] sm:$0xff] }
  0x47   : > { %654 = vmatpush2.msra.mxu0 %v550_v29  ;;  %v2243_v29 = vld [vmem:[%s10596_s4 + $0xf0] sm:$0xff] }
  0x48   : > { %655 = vmatprep.subr.mxu0 %v548_v30  ;;  %v2227_v30 = vld [vmem:[%s10596_s4 + $0x70] sm:$0xff] }
  0x49   : > { %656 = vmatpush2.msra.mxu0 %v547_v31  ;;  %v2242_v31 = vld [vmem:[%s10596_s4 + $0xe8] sm:$0xff] }
  0x4a   : > { %657 = vmatprep.subr.mxu0 %v545_v32  ;;  %v2226_v32 = vld [vmem:[%s10596_s4 + $0x68] sm:$0xff] }
  0x4b   : > { %658 = vmatpush2.msra.mxu0 %v544_v33  ;;  %v2241_v33 = vld [vmem:[%s10596_s4 + $0xe0] sm:$0xff] }
  0x4c   : > { %660 = vmatmul.mubr.f32.vlgmr.msra.gmra.mxu0 %v9151_v3 }
  0x4d   : > { %1465 = vmatprep.mubr.f32.mxu0 %v8823_v34 }
  0xf3   : > { %v8133_v35 = vpop.f32.mrf.mxu1 }
  0xf5   : > { %v8134_v38 = vpop.f32.mrf.mxu1 }
  0xf6   : > { %v9251_v39 = vadd.f32 %v8134_v38, %v8133_v35  ;;  %v2225_v35 = vld [vmem:[%s10596_s4 + $0x60] sm:$0xff]  ;;  %v2239_v38 = vld [vmem:[%s10596_s4 + $0xd0] sm:$0xff] }
 0x10c   : > { %v9246_v36 = vpop.f32.mrf.mxu0 }
 0x10d   : > { %742 = vrot.lane.b32.xlu1 %v9246_v36, %s8824_s30 }
 0x10e   : > { %v663_v37 = vpop.f32.mrf.mxu0 }
 0x10f   : > { %744 = vrot.lane.b32.xlu0 %v663_v37, %s8824_s30 }
 0x111   : > { %1055 = vrot.lane.b32.xlu1 %v9246_v36, %s8825_s16 }
 0x113   : > { %746 = vrot.lane.b32.xlu0 %v9251_v39, %s8824_s30 }
 0x115   : > { %1223 = vrot.lane.b32.xlu1 %v9251_v39, %s8826_s17 }
 0x117   : > { %1059 = vrot.lane.b32.xlu0 %v9251_v39, %s8825_s16 }
 0x119   : > { %1383 = vrot.lane.b32.xlu1 %v9246_v36, %s8827_s21 }
 0x11b   : > { %1219 = vrot.lane.b32.xlu0 %v9246_v36, %s8826_s17 }
 0x11d   : > { %1057 = vrot.lane.b32.xlu1 %v663_v37, %s8825_s16 }
 0x11f   : > { %1387 = vrot.lane.b32.xlu0 %v9251_v39, %s8827_s21 }
 0x121   : > { %1551 = vrot.lane.b32.xlu1 %v9251_v39, %s10610_s22 }
 0x123   : > { %1547 = vrot.lane.b32.xlu0 %v9246_v36, %s10610_s22 }
 0x125   : > { %1385 = vrot.lane.b32.xlu1 %v663_v37, %s8827_s21  ;;  %s8835_s21 = smov 116  }
 0x127   : > { %1221 = vrot.lane.b32.xlu0 %v663_v37, %s8826_s17  ;;  %s8834_s17 = smov 118  }
 0x129   : > { %1711 = vrot.lane.b32.xlu1 %v9246_v36, %s8829_s23 }
 0x12b   : > { %1715 = vrot.lane.b32.xlu0 %v9251_v39, %s8829_s23 }
 0x12d   : > { %1713 = vrot.lane.b32.xlu1 %v663_v37, %s8829_s23  ;;  %s10611_s23 = smov 107  }
 0x12f   : > { %1549 = vrot.lane.b32.xlu0 %v663_v37, %s10610_s22 }
 0x131   : > { %1879 = vrot.lane.b32.xlu1 %v9251_v39, %s8830_s24 }
 0x133   : > { %1875 = vrot.lane.b32.xlu0 %v9246_v36, %s8830_s24 }
 0x135   : > { %2041 = vrot.lane.b32.xlu1 %v663_v37, %s8831_s25 }
 0x137   : > { %1877 = vrot.lane.b32.xlu0 %v663_v37, %s8830_s24  ;;  %s8837_s24 = smov 117  }
 0x139   : > { %2039 = vrot.lane.b32.xlu1 %v9246_v36, %s8831_s25 }
 0x13b   : > { %2043 = vrot.lane.b32.xlu0 %v9251_v39, %s8831_s25  ;;  %s10616_s25 = sshll.u32 %s10618_s19, 3 }
 0x13f   : > { %2204 = vperm.xlu0 %8812, %v2201_v41   ;;  %v2222_v41 = vld [vmem:[%s10596_s4 + $0x48] sm:$0xff] }
 0x17f   : > { %v743_v42 = vpop.permute.xlu1 %742 }
 0x181   : > { %v745_v43 = vpop.permute.xlu0 %744 }
 0x182   : > { %v749_v48 = vsel %vm748_vm0, %v743_v42, %v745_v43  ;;  %v2237_v42 = vld [vmem:[%s10596_s4 + $0xc0] sm:$0xff] }
 0x183   : > { %v1056_v44 = vpop.permute.xlu1 %1055 }
 0x185   : > { %v747_v45 = vpop.permute.xlu0 %746 }
 0x186   : > { %v750_v46 = vsel %vm748_vm0, %v745_v43, %v747_v45  ;;  %v2221_v43 = vld [vmem:[%s10596_s4 + $0x40] sm:$0xff] }
 0x187   : > { %v1224_v49 = vpop.permute.xlu1 %1223  ;;  %7761 = vmatprep.subr.msk.mxu1 %vm755_vm1, %v750_v46  ;;  %v2235_v46 = vld [vmem:[%s10596_s4 + $0xb0] sm:$0xff] }
 0x188   : > { %7762 = vmatpush1.msk.msra.mxu1 %vm755_vm1, %v749_v48  ;;  %v2234_v48 = vld [vmem:[%s10596_s4 + $0xa8] sm:$0xff] }
 0x189   : > { %7763 = vmatmul.mubr.msk.f32.vlgmr.msra.gmra.mxu1 %vm751_vm2, %v7760_v47  ;;  %8351 = vmatprep.subr.mxu1 %v8823_v34  ;;  %v1060_v50 = vpop.permute.xlu0 %1059 }
 0x18a   : > { %8352 = vmatpush3.msk.msra.mxu1 %vm755_vm1, %v747_v45  ;;  %8353 = vmatprep.mubr.msk.f32.mxu1 %vm8833_vm3, %v8823_v34  ;;  %v2220_v45 = vld [vmem:[%s10596_s4 + $0x38] sm:$0xff] }
 0x18b   : > { %v1384_v51 = vpop.permute.xlu1 %1383  ;;  %7766 = vmatprep.subr.msk.mxu1 %vm755_vm1, %v663_v37  ;;  %v2224_v37 = vld [vmem:[%s10596_s4 + $0x58] sm:$0xff] }
 0x18d   : > { %8354 = vmatmul.mubr.msk.f32.vlgmr.msra.gmra.mxu1 %vm751_vm2, %v7760_v47  ;;  %v1220_v52 = vpop.permute.xlu0 %1219  ;;  %v2219_v47 = vld [vmem:[%s10596_s4 + $0x30] sm:$0xff] }
 0x18e   : > { %7767 = vmatpush1.msk.msra.mxu1 %vm755_vm1, %v9246_v36  ;;  %976 = vmatprep.mubr.f32.mxu1 %v8823_v34  ;;  %v2240_v36 = vld [vmem:[%s10596_s4 + $0xd8] sm:$0xff] }
 0x18f   : > { %v1058_v54 = vpop.permute.xlu1 %1057  ;;  %8356 = vmatprep.subr.mxu1 %v8823_v34 }
 0x190   : > { %v1063_v55 = vsel %vm1061_vm4, %v1058_v54, %v1060_v50  ;;  %v1062_v58 = vsel %vm1061_vm4, %v1056_v44, %v1058_v54  ;;  %v2236_v44 = vld [vmem:[%s10596_s4 + $0xb8] sm:$0xff] }
 0x191   : > { %7768 = vmatmul.mubr.msk.f32.vlgmr.msra.gmra.mxu1 %vm751_vm2, %v736_v53  ;;  %v1388_v56 = vpop.permute.xlu0 %1387  ;;  %v2232_v54 = vld [vmem:[%s10596_s4 + $0x98] sm:$0xff] }
 0x192   : > { %8357 = vmatpush3.msk.msra.mxu1 %vm755_vm1, %v9251_v39  ;;  %8358 = vmatprep.mubr.msk.f32.mxu1 %vm8833_vm3, %v8823_v34  ;;  %v2223_v39 = vld [vmem:[%s10596_s4 + $0x50] sm:$0xff] }
 0x193   : > { %7772 = vmatprep.subr.msk.mxu1 %vm755_vm1, %v1063_v55  ;;  %v9303_v57 = vpop.permute.xlu1 %1551  ;;  %v2251_v55 = vld [vmem:[%s10596_s4 + $0x130] sm:$0xff] }
 0x195   : > { %8359 = vmatmul.mubr.msk.f32.vlgmr.msra.gmra.mxu1 %vm751_vm2, %v736_v53  ;;  %v1548_v59 = vpop.permute.xlu0 %1547  ;;  %v2217_v53 = vld [vmem:[%s10596_s4 + $0x20] sm:$0xff] }
 0x196   : > { %7773 = vmatpush1.msk.msra.mxu1 %vm755_vm1, %v1062_v58  ;;  %1137 = vmatprep.mubr.f32.mxu1 %v8823_v34  ;;  %v2250_v58 = vld [vmem:[%s10596_s4 + $0x128] sm:$0xff] }
 0x197   : > { %v1386_v61 = vpop.permute.xlu1 %1385  ;;  %8361 = vmatprep.subr.mxu1 %v8823_v34 }
 0x198   : > { %v1390_v62 = vsel %vm1389_vm5, %v1384_v51, %v1386_v61  ;;  %v1391_v63 = vsel %vm1389_vm5, %v1386_v61, %v1388_v56  ;;  %v2233_v51 = vld [vmem:[%s10596_s4 + $0xa0] sm:$0xff] }
 0x199   : > { %7774 = vmatmul.mubr.msk.f32.vlgmr.msra.gmra.mxu1 %vm751_vm2, %v7771_v60  ;;  %7784 = vmatprep.subr.msk.mxu0 %vm755_vm1, %v1391_v63  ;;  %v1222_v0 = vpop.permute.xlu0 %1221  ;;  %v2249_v61 = vld [vmem:[%s10596_s4 + $0x120] sm:$0xff] }
 0x19a   : > { %8362 = vmatpush3.msk.msra.mxu1 %vm755_vm1, %v1060_v50  ;;  %v1227_v2 = vsel %vm1225_vm6, %v1222_v0, %v1224_v49  ;;  %7785 = vmatpush1.msk.msra.mxu0 %vm755_vm1, %v1390_v62  ;;  %v1226_v4 = vsel %vm1225_vm6, %v1220_v52, %v1222_v0  ;;  %v2218_v50 = vld [vmem:[%s10596_s4 + $0x28] sm:$0xff]  ;;  %v2252_v52 = vld [vmem:[%s10596_s4 + $0x138] sm:$0xff]  ;;  %v2229_v63 = vld [vmem:[%s10596_s4 + $0x80] sm:$0xff] }
 0x19b   : > { %v1712_v3 = vpop.permute.xlu1 %1711  ;;  %7778 = vmatprep.subr.msk.mxu1 %vm755_vm1, %v1227_v2  ;;  %8363 = vmatprep.mubr.msk.f32.mxu1 %vm8833_vm3, %v8823_v34  ;;  %v2214_v62 = vld [vmem:[%s10596_s4 + $0x8] sm:$0xff]  ;;  %v2248_v0 = vld [vmem:[%s10596_s4 + $0x118] sm:$0xff]  ;;  %v2247_v2 = vld [vmem:[%s10596_s4 + $0x110] sm:$0xff] }
 0x19c   : > { %7786 = vmatmul.mubr.msk.f32.vlgmr.msra.gmra.mxu0 %vm751_vm2, %v7783_v1 }
 0x19d   : > { %8364 = vmatmul.mubr.msk.f32.vlgmr.msra.gmra.mxu1 %vm751_vm2, %v7771_v60  ;;  %v1716_v5 = vpop.permute.xlu0 %1715  ;;  %1629 = vmatprep.mubr.f32.mxu0 %v8823_v34  ;;  %v2230_v60 = vld [vmem:[%s10596_s4 + $0x88] sm:$0xff] }
 0x19e   : > { %7779 = vmatpush1.msk.msra.mxu1 %vm755_vm1, %v1226_v4  ;;  %1301 = vmatprep.mubr.f32.mxu1 %v8823_v34  ;;  %v2245_v4 = vld [vmem:[%s10596_s4 + $0x100] sm:$0xff] }
 0x19f   : > { %v1714_v7 = vpop.permute.xlu1 %1713  ;;  %8366 = vmatprep.subr.mxu1 %v8823_v34 }
 0x1a0   : > { %v1719_v13 = vsel %vm1717_vm8, %v1714_v7, %v1716_v5  ;;  %v1718_v15 = vsel %vm1717_vm8, %v1712_v3, %v1714_v7  ;;  %v2246_v3 = vld [vmem:[%s10596_s4 + $0x108] sm:$0xff] }
 0x1a1   : > { %7780 = vmatmul.mubr.msk.f32.vlgmr.msra.gmra.mxu1 %vm751_vm2, %v7777_v6  ;;  %v1550_v8 = vpop.permute.xlu0 %1549 }
 0x1a2   : > { %8367 = vmatpush3.msk.msra.mxu1 %vm755_vm1, %v1224_v49  ;;  %v1554_v9 = vsel %vm1553_vm7, %v1548_v59, %v1550_v8  ;;  %v1555_v10 = vsel %vm1553_vm7, %v1550_v8, %v9303_v57  ;;  %8368 = vmatprep.mubr.msk.f32.mxu1 %vm8833_vm3, %v8823_v34  ;;  %v2253_v49 = vld [vmem:[%s10596_s4 + $0x140] sm:$0xf]  ;;  %v2215_v59 = vld [vmem:[%s10596_s4 + $0x10] sm:$0xff] }
 0x1a3   : > { %v1880_v12 = vpop.permute.xlu1 %1879  ;;  %7790 = vmatprep.subr.msk.mxu0 %vm755_vm1, %v1555_v10  ;;  %8371 = vmatprep.subr.mxu1 %v8823_v34 }
 0x1a4   : > { %7791 = vmatpush1.msk.msra.mxu0 %vm755_vm1, %v1554_v9 }
 0x1a5   : > { %8369 = vmatmul.mubr.msk.f32.vlgmr.msra.gmra.mxu1 %vm751_vm2, %v7777_v6  ;;  %7792 = vmatmul.mubr.msk.f32.vlgmr.msra.gmra.mxu0 %vm751_vm2, %v7789_v11  ;;  %v1876_v14 = vpop.permute.xlu0 %1875 }
 0x1a6   : > { %8372 = vmatpush3.msk.msra.mxu1 %vm755_vm1, %v1388_v56  ;;  %7796 = vmatprep.subr.msk.mxu0 %vm755_vm1, %v1719_v13  ;;  %v2216_v56 = vld [vmem:[%s10596_s4 + $0x18] sm:$0xff] }
 0x1a7   : > { %7797 = vmatpush1.msk.msra.mxu0 %vm755_vm1, %v1718_v15  ;;  %v2042_v17 = vpop.permute.xlu1 %2041  ;;  %8373 = vmatprep.mubr.msk.f32.mxu1 %vm8833_vm3, %v8823_v34 }
 0x1a8   : > { %8376 = vmatprep.subr.mxu1 %v8823_v34  ;;  %1793 = vmatprep.mubr.f32.mxu0 %v8823_v34 }
 0x1a9   : > { %8374 = vmatmul.mubr.msk.f32.vlgmr.msra.gmra.mxu1 %vm751_vm2, %v7783_v1  ;;  %7798 = vmatmul.mubr.msk.f32.vlgmr.msra.gmra.mxu0 %vm751_vm2, %v7795_v16  ;;  %v1878_v18 = vpop.permute.xlu0 %1877  ;;  %v2213_v1 = vld [vmem:[%s10596_s4] sm:$0xff] }
 0x1aa   : > { %8377 = vmatpush3.msk.msra.mxu1 %vm755_vm1, %v9303_v57  ;;  %v1882_v19 = vsel %vm1881_vm9, %v1876_v14, %v1878_v18  ;;  %v1883_v20 = vsel %vm1881_vm9, %v1878_v18, %v1880_v12  ;;  %8378 = vmatprep.mubr.msk.f32.mxu1 %vm8833_vm3, %v8823_v34  ;;  %v2231_v57 = vld [vmem:[%s10596_s4 + $0x90] sm:$0xff] }
 0x1ab   : > { %7802 = vmatprep.subr.msk.mxu0 %vm755_vm1, %v1883_v20  ;;  %8381 = vmatprep.subr.mxu1 %v8823_v34  ;;  %v2040_v22 = vpop.permute.xlu1 %2039 }
 0x1ac   : > { %7803 = vmatpush1.msk.msra.mxu0 %vm755_vm1, %v1882_v19  ;;  %1957 = vmatprep.mubr.f32.mxu0 %v8823_v34  ;;  %v2046_v26 = vsel %vm2045_vm10, %v2040_v22, %v2042_v17 }
 0x1ad   : > { %8379 = vmatmul.mubr.msk.f32.vlgmr.msra.gmra.mxu1 %vm751_vm2, %v7789_v11  ;;  %7804 = vmatmul.mubr.msk.f32.vlgmr.msra.gmra.mxu0 %vm751_vm2, %v7801_v21  ;;  %v2044_v23 = vpop.permute.xlu0 %2043 }
 0x1ae   : > { %8382 = vmatpush3.msk.msra.mxu1 %vm755_vm1, %v1716_v5  ;;  %v2047_v24 = vsel %vm2045_vm10, %v2042_v17, %v2044_v23  ;;  %8383 = vmatprep.mubr.msk.f32.mxu1 %vm8833_vm3, %v8823_v34 }
 0x1af   : > { %7808 = vmatprep.subr.msk.mxu0 %vm755_vm1, %v2047_v24  ;;  %8386 = vmatprep.subr.mxu1 %v8823_v34 }
 0x1b0   : > { %7809 = vmatpush1.msk.msra.mxu0 %vm755_vm1, %v2046_v26  ;;  %2121 = vmatprep.mubr.f32.mxu0 %v8823_v34 }
 0x1b1   : > { %8384 = vmatmul.mubr.msk.f32.vlgmr.msra.gmra.mxu1 %vm751_vm2, %v7795_v16  ;;  %7810 = vmatmul.mubr.msk.f32.vlgmr.msra.gmra.mxu0 %vm751_vm2, %v7807_v25 }
 0x1b2   : > { %8387 = vmatpush3.msk.msra.mxu1 %vm755_vm1, %v1880_v12  ;;  %8388 = vmatprep.mubr.msk.f32.mxu1 %vm8833_vm3, %v8823_v34 }
 0x1b3   : > { %8391 = vmatprep.subr.mxu1 %v8823_v34  ;;  %8154 = vmatprep.subr.mxu0 %v2244_v27 }
 0x1b4   : > { %8155 = vmatpush3.msra.mxu0 %v2228_v28 }
 0x1b5   : > { %8389 = vmatmul.mubr.msk.f32.vlgmr.msra.gmra.mxu1 %vm751_vm2, %v7801_v21  ;;  %8156 = vmatprep.subr.mxu0 %v2243_v29 }
 0x1b6   : > { %8392 = vmatpush3.msk.msra.mxu1 %vm755_vm1, %v2044_v23  ;;  %8393 = vmatprep.mubr.msk.f32.mxu1 %vm8833_vm3, %v8823_v34 }
 0x1b7   : > { %8396 = vmatprep.subr.mxu1 %v8823_v34  ;;  %8157 = vmatpush3.msra.mxu0 %v2227_v30 }
 0x1b8   : > { %8158 = vmatprep.subr.mxu0 %v2242_v31 }
 0x1b9   : > { %8394 = vmatmul.mubr.msk.f32.vlgmr.msra.gmra.mxu1 %vm751_vm2, %v7807_v25  ;;  %8159 = vmatpush3.msra.mxu0 %v2226_v32 }
 0x1ba   : > { %8414 = vmatprep.mubr.msk.f32.mxu1 %vm8833_vm3, %v8823_v34  ;;  %8160 = vmatprep.subr.mxu0 %v2241_v33 }
 0x1bb   : > { %8161 = vmatpush3.msra.mxu0 %v2225_v35  ;;  %8397 = vmatpush3.msk.msra.mxu1 %vm755_vm1, %v2253_v49 }
 0x1bc   : > { %8162 = vmatprep.subr.mxu0 %v2240_v36  ;;  %8398 = vmatprep.subr.mxu1 %v8823_v34 }
 0x1bd   : > { %8163 = vmatpush3.msra.mxu0 %v2224_v37  ;;  %8399 = vmatpush3.msra.mxu1 %v2252_v52 }
 0x1be   : > { %8164 = vmatprep.subr.mxu0 %v2239_v38  ;;  %8400 = vmatprep.subr.mxu1 %v8823_v34 }
 0x1bf   : > { %8165 = vmatpush3.msra.mxu0 %v2223_v39  ;;  %8401 = vmatpush3.msra.mxu1 %v2251_v55  ;;  %v2205_v55 = vpop.permute.xlu0 %2204 }
 0x1c0   : > { %8166 = vmatprep.subr.mxu0 %v2238_v40  ;;  %8402 = vmatprep.subr.mxu1 %v8823_v34 }
 0x1c1   : > { %8167 = vmatpush3.msra.mxu0 %v2222_v41  ;;  %8403 = vmatpush3.msra.mxu1 %v2250_v58 }
 0x1c2   : > { %8168 = vmatprep.subr.mxu0 %v2237_v42  ;;  %8404 = vmatprep.subr.mxu1 %v8823_v34 }
 0x1c3   : > { %8169 = vmatpush3.msra.mxu0 %v2221_v43  ;;  %8405 = vmatpush3.msra.mxu1 %v2249_v61 }
 0x1c4   : > { %8170 = vmatprep.subr.mxu0 %v2236_v44  ;;  %8406 = vmatprep.subr.mxu1 %v8823_v34 }
 0x1c5   : > { %8171 = vmatpush3.msra.mxu0 %v2220_v45  ;;  %8407 = vmatpush3.msra.mxu1 %v2248_v0 }
 0x1c6   : > { %8172 = vmatprep.subr.mxu0 %v2235_v46  ;;  %8408 = vmatprep.subr.mxu1 %v8823_v34 }
 0x1c7   : > { %8173 = vmatpush3.msra.mxu0 %v2219_v47  ;;  %8409 = vmatpush3.msra.mxu1 %v2247_v2 }
 0x1c8   : > { %8174 = vmatprep.subr.mxu0 %v2234_v48  ;;  %8410 = vmatprep.subr.mxu1 %v8823_v34 }
 0x1c9   : > { %8175 = vmatpush3.msra.mxu0 %v2218_v50  ;;  %8411 = vmatpush3.msra.mxu1 %v2246_v3 }
 0x1ca   : > { %8176 = vmatprep.subr.mxu0 %v2233_v51  ;;  %8412 = vmatprep.subr.mxu1 %v8823_v34 }
 0x1cb   : > { %8177 = vmatpush3.msra.mxu0 %v2217_v53  ;;  %8413 = vmatpush3.msra.mxu1 %v2245_v4 }
 0x1cc   : > { %8178 = vmatprep.subr.mxu0 %v2232_v54  ;;  %8417 = vmatprep.subr.mxu1 %v8823_v34 }
 0x1cd   : > { %8179 = vmatpush3.msra.mxu0 %v2216_v56 }
 0x1ce   : > { %8180 = vmatprep.subr.mxu0 %v2231_v57 }
 0x1cf   : > { %8181 = vmatpush3.msra.mxu0 %v2215_v59 }
 0x1d0   : > { %8182 = vmatprep.subr.mxu0 %v2230_v60 }
 0x1d1   : > { %8183 = vmatpush3.msra.mxu0 %v2214_v62 }
 0x1d2   : > { %8184 = vmatprep.subr.mxu0 %v2229_v63 }
 0x1d3   : > { %8185 = vmatpush3.msra.mxu0 %v2213_v1 }
 0x1d4   : > { %8437 = vmatprep.subr.mxu0 %v8823_v34 }
 0x249   : > { %v828_v5 = vpop.f32.mrf.mxu1 }
 0x24b   : > { %v830_v6 = vpop.f32.mrf.mxu1 }
 0x24d   : > { %v899_v7 = vpop.f32.mrf.mxu1 }
 0x24f   : > { %v8355_v8 = vpop.f32.mrf.mxu1 }
 0x251   : > { %v978_v9 = vpop.f32.mrf.mxu1 }
 0x252   : > { %v979_v18 = vadd.f32 %v978_v9, %v828_v5 }
 0x253   : > { %v980_v10 = vpop.f32.mrf.mxu1 }
 0x254   : > { %v981_v21 = vadd.f32 %v980_v10, %v830_v6 }
 0x255   : > { %v1049_v11 = vpop.f32.mrf.mxu1 }
 0x256   : > { %v1050_v38 = vadd.f32 %v1049_v11, %v899_v7 }
 0x257   : > { %v8360_v12 = vpop.f32.mrf.mxu1 }
 0x259   : > { %v1139_v13 = vpop.f32.mrf.mxu1 }
 0x25a   : > { %v1214_v22 = vadd.f32 %v1139_v13, %v979_v18  ;;  %v2401_v18 = vld [vmem:[%s10597_s5] sm:$0xf] }
 0x25b   : > { %v1141_v14 = vpop.f32.mrf.mxu1 }
 0x25c   : > { %v1467_v16 = vpop.f32.mrf.mxu0  ;;  %v1215_v24 = vadd.f32 %v1141_v14, %v981_v21  ;;  %v7820_v21 = vld [vmem:[%s10597_s5 + $0x8] sm:$0xf] }
 0x25d   : > { %v1210_v15 = vpop.f32.mrf.mxu1 }
 0x25e   : > { %v1469_v20 = vpop.f32.mrf.mxu0  ;;  %v1216_v42 = vadd.f32 %v1210_v15, %v1050_v38  ;;  %v3117_v15 = vld [vmem:[%s10598_s6] sm:$0xf] }
 0x25f   : > { %v8365_v17 = vpop.f32.mrf.mxu1  ;;  %v3133_v38 = vld [vmem:[%s10599_s7 + $0x40] sm:$0xff] }
 0x261   : > { %v1303_v19 = vpop.f32.mrf.mxu1 }
 0x262   : > { %v1378_v25 = vadd.f32 %v1303_v19, %v1214_v22 }
 0x263   : > { %v1305_v23 = vpop.f32.mrf.mxu1 }
 0x264   : > { %v1379_v28 = vadd.f32 %v1305_v23, %v1215_v24  ;;  %v1542_v31 = vadd.f32 %v1467_v16, %v1378_v25  ;;  %v7815_v16 = vld [vmem:[%s10597_s5 + $0x4] sm:$0xf]  ;;  %v7826_v23 = vld [vmem:[%s10597_s5 + $0x10] sm:$0xf]  ;;  %v7823_v24 = vld [vmem:[%s10597_s5 + $0xc] sm:$0xf] }
 0x265   : > { %v1374_v26 = vpop.f32.mrf.mxu1  ;;  %v1631_v27 = vpop.f32.mrf.mxu0 }
 0x266   : > { %v1543_v35 = vadd.f32 %v1469_v20, %v1379_v28  ;;  %v1706_v39 = vadd.f32 %v1631_v27, %v1542_v31  ;;  %v1380_v47 = vadd.f32 %v1374_v26, %v1216_v42  ;;  %v7832_v27 = vld [vmem:[%s10597_s5 + $0x18] sm:$0xf]  ;;  %v7829_v28 = vld [vmem:[%s10597_s5 + $0x14] sm:$0xf]  ;;  %v3129_v42 = vld [vmem:[%s10599_s7 + $0x20] sm:$0xff] }
 0x267   : > { %v8370_v29 = vpop.f32.mrf.mxu1  ;;  %v1633_v30 = vpop.f32.mrf.mxu0 }
 0x268   : > { %v1707_v43 = vadd.f32 %v1633_v30, %v1543_v35  ;;  %v7838_v30 = vld [vmem:[%s10597_s5 + $0x20] sm:$0xf]  ;;  %v3136_v35 = vld [vmem:[%s10599_s7 + $0x58] sm:$0xff] }
 0x269   : > { %v1538_v32 = vpop.f32.mrf.mxu1  ;;  %v1795_v33 = vpop.f32.mrf.mxu0 }
 0x26a   : > { %v1870_v44 = vadd.f32 %v1795_v33, %v1706_v39  ;;  %v1544_v52 = vadd.f32 %v1538_v32, %v1380_v47  ;;  %v7835_v32 = vld [vmem:[%s10597_s5 + $0x1c] sm:$0xf]  ;;  %v3137_v33 = vld [vmem:[%s10599_s7 + $0x60] sm:$0xf] }
 0x26b   : > { %v8375_v36 = vpop.f32.mrf.mxu1  ;;  %v1797_v37 = vpop.f32.mrf.mxu0  ;;  %v3132_v39 = vld [vmem:[%s10599_s7 + $0x38] sm:$0xff] }
 0x26c   : > { %v1871_v48 = vadd.f32 %v1797_v37, %v1707_v43  ;;  %v3135_v36 = vld [vmem:[%s10599_s7 + $0x50] sm:$0xff]  ;;  %v3134_v37 = vld [vmem:[%s10599_s7 + $0x48] sm:$0xff]  ;;  %v3128_v43 = vld [vmem:[%s10599_s7 + $0x18] sm:$0xff] }
 0x26d   : > { %v1702_v40 = vpop.f32.mrf.mxu1  ;;  %v1959_v41 = vpop.f32.mrf.mxu0 }
 0x26e   : > { %v2034_v49 = vadd.f32 %v1959_v41, %v1870_v44  ;;  %v1708_v58 = vadd.f32 %v1702_v40, %v1544_v52  ;;  %v3131_v40 = vld [vmem:[%s10599_s7 + $0x30] sm:$0xff]  ;;  %v3130_v41 = vld [vmem:[%s10599_s7 + $0x28] sm:$0xff] }
 0x26f   : > { %v8380_v45 = vpop.f32.mrf.mxu1  ;;  %v1961_v46 = vpop.f32.mrf.mxu0  ;;  %v3127_v44 = vld [vmem:[%s10599_s7 + $0x10] sm:$0xff] }
 0x270   : > { %v2035_v53 = vadd.f32 %v1961_v46, %v1871_v48  ;;  %v3126_v45 = vld [vmem:[%s10599_s7 + $0x8] sm:$0xff]  ;;  %v3125_v46 = vld [vmem:[%s10599_s7] sm:$0xff] }
 0x271   : > { %v1866_v50 = vpop.f32.mrf.mxu1  ;;  %v2123_v51 = vpop.f32.mrf.mxu0 }
 0x272   : > { %v2198_v54 = vadd.f32 %v2123_v51, %v2034_v49  ;;  %v1872_v62 = vadd.f32 %v1866_v50, %v1708_v58 }
 0x273   : > { %v8385_v56 = vpop.f32.mrf.mxu1  ;;  %v2125_v57 = vpop.f32.mrf.mxu0 }
 0x274   : > { %v2199_v59 = vadd.f32 %v2125_v57, %v2035_v53  ;;  %v2207_v60 = vadd.f32 %v2205_v55, %v2198_v54 }
 0x275   : > { %v2030_v61 = vpop.f32.mrf.mxu1 }
 0x276   : > { %v2208_v63 = vadd.f32 %v2205_v55, %v2199_v59  ;;  %v2036_v1 = vadd.f32 %v2030_v61, %v1872_v62  ;;  %v2210_v3 = vmax.f32 %v2207_v60, 0.0 }
 0x277   : > { %v8390_v0 = vpop.f32.mrf.mxu1 }
 0x278   : > { %v2211_v2 = vmax.f32 %v2208_v63, 0.0 }
 0x279   : > { %v2194_v4 = vpop.f32.mrf.mxu1 }
 0x27a   : > { %v2200_v5 = vadd.f32 %v2194_v4, %v2036_v1  ;;  %2325 = vmatprep.mubr.f32.mxu0 %v2211_v2 }
 0x27b   : > { %v8395_v6 = vpop.f32.mrf.mxu1  ;;  %2326 = vmatmul.mubr.f32.vlgmr.msra.gmra.mxu0 %v2210_v3 }
 0x27c   : > { %v2209_v7 = vadd.f32 %v2205_v55, %v2200_v5  ;;  %8439 = vmatprep.mubr.msk.f32.mxu0 %vm8833_vm3, %v8823_v34 }
 0x27e   : > { %v2212_v8 = vmax.f32 %v2209_v7, 0.0 }
 0x280   : > { %8415 = vmatmul.mubr.msk.f32.vlgmr.msra.gmra.mxu1 %vm2254_vm11, %v2212_v8 }
 0x281   : > { %8419 = vmatprep.mubr.msk.f32.mxu1 %vm8833_vm3, %v8823_v34 }
 0x33b   : > { %v8186_v9 = vpop.f32.mrf.mxu0 }
 0x33d   : > { %v8187_v10 = vpop.f32.mrf.mxu0 }
 0x33e   : > { %v8188_v11 = vadd.f32 %v8187_v10, %v8186_v9 }
 0x340   : > { %v2397_v12 = vpop.f32.mrf.mxu1 }
 0x341   : > { %v9531_v13 = vadd.f32 %v8188_v11, %v2397_v12 }
 0x342   : > { %v8416_v14 = vpop.f32.mrf.mxu1 }
 0x343   : > { %2639 = vrot.lane.b32.xlu0 %v9531_v13, %s8834_s17  ;;  %2405 = vrot.lane.b32.xlu1 %v9531_v13, %s8824_s30 }
 0x347   : > { %2799 = vrot.lane.b32.xlu0 %v9531_v13, %s8835_s21  ;;  %2559 = vrot.lane.b32.xlu1 %v9531_v13, %s8825_s16 }
 0x34b   : > { %2959 = vrot.lane.b32.xlu0 %v9531_v13, %s10611_s23  ;;  %2719 = vrot.lane.b32.xlu1 %v9531_v13, %s8837_s24  ;;  %s8839_s23 = smov 122  }
 0x34f   : > { %3120 = vperm.xlu0 %8812, %v3117_v15   ;;  %2879 = vrot.lane.b32.xlu1 %v9531_v13, %s10610_s22  ;;  %v3531_v15 = vld [vmem:[%s10601_s9] sm:$0xf]  ;;  %s8842_s22 = smov 115  }
 0x353   : > { %3039 = vrot.lane.b32.xlu1 %v9531_v13, %s10609_s28  ;;  %s8840_s28 = smov 121  }
 0x3b5   : > { %v9555_v17 = vpop.permute.xlu1 %2405  ;;  %v9571_v20 = vpop.permute.xlu0 %2639 }
 0x3b6   : > { %8418 = vmatpush3.msk.msra.mxu1 %vm755_vm1, %v9555_v17 }
 0x3b7   : > { %8420 = vmatmul.mubr.msk.f32.vlgmr.msra.gmra.mxu1 %vm751_vm2, %v7815_v16  ;;  %8422 = vmatprep.subr.mxu1 %v8823_v34  ;;  %v7843_v16 = vld [vmem:[%s10600_s8 + $0x4] sm:$0xf] }
 0x3b8   : > { %8423 = vmatpush3.msk.msra.mxu1 %vm755_vm1, %v9531_v13  ;;  %8424 = vmatprep.mubr.msk.f32.mxu1 %vm8833_vm3, %v8823_v34 }
 0x3b9   : > { %v9568_v19 = vpop.permute.xlu1 %2559  ;;  %8427 = vmatprep.subr.mxu1 %v8823_v34  ;;  %v9598_v25 = vpop.permute.xlu0 %2799 }
 0x3bb   : > { %8425 = vmatmul.mubr.msk.f32.vlgmr.msra.gmra.mxu1 %vm751_vm2, %v2401_v18 }
 0x3bc   : > { %8428 = vmatpush3.msk.msra.mxu1 %vm755_vm1, %v9568_v19  ;;  %8429 = vmatprep.mubr.msk.f32.mxu1 %vm8833_vm3, %v8823_v34 }
 0x3bd   : > { %v9581_v22 = vpop.permute.xlu1 %2719  ;;  %8432 = vmatprep.subr.mxu1 %v8823_v34  ;;  %v9631_v31 = vpop.permute.xlu0 %2959 }
 0x3be   : > { %8438 = vmatpush3.msk.msra.mxu0 %vm755_vm1, %v9581_v22 }
 0x3bf   : > { %8430 = vmatmul.mubr.msk.f32.vlgmr.msra.gmra.mxu1 %vm751_vm2, %v7820_v21  ;;  %8447 = vmatprep.subr.mxu0 %v8823_v34  ;;  %v3215_v21 = vld [vmem:[%s10600_s8] sm:$0xf] }
 0x3c0   : > { %8433 = vmatpush3.msk.msra.mxu1 %vm755_vm1, %v9571_v20  ;;  %8434 = vmatprep.mubr.msk.f32.mxu1 %vm8833_vm3, %v8823_v34 }
 0x3c1   : > { %v9600_v26 = vpop.permute.xlu1 %2879  ;;  %8440 = vmatmul.mubr.msk.f32.vlgmr.msra.gmra.mxu0 %vm751_vm2, %v7826_v23  ;;  %8442 = vmatprep.subr.mxu1 %v8823_v34 }
 0x3c2   : > { %8448 = vmatpush3.msk.msra.mxu0 %vm755_vm1, %v9600_v26  ;;  %8449 = vmatprep.mubr.msk.f32.mxu0 %vm8833_vm3, %v8823_v34 }
 0x3c3   : > { %8435 = vmatmul.mubr.msk.f32.vlgmr.msra.gmra.mxu1 %vm751_vm2, %v7823_v24  ;;  %8457 = vmatprep.subr.mxu0 %v8823_v34 }
 0x3c4   : > { %8443 = vmatpush3.msk.msra.mxu1 %vm755_vm1, %v9598_v25  ;;  %8444 = vmatprep.mubr.msk.f32.mxu1 %vm8833_vm3, %v8823_v34 }
 0x3c5   : > { %v9620_v29 = vpop.permute.xlu1 %3039  ;;  %8450 = vmatmul.mubr.msk.f32.vlgmr.msra.gmra.mxu0 %vm751_vm2, %v7832_v27  ;;  %8452 = vmatprep.subr.mxu1 %v8823_v34  ;;  %v7848_v27 = vld [vmem:[%s10600_s8 + $0x8] sm:$0xf] }
 0x3c6   : > { %8458 = vmatpush3.msk.msra.mxu0 %vm755_vm1, %v9620_v29  ;;  %8459 = vmatprep.mubr.msk.f32.mxu0 %vm8833_vm3, %v8823_v34 }
 0x3c7   : > { %8445 = vmatmul.mubr.msk.f32.vlgmr.msra.gmra.mxu1 %vm751_vm2, %v7829_v28  ;;  %8491 = vmatprep.subr.mxu0 %v8823_v34 }
 0x3c8   : > { %8453 = vmatpush3.msk.msra.mxu1 %vm755_vm1, %v9631_v31  ;;  %8454 = vmatprep.mubr.msk.f32.mxu1 %vm8833_vm3, %v8823_v34 }
 0x3c9   : > { %8460 = vmatmul.mubr.msk.f32.vlgmr.msra.gmra.mxu0 %vm751_vm2, %v7838_v30  ;;  %8462 = vmatprep.subr.mxu1 %v8823_v34  ;;  %v7863_v30 = vld [vmem:[%s10600_s8 + $0x1c] sm:$0xf] }
 0x3ca   : > { %8493 = vmatprep.mubr.msk.f32.mxu0 %vm8833_vm3, %v8823_v34  ;;  %v3121_v9 = vpop.permute.xlu0 %3120 }
 0x3cb   : > { %8455 = vmatmul.mubr.msk.f32.vlgmr.msra.gmra.mxu1 %vm751_vm2, %v7835_v32  ;;  %v7851_v32 = vld [vmem:[%s10600_s8 + $0xc] sm:$0xf] }
 0x3cc   : > { %8488 = vmatprep.mubr.msk.f32.mxu1 %vm8833_vm3, %v8823_v34  ;;  %8463 = vmatpush3.msk.msra.mxu1 %vm755_vm1, %v3137_v33 }
 0x3cd   : > { %8464 = vmatprep.subr.mxu1 %v8823_v34 }
 0x3ce   : > { %8465 = vmatpush3.msra.mxu1 %v3136_v35  ;;  %v7875_v35 = vld [vmem:[%s10600_s8 + $0x20] sm:$0xf] }
 0x3cf   : > { %8466 = vmatprep.subr.mxu1 %v8823_v34 }
 0x3d0   : > { %8467 = vmatpush3.msra.mxu1 %v3135_v36  ;;  %v7855_v36 = vld [vmem:[%s10600_s8 + $0x14] sm:$0xf] }
 0x3d1   : > { %8468 = vmatprep.subr.mxu1 %v8823_v34 }
 0x3d2   : > { %8469 = vmatpush3.msra.mxu1 %v3134_v37 }
 0x3d3   : > { %8470 = vmatprep.subr.mxu1 %v8823_v34 }
 0x3d4   : > { %8471 = vmatpush3.msra.mxu1 %v3133_v38  ;;  %v7854_v38 = vld [vmem:[%s10600_s8 + $0x10] sm:$0xf] }
 0x3d5   : > { %8472 = vmatprep.subr.mxu1 %v8823_v34 }
 0x3d6   : > { %8473 = vmatpush3.msra.mxu1 %v3132_v39  ;;  %v7884_v39 = vld [vmem:[%s10600_s8 + $0x2c] sm:$0xf] }
 0x3d7   : > { %8474 = vmatprep.subr.mxu1 %v8823_v34 }
 0x3d8   : > { %8475 = vmatpush3.msra.mxu1 %v3131_v40 }
 0x3d9   : > { %8476 = vmatprep.subr.mxu1 %v8823_v34 }
 0x3da   : > { %8477 = vmatpush3.msra.mxu1 %v3130_v41  ;;  %v7860_v41 = vld [vmem:[%s10600_s8 + $0x18] sm:$0xf] }
 0x3db   : > { %8478 = vmatprep.subr.mxu1 %v8823_v34 }
 0x3dc   : > { %8479 = vmatpush3.msra.mxu1 %v3129_v42  ;;  %v7895_v42 = vld [vmem:[%s10600_s8 + $0x34] sm:$0xf] }
 0x3dd   : > { %8480 = vmatprep.subr.mxu1 %v8823_v34 }
 0x3de   : > { %8481 = vmatpush3.msra.mxu1 %v3128_v43  ;;  %v7894_v43 = vld [vmem:[%s10600_s8 + $0x30] sm:$0xf] }
 0x3df   : > { %8482 = vmatprep.subr.mxu1 %v8823_v34 }
 0x3e0   : > { %8483 = vmatpush3.msra.mxu1 %v3127_v44  ;;  %v7870_v44 = vld [vmem:[%s10602_s10 + $0x48] sm:$0xf] }
 0x3e1   : > { %8484 = vmatprep.subr.mxu1 %v8823_v34 }
 0x3e2   : > { %8485 = vmatpush3.msra.mxu1 %v3126_v45  ;;  %v7869_v45 = vld [vmem:[%s10602_s10 + $0x40] sm:$0xff] }
 0x3e3   : > { %8486 = vmatprep.subr.mxu1 %v8823_v34 }
 0x3e4   : > { %8487 = vmatpush3.msra.mxu1 %v3125_v46  ;;  %v7868_v46 = vld [vmem:[%s10602_s10 + $0x38] sm:$0xff] }
 0x3e5   : > { %8526 = vmatprep.subr.mxu1 %v8823_v34 }
 0x477   : > { %v2478_v47 = vpop.f32.mrf.mxu1 }
 0x479   : > { %v8421_v48 = vpop.f32.mrf.mxu1 }
 0x47a   : > { %v7866_v48 = vld [vmem:[%s10602_s10 + $0x28] sm:$0xff] }
 0x47b   : > { %v2553_v49 = vpop.f32.mrf.mxu1 }
 0x47c   : > { %v2554_v52 = vadd.f32 %v2553_v49, %v2478_v47  ;;  %v7867_v47 = vld [vmem:[%s10602_s10 + $0x30] sm:$0xff] }
 0x47d   : > { %v8426_v50 = vpop.f32.mrf.mxu1 }
 0x47f   : > { %v2632_v51 = vpop.f32.mrf.mxu1 }
 0x480   : > { %v2636_v55 = vadd.f32 %v2632_v51, %v2554_v52 }
 0x481   : > { %v8431_v53 = vpop.f32.mrf.mxu1  ;;  %v2792_v54 = vpop.f32.mrf.mxu0 }
 0x483   : > { %v2712_v56 = vpop.f32.mrf.mxu1  ;;  %v8441_v57 = vpop.f32.mrf.mxu0 }
 0x484   : > { %v2716_v58 = vadd.f32 %v2712_v56, %v2636_v55 }
 0x485   : > { %v8436_v59 = vpop.f32.mrf.mxu1  ;;  %v2952_v60 = vpop.f32.mrf.mxu0 }
 0x486   : > { %v2796_v61 = vadd.f32 %v2792_v54, %v2716_v58 }
 0x487   : > { %v2872_v62 = vpop.f32.mrf.mxu1  ;;  %v8451_v63 = vpop.f32.mrf.mxu0 }
 0x488   : > { %v2876_v0 = vadd.f32 %v2872_v62, %v2796_v61 }
 0x489   : > { %v8446_v1 = vpop.f32.mrf.mxu1  ;;  %v3112_v2 = vpop.f32.mrf.mxu0 }
 0x48a   : > { %v2956_v3 = vadd.f32 %v2952_v60, %v2876_v0 }
 0x48b   : > { %v3032_v4 = vpop.f32.mrf.mxu1  ;;  %v8461_v5 = vpop.f32.mrf.mxu0 }
 0x48c   : > { %v3036_v6 = vadd.f32 %v3032_v4, %v2956_v3 }
 0x48d   : > { %v8456_v7 = vpop.f32.mrf.mxu1 }
 0x48e   : > { %v3116_v8 = vadd.f32 %v3112_v2, %v3036_v6 }
 0x490   : > { %v3123_v10 = vadd.f32 %v3121_v9, %v3116_v8  ;;  %v3543_v8 = vld [vmem:[%s10602_s10 + $0x20] sm:$0xf] }
 0x492   : > { %v3124_v11 = vmax.f32 %v3123_v10, 0.0  ;;  %v3542_v10 = vld [vmem:[%s10602_s10 + $0x18] sm:$0xff] }
 0x494   : > { %8489 = vmatmul.mubr.msk.f32.vlgmr.msra.gmra.mxu1 %vm3138_vm12, %v3124_v11  ;;  %v3541_v11 = vld [vmem:[%s10602_s10 + $0x10] sm:$0xff] }
 0x495   : > { %8528 = vmatprep.mubr.msk.f32.mxu1 %vm8833_vm3, %v8823_v34 }
 0x554   : > { %v3211_v12 = vpop.f32.mrf.mxu1 }
 0x555   : > { %3373 = vrot.lane.b32.xlu0 %v3211_v12, %s8839_s23  ;;  %3219 = vrot.lane.b32.xlu1 %v3211_v12, %s8824_s30  ;;  %s10614_s23 = smov 108  }
 0x556   : > { %v8490_v14 = vpop.f32.mrf.mxu1 }
 0x557   : > { %v3540_v14 = vld [vmem:[%s10602_s10 + $0x8] sm:$0xff] }
 0x559   : > { %3548 = vrot.lane.b32.xlu0 %v3211_v12, %s8825_s16  ;;  %3453 = vrot.lane.b32.xlu1 %v3211_v12, %s8840_s28 }
 0x55d   : > { %3534 = vperm.xlu0 %8812, %v3531_v15   ;;  %3776 = vrot.lane.b32.xlu1 %v3211_v12, %s8841_s26  ;;  %v3539_v15 = vld [vmem:[%s10602_s10] sm:$0xff] }
 0x561   : > { %4247 = vrot.lane.b32.xlu0 %v3211_v12, %s8842_s22  ;;  %4167 = vrot.lane.b32.xlu1 %v3211_v12, %s8835_s21 }
 0x565   : > { %4638 = vrot.lane.b32.xlu1 %v3211_v12, %s8843_s27 }
 0x5c7   : > { %v3220_v18 = vpop.permute.xlu1 %3219  ;;  %v3374_v24 = vpop.permute.xlu0 %3373 }
 0x5c8   : > { %8492 = vmatpush3.msk.msra.mxu0 %vm755_vm1, %v3220_v18 }
 0x5c9   : > { %8494 = vmatmul.mubr.msk.f32.vlgmr.msra.gmra.mxu0 %vm751_vm2, %v7843_v16  ;;  %8496 = vmatprep.subr.mxu0 %v8823_v34 }
 0x5ca   : > { %8497 = vmatpush3.msk.msra.mxu0 %vm755_vm1, %v3211_v12  ;;  %8498 = vmatprep.mubr.msk.f32.mxu0 %vm8833_vm3, %v8823_v34 }
 0x5cb   : > { %v9723_v23 = vpop.permute.xlu1 %3453  ;;  %8501 = vmatprep.subr.mxu0 %v8823_v34  ;;  %v3549_v33 = vpop.permute.xlu0 %3548 }
 0x5cd   : > { %8499 = vmatmul.mubr.msk.f32.vlgmr.msra.gmra.mxu0 %vm751_vm2, %v3215_v21 }
 0x5ce   : > { %8502 = vmatpush3.msk.msra.mxu0 %vm755_vm1, %v3374_v24  ;;  %8503 = vmatprep.mubr.msk.f32.mxu0 %vm8833_vm3, %v8823_v34 }
 0x5cf   : > { %v3777_v28 = vpop.permute.xlu1 %3776  ;;  %8506 = vmatprep.subr.mxu0 %v8823_v34 }
 0x5d0   : > { %8527 = vmatpush3.msk.msra.mxu1 %vm755_vm1, %v3777_v28 }
 0x5d1   : > { %8504 = vmatmul.mubr.msk.f32.vlgmr.msra.gmra.mxu0 %vm751_vm2, %v7848_v27  ;;  %8562 = vmatprep.subr.mxu1 %v8823_v34 }
 0x5d2   : > { %8507 = vmatpush3.msk.msra.mxu0 %vm755_vm1, %v9723_v23  ;;  %8529 = vmatmul.mubr.msk.f32.vlgmr.msra.gmra.mxu1 %vm751_vm2, %v7863_v30 }
 0x5d3   : > { %8563 = vmatpush3.msk.msra.mxu1 %vm755_vm1, %v3374_v24  ;;  %8508 = vmatprep.mubr.msk.f32.mxu0 %vm8833_vm3, %v8823_v34  ;;  %v4168_v21 = vpop.permute.xlu1 %4167 }
 0x5d4   : > { %8511 = vmatprep.subr.mxu0 %v8823_v34  ;;  %8564 = vmatprep.mubr.msk.f32.mxu1 %vm8833_vm3, %v8823_v34 }
 0x5d5   : > { %8509 = vmatmul.mubr.msk.f32.vlgmr.msra.gmra.mxu0 %vm751_vm2, %v7851_v32  ;;  %8572 = vmatprep.subr.mxu1 %v8823_v34  ;;  %v7890_v32 = vld [vmem:[%s10602_s10 + $0x68] sm:$0xff] }
 0x5d6   : > { %8512 = vmatpush3.msk.msra.mxu0 %vm755_vm1, %v3549_v33  ;;  %8513 = vmatprep.mubr.msk.f32.mxu0 %vm8833_vm3, %v8823_v34 }
 0x5d7   : > { %8516 = vmatprep.subr.mxu0 %v8823_v34  ;;  %8565 = vmatmul.mubr.msk.f32.vlgmr.msra.gmra.mxu1 %vm751_vm2, %v7875_v35  ;;  %v7889_v35 = vld [vmem:[%s10602_s10 + $0x60] sm:$0xff] }
 0x5d8   : > { %v9765_v37 = vpop.permute.xlu0 %3534  ;;  %8574 = vmatprep.mubr.msk.f32.mxu1 %vm8833_vm3, %v8823_v34 }
 0x5d9   : > { %8514 = vmatmul.mubr.msk.f32.vlgmr.msra.gmra.mxu0 %vm751_vm2, %v7855_v36  ;;  %v7888_v36 = vld [vmem:[%s10602_s10 + $0x58] sm:$0xff] }
 0x5da   : > { %8517 = vmatpush3.msk.msra.mxu0 %vm755_vm1, %v3220_v18  ;;  %8518 = vmatprep.mubr.msk.f32.mxu0 %vm8833_vm3, %v8823_v34  ;;  %v7876_v18 = vld [vmem:[%s10600_s8 + $0x24] sm:$0xf] }
 0x5db   : > { %8521 = vmatprep.subr.mxu0 %v8823_v34 }
 0x5dc   : > { %v4248_v40 = vpop.permute.xlu0 %4247 }
 0x5dd   : > { %8519 = vmatmul.mubr.msk.f32.vlgmr.msra.gmra.mxu0 %vm751_vm2, %v7854_v38  ;;  %8573 = vmatpush3.msk.msra.mxu1 %vm755_vm1, %v4248_v40  ;;  %v7900_v38 = vld [vmem:[%s10600_s8 + $0x38] sm:$0xf] }
 0x5de   : > { %8522 = vmatpush3.msk.msra.mxu0 %vm755_vm1, %v9723_v23  ;;  %8575 = vmatmul.mubr.msk.f32.vlgmr.msra.gmra.mxu1 %vm751_vm2, %v7884_v39  ;;  %v7887_v39 = vld [vmem:[%s10602_s10 + $0x50] sm:$0xff] }
 0x5df   : > { %8590 = vmatprep.subr.mxu1 %v8823_v34  ;;  %8523 = vmatprep.mubr.msk.f32.mxu0 %vm8833_vm3, %v8823_v34 }
 0x5e0   : > { %8591 = vmatpush3.msk.msra.mxu1 %vm755_vm1, %v3777_v28  ;;  %8592 = vmatprep.mubr.msk.f32.mxu1 %vm8833_vm3, %v8823_v34  ;;  %v7891_v28 = vld [vmem:[%s10602_s10 + $0x70] sm:$0xf] }
 0x5e1   : > { %8524 = vmatmul.mubr.msk.f32.vlgmr.msra.gmra.mxu0 %vm751_vm2, %v7860_v41  ;;  %8595 = vmatprep.subr.mxu1 %v8823_v34 }
 0x5e2   : > { %8593 = vmatmul.mubr.msk.f32.vlgmr.msra.gmra.mxu1 %vm751_vm2, %v7895_v42  ;;  %8531 = vmatprep.subr.mxu0 %v8823_v34 }
 0x5e3   : > { %8596 = vmatpush3.msk.msra.mxu1 %vm755_vm1, %v9723_v23  ;;  %8597 = vmatprep.mubr.msk.f32.mxu1 %vm8833_vm3, %v8823_v34 }
 0x5e4   : > { %8600 = vmatprep.subr.mxu1 %v8823_v34  ;;  %8541 = vmatprep.mubr.msk.f32.mxu0 %vm8833_vm3, %v8823_v34 }
 0x5e5   : > { %8532 = vmatpush3.msk.msra.mxu0 %vm755_vm1, %v7870_v44 }
 0x5e6   : > { %8598 = vmatmul.mubr.msk.f32.vlgmr.msra.gmra.mxu1 %vm751_vm2, %v7894_v43  ;;  %8533 = vmatprep.subr.mxu0 %v8823_v34 }
 0x5e7   : > { %8601 = vmatpush3.msk.msra.mxu1 %vm755_vm1, %v4248_v40  ;;  %8602 = vmatprep.mubr.msk.f32.mxu1 %vm8833_vm3, %v8823_v34 }
 0x5e8   : > { %8610 = vmatprep.subr.mxu1 %v8823_v34  ;;  %8534 = vmatpush3.msra.mxu0 %v7869_v45 }
 0x5e9   : > { %8535 = vmatprep.subr.mxu0 %v8823_v34 }
 0x5ea   : > { %8536 = vmatpush3.msra.mxu0 %v7868_v46  ;;  %8603 = vmatmul.mubr.msk.f32.vlgmr.msra.gmra.mxu1 %vm751_vm2, %v7900_v38  ;;  %v7923_v38 = vld [vmem:[%s10603_s11 + $0x8] sm:$0xf] }
 0x5eb   : > { %8537 = vmatprep.subr.mxu0 %v8823_v34  ;;  %8620 = vmatprep.mubr.msk.f32.mxu1 %vm8833_vm3, %v8823_v34 }
 0x5ec   : > { %8538 = vmatpush3.msra.mxu0 %v7867_v47 }
 0x5ed   : > { %8539 = vmatprep.subr.mxu0 %v8823_v34 }
 0x5ee   : > { %8540 = vmatpush3.msra.mxu0 %v7866_v48 }
 0x5ef   : > { %8544 = vmatprep.subr.mxu0 %v8823_v34 }
 0x689   : > { %v3292_v49 = vpop.f32.mrf.mxu0 }
 0x68b   : > { %v8495_v50 = vpop.f32.mrf.mxu0 }
 0x68d   : > { %v3367_v51 = vpop.f32.mrf.mxu0 }
 0x68e   : > { %v3368_v4 = vadd.f32 %v3367_v51, %v3292_v49 }
 0x68f   : > { %v8500_v52 = vpop.f32.mrf.mxu0 }
 0x691   : > { %v3446_v53 = vpop.f32.mrf.mxu0 }
 0x692   : > { %v3849_v54 = vpop.f32.mrf.mxu1  ;;  %v3450_v6 = vadd.f32 %v3446_v53, %v3368_v4 }
 0x693   : > { %v8505_v55 = vpop.f32.mrf.mxu0 }
 0x694   : > { %v8530_v56 = vpop.f32.mrf.mxu1 }
 0x695   : > { %v3526_v57 = vpop.f32.mrf.mxu0 }
 0x696   : > { %v3530_v9 = vadd.f32 %v3526_v57, %v3450_v6 }
 0x697   : > { %v8510_v58 = vpop.f32.mrf.mxu0  ;;  %v4161_v24 = vpop.f32.mrf.mxu1 }
 0x698   : > { %v3537_v12 = vadd.f32 %v9765_v37, %v3530_v9 }
 0x699   : > { %v3621_v59 = vpop.f32.mrf.mxu0  ;;  %v8566_v27 = vpop.f32.mrf.mxu1 }
 0x69a   : > { %v3538_v16 = vmax.f32 %v3537_v12, 0.0  ;;  %v4802_v12 = vld [vmem:[%s10604_s12] sm:$0xf]  ;;  %v7936_v27 = vld [vmem:[%s10604_s12 + $0x10] sm:$0xf] }
 0x69b   : > { %v8515_v60 = vpop.f32.mrf.mxu0 }
 0x69c   : > { %v7903_v60 = vld [vmem:[%s10600_s8 + $0x3c] sm:$0xf] }
 0x69d   : > { %v3694_v61 = vpop.f32.mrf.mxu0 }
 0x69e   : > { %v3695_v63 = vadd.f32 %v3694_v61, %v3621_v59  ;;  %v4320_v30 = vpop.f32.mrf.mxu1  ;;  %v4639_v59 = vpop.permute.xlu1 %4638 }
 0x69f   : > { %v8520_v62 = vpop.f32.mrf.mxu0 }
 0x6a0   : > { %v8576_v33 = vpop.f32.mrf.mxu1 }
 0x6a1   : > { %v3769_v0 = vpop.f32.mrf.mxu0  ;;  %v7917_v33 = vld [vmem:[%s10603_s11 + $0x4] sm:$0xf] }
 0x6a2   : > { %v3773_v1 = vadd.f32 %v3769_v0, %v3695_v63  ;;  %v4483_v40 = vpop.f32.mrf.mxu1  ;;  %v7910_v0 = vld [vmem:[%s10602_s10 + $0x98] sm:$0xf] }
 0x6a3   : > { %v8525_v2 = vpop.f32.mrf.mxu0  ;;  %8611 = vmatpush3.msk.msra.mxu1 %vm755_vm1, %v7910_v0  ;;  %v5434_v0 = vld [vmem:[%s10606_s14 + $0x48] sm:$0xff] }
 0x6a4   : > { %v3853_v3 = vadd.f32 %v3849_v54, %v3773_v1  ;;  %v8594_v41 = vpop.f32.mrf.mxu1  ;;  %8612 = vmatprep.subr.mxu1 %v8823_v34  ;;  %v7908_v1 = vld [vmem:[%s10602_s10 + $0x88] sm:$0xff]  ;;  %v7907_v2 = vld [vmem:[%s10602_s10 + $0x80] sm:$0xff] }
 0x6a5   : > { %v7935_v41 = vld [vmem:[%s10603_s11 + $0x10] sm:$0xf] }
 0x6a6   : > { %v3854_v5 = vadd.f32 %v3853_v3, %v9765_v37  ;;  %v4556_v42 = vpop.f32.mrf.mxu1  ;;  %v7906_v3 = vld [vmem:[%s10602_s10 + $0x78] sm:$0xff] }
 0x6a7   : > { %v4557_v43 = vadd.f32 %v4556_v42, %v4483_v40  ;;  %v7929_v40 = vld [vmem:[%s10603_s11 + $0xc] sm:$0xf] }
 0x6a8   : > { %v3855_v7 = vmax.f32 %v3854_v5, 0.0  ;;  %v8599_v44 = vpop.f32.mrf.mxu1 }
 0x6a9   : > { %v7947_v44 = vld [vmem:[%s10603_s11 + $0x18] sm:$0xf] }
 0x6aa   : > { %8542 = vmatmul.mubr.msk.f32.vlgmr.msra.gmra.mxu0 %vm3862_vm13, %v3855_v7  ;;  %v4631_v61 = vpop.f32.mrf.mxu1 }
 0x6ab   : > { %8545 = vmatpush3.msk.msra.mxu0 %vm755_vm1, %v3543_v8  ;;  %8554 = vmatprep.mubr.msk.f32.mxu0 %vm8833_vm3, %v8823_v34  ;;  %v4635_v62 = vadd.f32 %v4631_v61, %v4557_v43  ;;  %v7941_v43 = vld [vmem:[%s10603_s11 + $0x14] sm:$0xf]  ;;  %v5436_v61 = vld [vmem:[%s10606_s14 + $0x58] sm:$0xff] }
 0x6ac   : > { %8546 = vmatprep.subr.mxu0 %v8823_v34  ;;  %v8604_v63 = vpop.f32.mrf.mxu1 }
 0x6ad   : > { %8547 = vmatpush3.msra.mxu0 %v3542_v10  ;;  %v7984_v63 = vld [vmem:[%s10606_s14 + $0x198] sm:$0xf] }
 0x6ae   : > { %8548 = vmatprep.subr.mxu0 %v8823_v34 }
 0x6af   : > { %8549 = vmatpush3.msra.mxu0 %v3541_v11 }
 0x6b0   : > { %8550 = vmatprep.subr.mxu0 %v8823_v34 }
 0x6b1   : > { %8551 = vmatpush3.msra.mxu0 %v3540_v14 }
 0x6b2   : > { %8552 = vmatprep.subr.mxu0 %v8823_v34 }
 0x6b3   : > { %8553 = vmatpush3.msra.mxu0 %v3539_v15 }
 0x6b4   : > { %8555 = vmatmul.mubr.msk.f32.vlgmr.msra.gmra.mxu0 %vm3862_vm13, %v3538_v16  ;;  %8557 = vmatprep.subr.mxu0 %v8823_v34 }
 0x6b5   : > { %8558 = vmatpush3.msk.msra.mxu0 %vm755_vm1, %v9723_v23  ;;  %8559 = vmatprep.mubr.msk.f32.mxu0 %vm8833_vm3, %v8823_v34  ;;  %v7881_v23 = vld [vmem:[%s10600_s8 + $0x28] sm:$0xf] }
 0x6b6   : > { %8567 = vmatprep.subr.mxu0 %v8823_v34 }
 0x6b8   : > { %8560 = vmatmul.mubr.msk.f32.vlgmr.msra.gmra.mxu0 %vm751_vm2, %v7876_v18  ;;  %v7918_v18 = vld [vmem:[%s10604_s12 + $0x4] sm:$0xf] }
 0x6b9   : > { %8568 = vmatpush3.msk.msra.mxu0 %vm755_vm1, %v4168_v21  ;;  %8569 = vmatprep.mubr.msk.f32.mxu0 %vm8833_vm3, %v8823_v34  ;;  %v5417_v21 = vld [vmem:[%s10605_s13] sm:$0xf] }
 0x6ba   : > { %8577 = vmatprep.subr.mxu0 %v8823_v34 }
 0x6bc   : > { %8570 = vmatmul.mubr.msk.f32.vlgmr.msra.gmra.mxu0 %vm751_vm2, %v7881_v23  ;;  %v7924_v23 = vld [vmem:[%s10604_s12 + $0x8] sm:$0xf] }
 0x6bd   : > { %8587 = vmatprep.mubr.msk.f32.mxu0 %vm8833_vm3, %v8823_v34  ;;  %8578 = vmatpush3.msk.msra.mxu0 %vm755_vm1, %v7891_v28  ;;  %v7954_v28 = vld [vmem:[%s10604_s12 + $0x1c] sm:$0xf] }
 0x6be   : > { %8579 = vmatprep.subr.mxu0 %v8823_v34 }
 0x6bf   : > { %8580 = vmatpush3.msra.mxu0 %v7890_v32 }
 0x6c0   : > { %8581 = vmatprep.subr.mxu0 %v8823_v34 }
 0x6c1   : > { %8582 = vmatpush3.msra.mxu0 %v7889_v35 }
 0x6c2   : > { %8583 = vmatprep.subr.mxu0 %v8823_v34 }
 0x6c3   : > { %8584 = vmatpush3.msra.mxu0 %v7888_v36 }
 0x6c4   : > { %8585 = vmatprep.subr.mxu0 %v8823_v34 }
 0x6c5   : > { %8586 = vmatpush3.msra.mxu0 %v7887_v39 }
 0x6c6   : > { %8605 = vmatprep.subr.mxu0 %v8823_v34 }
 0x76a   : > { %v3935_v45 = vpop.f32.mrf.mxu0 }
 0x76c   : > { %v8543_v46 = vpop.f32.mrf.mxu0 }
 0x774   : > { %v4011_v47 = vpop.f32.mrf.mxu0 }
 0x775   : > { %v4012_v48 = vadd.f32 %v4011_v47, %v3935_v45  ;;  %v5450_v45 = vld [vmem:[%s10606_s14 + $0xc8] sm:$0xf]  ;;  %v7953_v47 = vld [vmem:[%s10603_s11 + $0x1c] sm:$0xf] }
 0x776   : > { %v8556_v49 = vpop.f32.mrf.mxu0 }
 0x777   : > { %v5448_v49 = vld [vmem:[%s10606_s14 + $0xb8] sm:$0xff] }
 0x778   : > { %v4088_v50 = vpop.f32.mrf.mxu0 }
 0x779   : > { %v4162_v52 = vadd.f32 %v4161_v24, %v4088_v50  ;;  %v7930_v24 = vld [vmem:[%s10604_s12 + $0xc] sm:$0xf]  ;;  %v5447_v50 = vld [vmem:[%s10606_s14 + $0xb0] sm:$0xff] }
 0x77a   : > { %v8561_v51 = vpop.f32.mrf.mxu0 }
 0x77b   : > { %v5446_v51 = vld [vmem:[%s10606_s14 + $0xa8] sm:$0xff] }
 0x77c   : > { %v4240_v53 = vpop.f32.mrf.mxu0 }
 0x77d   : > { %v4244_v54 = vadd.f32 %v4240_v53, %v4162_v52  ;;  %v5445_v52 = vld [vmem:[%s10606_s14 + $0xa0] sm:$0xff]  ;;  %v5444_v53 = vld [vmem:[%s10606_s14 + $0x98] sm:$0xff] }
 0x77e   : > { %v8571_v55 = vpop.f32.mrf.mxu0 }
 0x77f   : > { %v4324_v56 = vadd.f32 %v4320_v30, %v4244_v54  ;;  %v5443_v54 = vld [vmem:[%s10606_s14 + $0x90] sm:$0xff]  ;;  %v5442_v55 = vld [vmem:[%s10606_s14 + $0x88] sm:$0xff] }
 0x781   : > { %v4325_v57 = vadd.f32 %v4324_v56, %v9765_v37  ;;  %v5441_v56 = vld [vmem:[%s10606_s14 + $0x80] sm:$0xff] }
 0x783   : > { %v4326_v58 = vmax.f32 %v4325_v57, 0.0  ;;  %v5440_v57 = vld [vmem:[%s10606_s14 + $0x78] sm:$0xff] }
 0x785   : > { %8588 = vmatmul.mubr.msk.f32.vlgmr.msra.gmra.mxu0 %vm3862_vm13, %v4326_v58  ;;  %v5439_v58 = vld [vmem:[%s10606_s14 + $0x70] sm:$0xff] }
 0x786   : > { %8606 = vmatpush3.msk.msra.mxu0 %vm755_vm1, %v4639_v59  ;;  %8607 = vmatprep.mubr.msk.f32.mxu0 %vm8833_vm3, %v8823_v34  ;;  %v5438_v59 = vld [vmem:[%s10606_s14 + $0x68] sm:$0xff] }
 0x787   : > { %8623 = vmatprep.subr.mxu0 %v8823_v34 }
 0x789   : > { %8608 = vmatmul.mubr.msk.f32.vlgmr.msra.gmra.mxu0 %vm751_vm2, %v7903_v60  ;;  %v5437_v60 = vld [vmem:[%s10606_s14 + $0x60] sm:$0xff] }
 0x78a   : > { %8624 = vmatpush3.msk.msra.mxu0 %vm755_vm1, %v9531_v13  ;;  %8625 = vmatprep.mubr.msk.f32.mxu0 %vm8833_vm3, %v8823_v34  ;;  %v7909_v13 = vld [vmem:[%s10602_s10 + $0x90] sm:$0xff] }
 0x78b   : > { %8628 = vmatprep.subr.mxu0 %v8823_v34  ;;  %8613 = vmatpush3.msra.mxu1 %v7909_v13  ;;  %v7983_v13 = vld [vmem:[%s10606_s14 + $0x190] sm:$0xf] }
 0x78c   : > { %8614 = vmatprep.subr.mxu1 %v8823_v34 }
 0x78d   : > { %8615 = vmatpush3.msra.mxu1 %v7908_v1  ;;  %8626 = vmatmul.mubr.msk.f32.vlgmr.msra.gmra.mxu0 %vm751_vm2, %v4802_v12  ;;  %v5433_v1 = vld [vmem:[%s10606_s14 + $0x40] sm:$0xff] }
 0x78e   : > { %8616 = vmatprep.subr.mxu1 %v8823_v34  ;;  %8630 = vmatprep.mubr.msk.f32.mxu0 %vm8833_vm3, %v8823_v34 }
 0x78f   : > { %8617 = vmatpush3.msra.mxu1 %v7907_v2  ;;  %v7982_v2 = vld [vmem:[%s10606_s14 + $0x188] sm:$0xff] }
 0x790   : > { %8618 = vmatprep.subr.mxu1 %v8823_v34 }
 0x791   : > { %8619 = vmatpush3.msra.mxu1 %v7906_v3  ;;  %v5432_v3 = vld [vmem:[%s10606_s14 + $0x38] sm:$0xff] }
 0x792   : > { %8638 = vmatprep.subr.mxu1 %v8823_v34 }
 0x845   : > { %v4405_v4 = vpop.f32.mrf.mxu0 }
 0x846   : > { %v4409_v5 = vadd.f32 %v4405_v4, %v4012_v48  ;;  %v5449_v48 = vld [vmem:[%s10606_s14 + $0xc0] sm:$0xf] }
 0x847   : > { %v8589_v6 = vpop.f32.mrf.mxu0  ;;  %v7981_v4 = vld [vmem:[%s10606_s14 + $0x180] sm:$0xff] }
 0x848   : > { %v7980_v6 = vld [vmem:[%s10606_s14 + $0x178] sm:$0xff] }
 0x849   : > { %v4711_v7 = vpop.f32.mrf.mxu0 }
 0x84a   : > { %v4715_v8 = vadd.f32 %v4711_v7, %v4635_v62  ;;  %v5435_v62 = vld [vmem:[%s10606_s14 + $0x50] sm:$0xff]  ;;  %v5430_v7 = vld [vmem:[%s10606_s14 + $0x28] sm:$0xff] }
 0x84b   : > { %v8609_v9 = vpop.f32.mrf.mxu0 }
 0x84c   : > { %v4716_v10 = vadd.f32 %v4715_v8, %v9765_v37  ;;  %v4801_v37 = vld [vmem:[%s10603_s11] sm:$0xf]  ;;  %v7979_v8 = vld [vmem:[%s10606_s14 + $0x170] sm:$0xff] }
 0x84d   : > { %v10036_v30 = vpop.f32.mrf.mxu0  ;;  %v5429_v9 = vld [vmem:[%s10606_s14 + $0x20] sm:$0xff] }
 0x84e   : > { %v4717_v11 = vmax.f32 %v4716_v10, 0.0  ;;  %v7978_v10 = vld [vmem:[%s10606_s14 + $0x168] sm:$0xff] }
 0x84f   : > { %v8627_v32 = vpop.f32.mrf.mxu0 }
 0x850   : > { %8621 = vmatmul.mubr.msk.f32.vlgmr.msra.gmra.mxu1 %vm3862_vm13, %v4717_v11  ;;  %v5428_v11 = vld [vmem:[%s10606_s14 + $0x18] sm:$0xff] }
 0x851   : > { %8640 = vmatprep.mubr.msk.f32.mxu1 %vm8833_vm3, %v8823_v34 }
 0x910   : > { %v4796_v14 = vpop.f32.mrf.mxu1 }
 0x911   : > { %v4800_v15 = vadd.f32 %v4796_v14, %v4409_v5  ;;  %v5431_v5 = vld [vmem:[%s10606_s14 + $0x30] sm:$0xff]  ;;  %v7977_v14 = vld [vmem:[%s10606_s14 + $0x160] sm:$0xff] }
 0x912   : > { %v8622_v16 = vpop.f32.mrf.mxu1 }
 0x913   : > { %5184 = vrot.lane.b32.xlu1 %v4800_v15, %s8834_s17  ;;  %5029 = vrot.lane.b32.xlu0 %v4800_v15, %s8824_s30  ;;  %v7976_v16 = vld [vmem:[%s10606_s14 + $0x158] sm:$0xff]  ;;  %s494_s17 = scalar_lea.vmem %s10607_s15, %s10616_s25 }
 0x914   : > { %8629 = vmatpush3.msk.msra.mxu0 %vm755_vm1, %v4800_v15 }
 0x915   : > { %8631 = vmatmul.mubr.msk.f32.vlgmr.msra.gmra.mxu0 %vm751_vm2, %v4801_v37  ;;  %8633 = vmatprep.subr.mxu0 %v8823_v34  ;;  %v5426_v37 = vld [vmem:[%s10606_s14 + $0x8] sm:$0xff] }
 0x916   : > { %8634 = vmatpush3.msk.msra.mxu0 %vm755_vm1, %v9555_v17  ;;  %8635 = vmatprep.mubr.msk.f32.mxu0 %vm8833_vm3, %v8823_v34 }
 0x917   : > { %5678 = vrot.lane.b32.xlu1 %v4800_v15, %s8825_s16  ;;  %5339 = vrot.lane.b32.xlu0 %v4800_v15, %s8837_s24 }
 0x918   : > { %8643 = vmatprep.subr.mxu0 %v8823_v34 }
 0x919   : > { %8636 = vmatmul.mubr.msk.f32.vlgmr.msra.gmra.mxu0 %vm751_vm2, %v7918_v18  ;;  %v7975_v18 = vld [vmem:[%s10606_s14 + $0x150] sm:$0xff] }
 0x91a   : > { %8644 = vmatpush3.msk.msra.mxu0 %vm755_vm1, %v9571_v20  ;;  %8645 = vmatprep.mubr.msk.f32.mxu0 %vm8833_vm3, %v8823_v34 }
 0x91b   : > { %5420 = vperm.xlu1 %8813, %v5417_v21   ;;  %5984 = vrot.lane.b32.xlu0 %v4800_v15, %s8835_s21 }
 0x91c   : > { %8653 = vmatprep.subr.mxu0 %v8823_v34 }
 0x91d   : > { %8646 = vmatmul.mubr.msk.f32.vlgmr.msra.gmra.mxu0 %vm751_vm2, %v7924_v23  ;;  %v5425_v23 = vld [vmem:[%s10606_s14] sm:$0xff] }
 0x91e   : > { %8654 = vmatpush3.msk.msra.mxu0 %vm755_vm1, %v9581_v22  ;;  %8655 = vmatprep.mubr.msk.f32.mxu0 %vm8833_vm3, %v8823_v34 }
 0x91f   : > { %6784 = vrot.lane.b32.xlu1 %v4800_v15, %s10613_s20  ;;  %6629 = vrot.lane.b32.xlu0 %v4800_v15, %s10614_s23 }
 0x920   : > { %8663 = vmatprep.subr.mxu0 %v8823_v34 }
 0x921   : > { %8656 = vmatmul.mubr.msk.f32.vlgmr.msra.gmra.mxu0 %vm751_vm2, %v7930_v24  ;;  %v7974_v24 = vld [vmem:[%s10606_s14 + $0x148] sm:$0xff] }
 0x922   : > { %8664 = vmatpush3.msk.msra.mxu0 %vm755_vm1, %v9555_v17  ;;  %8665 = vmatprep.mubr.msk.f32.mxu0 %vm8833_vm3, %v8823_v34  ;;  %v7942_v17 = vld [vmem:[%s10604_s12 + $0x14] sm:$0xf] }
 0x923   : > { %7502 = vrot.lane.b32.xlu0 %v4800_v15, %s10615_s29  ;;  %8673 = vmatprep.subr.mxu0 %v8823_v34  ;;  %v5427_v15 = vld [vmem:[%s10606_s14 + $0x10] sm:$0xff] }
 0x925   : > { %8666 = vmatmul.mubr.msk.f32.vlgmr.msra.gmra.mxu0 %vm751_vm2, %v7936_v27 }
 0x926   : > { %8674 = vmatpush3.msk.msra.mxu0 %vm755_vm1, %v9568_v19  ;;  %8675 = vmatprep.mubr.msk.f32.mxu0 %vm8833_vm3, %v8823_v34  ;;  %v7948_v19 = vld [vmem:[%s10604_s12 + $0x18] sm:$0xf] }
 0x927   : > { %8683 = vmatprep.subr.mxu0 %v8823_v34 }
 0x929   : > { %8676 = vmatmul.mubr.msk.f32.vlgmr.msra.gmra.mxu0 %vm751_vm2, %v7942_v17  ;;  %v7973_v17 = vld [vmem:[%s10606_s14 + $0x140] sm:$0xff] }
 0x92a   : > { %8684 = vmatpush3.msk.msra.mxu0 %vm755_vm1, %v9581_v22  ;;  %8685 = vmatprep.mubr.msk.f32.mxu0 %vm8833_vm3, %v8823_v34 }
 0x92b   : > { %8693 = vmatprep.subr.mxu0 %v8823_v34 }
 0x92d   : > { %8686 = vmatmul.mubr.msk.f32.vlgmr.msra.gmra.mxu0 %vm751_vm2, %v7948_v19  ;;  %v7972_v19 = vld [vmem:[%s10606_s14 + $0x138] sm:$0xff] }
 0x92e   : > { %8694 = vmatpush3.msk.msra.mxu0 %vm755_vm1, %v9598_v25  ;;  %8695 = vmatprep.mubr.msk.f32.mxu0 %vm8833_vm3, %v8823_v34 }
 0x92f   : > { %7985 = vmatprep.subr.msk.mxu0 %vm755_vm1, %v7984_v63 }
 0x931   : > { %8696 = vmatmul.mubr.msk.f32.vlgmr.msra.gmra.mxu0 %vm751_vm2, %v7954_v28  ;;  %v7971_v28 = vld [vmem:[%s10606_s14 + $0x130] sm:$0xff] }
 0x932   : > { %6164 = vmatprep.mubr.f32.mxu0 %v8823_v34  ;;  %7986 = vmatpush1.msk.msra.mxu0 %vm755_vm1, %v7983_v13 }
 0x933   : > { %6108 = vmatprep.subr.mxu0 %v7982_v2 }
 0x934   : > { %6109 = vmatpush1.msra.mxu0 %v7981_v4 }
 0x935   : > { %6110 = vmatprep.subr.mxu0 %v7980_v6 }
 0x936   : > { %6111 = vmatpush1.msra.mxu0 %v7979_v8 }
 0x937   : > { %6112 = vmatprep.subr.mxu0 %v7978_v10 }
 0x938   : > { %6113 = vmatpush1.msra.mxu0 %v7977_v14 }
 0x939   : > { %6114 = vmatprep.subr.mxu0 %v7976_v16 }
 0x93a   : > { %6115 = vmatpush1.msra.mxu0 %v7975_v18 }
 0x93b   : > { %6116 = vmatprep.subr.mxu0 %v7974_v24 }
 0x93c   : > { %6117 = vmatpush1.msra.mxu0 %v7973_v17 }
 0x93d   : > { %6118 = vmatprep.subr.mxu0 %v7972_v19 }
 0x93e   : > { %6119 = vmatpush1.msra.mxu0 %v7971_v28 }
 0x985   : > { %v5030_v35 = vpop.permute.xlu0 %5029  ;;  %v10042_v36 = vpop.permute.xlu1 %5184 }
 0x986   : > { %8639 = vmatpush3.msk.msra.mxu1 %vm755_vm1, %v5030_v35 }
 0x987   : > { %8641 = vmatmul.mubr.msk.f32.vlgmr.msra.gmra.mxu1 %vm751_vm2, %v7917_v33  ;;  %8648 = vmatprep.subr.mxu1 %v8823_v34  ;;  %v7970_v33 = vld [vmem:[%s10606_s14 + $0x128] sm:$0xff] }
 0x988   : > { %8649 = vmatpush3.msk.msra.mxu1 %vm755_vm1, %v10042_v36  ;;  %8650 = vmatprep.mubr.msk.f32.mxu1 %vm8833_vm3, %v8823_v34 }
 0x989   : > { %v10053_v39 = vpop.permute.xlu0 %5339  ;;  %8658 = vmatprep.subr.mxu1 %v8823_v34  ;;  %v5679_v42 = vpop.permute.xlu1 %5678  ;;  %6120 = vmatprep.subr.mxu0 %v7970_v33 }
 0x98b   : > { %8651 = vmatmul.mubr.msk.f32.vlgmr.msra.gmra.mxu1 %vm751_vm2, %v7923_v38  ;;  %v7969_v38 = vld [vmem:[%s10606_s14 + $0x120] sm:$0xff] }
 0x98c   : > { %8659 = vmatpush3.msk.msra.mxu1 %vm755_vm1, %v10053_v39  ;;  %8660 = vmatprep.mubr.msk.f32.mxu1 %vm8833_vm3, %v8823_v34 }
 0x98d   : > { %8668 = vmatprep.subr.mxu1 %v8823_v34  ;;  %v10093_v46 = vpop.permute.xlu0 %5984  ;;  %6121 = vmatpush1.msra.mxu0 %v7969_v38  ;;  %v8003_v38 = vld [vmem:[%s10603_s11 + $0x28] sm:$0xf] }
 0x98f   : > { %8661 = vmatmul.mubr.msk.f32.vlgmr.msra.gmra.mxu1 %vm751_vm2, %v7929_v40  ;;  %v7968_v40 = vld [vmem:[%s10606_s14 + $0x118] sm:$0xff] }
 0x990   : > { %8669 = vmatpush3.msk.msra.mxu1 %vm755_vm1, %v5030_v35  ;;  %8670 = vmatprep.mubr.msk.f32.mxu1 %vm8833_vm3, %v8823_v34 }
 0x991   : > { %8678 = vmatprep.subr.mxu1 %v8823_v34  ;;  %6122 = vmatprep.subr.mxu0 %v7968_v40  ;;  %v6630_v28 = vpop.permute.xlu0 %6629 }
 0x993   : > { %8671 = vmatmul.mubr.msk.f32.vlgmr.msra.gmra.mxu1 %vm751_vm2, %v7935_v41  ;;  %v7967_v41 = vld [vmem:[%s10606_s14 + $0x110] sm:$0xff] }
 0x994   : > { %8679 = vmatpush3.msk.msra.mxu1 %vm755_vm1, %v5679_v42  ;;  %8680 = vmatprep.mubr.msk.f32.mxu1 %vm8833_vm3, %v8823_v34 }
 0x995   : > { %8688 = vmatprep.subr.mxu1 %v8823_v34  ;;  %6123 = vmatpush1.msra.mxu0 %v7967_v41 }
 0x996   : > { %v10268_v10 = vpop.permute.xlu1 %5420 }
 0x997   : > { %8681 = vmatmul.mubr.msk.f32.vlgmr.msra.gmra.mxu1 %vm751_vm2, %v7941_v43  ;;  %v7966_v43 = vld [vmem:[%s10606_s14 + $0x108] sm:$0xff] }
 0x998   : > { %8689 = vmatpush3.msk.msra.mxu1 %vm755_vm1, %v10053_v39  ;;  %8690 = vmatprep.mubr.msk.f32.mxu1 %vm8833_vm3, %v8823_v34 }
 0x999   : > { %8698 = vmatprep.subr.mxu1 %v8823_v34  ;;  %6124 = vmatprep.subr.mxu0 %v7966_v43  ;;  %v8009_v43 = vld [vmem:[%s10603_s11 + $0x2c] sm:$0xf] }
 0x99a   : > { %v6785_v41 = vpop.permute.xlu1 %6784 }
 0x99b   : > { %8691 = vmatmul.mubr.msk.f32.vlgmr.msra.gmra.mxu1 %vm751_vm2, %v7947_v44 }
 0x99c   : > { %8699 = vmatpush3.msk.msra.mxu1 %vm755_vm1, %v10093_v46  ;;  %8700 = vmatprep.mubr.msk.f32.mxu1 %vm8833_vm3, %v8823_v34 }
 0x99d   : > { %7988 = vmatprep.subr.msk.mxu1 %vm755_vm1, %v5450_v45  ;;  %v7965_v45 = vld [vmem:[%s10606_s14 + $0x100] sm:$0xff] }
 0x99e   : > { %6125 = vmatpush1.msra.mxu0 %v7965_v45  ;;  %v7992_v45 = vld [vmem:[%s10604_s12 + $0x20] sm:$0xf] }
 0x99f   : > { %8701 = vmatmul.mubr.msk.f32.vlgmr.msra.gmra.mxu1 %vm751_vm2, %v7953_v47  ;;  %v7964_v47 = vld [vmem:[%s10606_s14 + $0xf8] sm:$0xff] }
 0x9a0   : > { %7989 = vmatpush1.msk.msra.mxu1 %vm755_vm1, %v5449_v48  ;;  %6244 = vmatprep.mubr.f32.mxu1 %v8823_v34 }
 0x9a1   : > { %6188 = vmatprep.subr.mxu1 %v5448_v49  ;;  %6126 = vmatprep.subr.mxu0 %v7964_v47  ;;  %v7963_v49 = vld [vmem:[%s10606_s14 + $0xf0] sm:$0xff] }
 0x9a2   : > { %6189 = vmatpush1.msra.mxu1 %v5447_v50  ;;  %6127 = vmatpush1.msra.mxu0 %v7963_v49  ;;  %v7962_v50 = vld [vmem:[%s10606_s14 + $0xe8] sm:$0xff]  ;;  %v8045_v47 = vld [vmem:[%s10604_s12 + $0x30] sm:$0xf] }
 0x9a3   : > { %6190 = vmatprep.subr.mxu1 %v5446_v51  ;;  %6128 = vmatprep.subr.mxu0 %v7962_v50  ;;  %v8040_v49 = vld [vmem:[%s10606_s14 + $0x268] sm:$0xf]  ;;  %v8039_v50 = vld [vmem:[%s10606_s14 + $0x260] sm:$0xf] }
 0x9a4   : > { %6191 = vmatpush1.msra.mxu1 %v5445_v52  ;;  %v7961_v52 = vld [vmem:[%s10606_s14 + $0xe0] sm:$0xff] }
 0x9a5   : > { %6192 = vmatprep.subr.mxu1 %v5444_v53  ;;  %6129 = vmatpush1.msra.mxu0 %v7961_v52  ;;  %v7960_v53 = vld [vmem:[%s10606_s14 + $0xd8] sm:$0xff]  ;;  %v8036_v52 = vld [vmem:[%s10606_s14 + $0x248] sm:$0xff] }
 0x9a6   : > { %6193 = vmatpush1.msra.mxu1 %v5443_v54  ;;  %v7959_v54 = vld [vmem:[%s10606_s14 + $0xd0] sm:$0xff]  ;;  %6130 = vmatprep.subr.mxu0 %v7960_v53  ;;  %v8035_v53 = vld [vmem:[%s10606_s14 + $0x240] sm:$0xff] }
 0x9a7   : > { %6194 = vmatprep.subr.mxu1 %v5442_v55  ;;  %6131 = vmatpush1.msra.mxu0 %v7959_v54  ;;  %v8034_v54 = vld [vmem:[%s10606_s14 + $0x238] sm:$0xff] }
 0x9a8   : > { %6195 = vmatpush1.msra.mxu1 %v5441_v56  ;;  %8703 = vmatprep.subr.mxu0 %v8823_v34 }
 0x9a9   : > { %6196 = vmatprep.subr.mxu1 %v5440_v57 }
 0x9aa   : > { %6197 = vmatpush1.msra.mxu1 %v5439_v58 }
 0x9ab   : > { %6198 = vmatprep.subr.mxu1 %v5438_v59 }
 0x9ac   : > { %6199 = vmatpush1.msra.mxu1 %v5437_v60 }
 0x9ad   : > { %6200 = vmatprep.subr.mxu1 %v5436_v61 }
 0x9ae   : > { %6201 = vmatpush1.msra.mxu1 %v5435_v62 }
 0x9af   : > { %6202 = vmatprep.subr.mxu1 %v5434_v0 }
 0x9b0   : > { %6203 = vmatpush1.msra.mxu1 %v5433_v1 }
 0x9b1   : > { %6204 = vmatprep.subr.mxu1 %v5432_v3 }
 0x9b2   : > { %6205 = vmatpush1.msra.mxu1 %v5431_v5 }
 0x9b3   : > { %6206 = vmatprep.subr.mxu1 %v5430_v7 }
 0x9b4   : > { %6207 = vmatpush1.msra.mxu1 %v5429_v9 }
 0x9b5   : > { %6208 = vmatprep.subr.mxu1 %v5428_v11 }
 0x9b6   : > { %6209 = vmatpush1.msra.mxu1 %v5427_v15 }
 0x9b7   : > { %6210 = vmatprep.subr.mxu1 %v5426_v37 }
 0x9b8   : > { %6211 = vmatpush1.msra.mxu1 %v5425_v23 }
 0x9b9   : > { %8708 = vmatprep.subr.mxu1 %v8823_v34 }
 0x9d5   : > { %v10196_v12 = vpop.f32.mrf.mxu0 }
 0x9d6   : > { %v4949_v1 = vadd.f32 %v10196_v12, %v10036_v30  ;;  %v7991_v12 = vld [vmem:[%s10603_s11 + $0x20] sm:$0xf] }
 0x9d7   : > { %v8632_v21 = vpop.f32.mrf.mxu0 }
 0x9d9   : > { %v5025_v27 = vpop.f32.mrf.mxu0 }
 0x9db   : > { %v8637_v32 = vpop.f32.mrf.mxu0 }
 0x9dd   : > { %v5180_v35 = vpop.f32.mrf.mxu0 }
 0x9df   : > { %v8647_v42 = vpop.f32.mrf.mxu0 }
 0x9e1   : > { %v5335_v44 = vpop.f32.mrf.mxu0 }
 0x9e3   : > { %v8657_v48 = vpop.f32.mrf.mxu0 }
 0x9e4   : > { %v8044_v48 = vld [vmem:[%s10603_s11 + $0x30] sm:$0xf] }
 0x9e5   : > { %v5524_v51 = vpop.f32.mrf.mxu0 }
 0x9e7   : > { %v8667_v55 = vpop.f32.mrf.mxu0 }
 0x9e8   : > { %v8033_v55 = vld [vmem:[%s10606_s14 + $0x230] sm:$0xff] }
 0x9e9   : > { %v5674_v56 = vpop.f32.mrf.mxu0 }
 0x9eb   : > { %v8677_v57 = vpop.f32.mrf.mxu0 }
 0x9ec   : > { %v8031_v57 = vld [vmem:[%s10606_s14 + $0x220] sm:$0xff] }
 0x9ed   : > { %v5829_v58 = vpop.f32.mrf.mxu0 }
 0x9ef   : > { %v8687_v59 = vpop.f32.mrf.mxu0 }
 0x9f0   : > { %v8029_v59 = vld [vmem:[%s10606_s14 + $0x210] sm:$0xff] }
 0x9f1   : > { %v5980_v60 = vpop.f32.mrf.mxu0 }
 0x9f3   : > { %v8697_v61 = vpop.f32.mrf.mxu0 }
 0x9f4   : > { %v8027_v61 = vld [vmem:[%s10606_s14 + $0x200] sm:$0xff] }
 0xa47   : > { %v5102_v62 = vpop.f32.mrf.mxu1 }
 0xa48   : > { %v5103_v0 = vadd.f32 %v5102_v62, %v5025_v27  ;;  %v7997_v27 = vld [vmem:[%s10603_s11 + $0x24] sm:$0xf]  ;;  %v8026_v62 = vld [vmem:[%s10606_s14 + $0x1f8] sm:$0xff] }
 0xa49   : > { %v8642_v63 = vpop.f32.mrf.mxu1 }
 0xa4a   : > { %v5106_v4 = vadd.f32 %v5103_v0, %v4949_v1  ;;  %v8025_v63 = vld [vmem:[%s10606_s14 + $0x1f0] sm:$0xff]  ;;  %v8024_v0 = vld [vmem:[%s10606_s14 + $0x1e8] sm:$0xff]  ;;  %v8022_v1 = vld [vmem:[%s10606_s14 + $0x1d8] sm:$0xff] }
 0xa4b   : > { %v5257_v13 = vpop.f32.mrf.mxu1 }
 0xa4c   : > { %v5258_v2 = vadd.f32 %v5257_v13, %v5180_v35  ;;  %v8023_v13 = vld [vmem:[%s10606_s14 + $0x1e0] sm:$0xff] }
 0xa4d   : > { %v8652_v3 = vpop.f32.mrf.mxu1 }
 0xa4e   : > { %v5261_v6 = vadd.f32 %v5258_v2, %v5106_v4  ;;  %v8021_v2 = vld [vmem:[%s10606_s14 + $0x1d0] sm:$0xff]  ;;  %v8020_v3 = vld [vmem:[%s10606_s14 + $0x1c8] sm:$0xff]  ;;  %v8019_v4 = vld [vmem:[%s10606_s14 + $0x1c0] sm:$0xff] }
 0xa4f   : > { %v5412_v5 = vpop.f32.mrf.mxu1 }
 0xa50   : > { %v5413_v7 = vadd.f32 %v5412_v5, %v5335_v44  ;;  %v8018_v5 = vld [vmem:[%s10606_s14 + $0x1b8] sm:$0xff] }
 0xa51   : > { %v8662_v8 = vpop.f32.mrf.mxu1 }
 0xa52   : > { %v5416_v9 = vadd.f32 %v5413_v7, %v5261_v6  ;;  %v8017_v6 = vld [vmem:[%s10606_s14 + $0x1b0] sm:$0xff]  ;;  %v8016_v7 = vld [vmem:[%s10606_s14 + $0x1a8] sm:$0xff]  ;;  %v8015_v8 = vld [vmem:[%s10606_s14 + $0x1a0] sm:$0xff] }
 0xa53   : > { %v5597_v11 = vpop.f32.mrf.mxu1 }
 0xa54   : > { %v5423_v14 = vadd.f32 %v10268_v10, %v5416_v9  ;;  %v5598_v23 = vadd.f32 %v5597_v11, %v5524_v51  ;;  %v8038_v51 = vld [vmem:[%s10606_s14 + $0x258] sm:$0xff] }
 0xa55   : > { %v8672_v15 = vpop.f32.mrf.mxu1  ;;  %v8063_v9 = vld [vmem:[%s10604_s12 + $0x3c] sm:$0xf]  ;;  %v8093_v11 = vld [vmem:[%s10606_s14 + $0x338] sm:$0xf] }
 0xa56   : > { %v5424_v16 = vmax.f32 %v5423_v14, 0.0  ;;  %v8092_v14 = vld [vmem:[%s10606_s14 + $0x330] sm:$0xf]  ;;  %v8091_v15 = vld [vmem:[%s10606_s14 + $0x328] sm:$0xff] }
 0xa57   : > { %v5751_v37 = vpop.f32.mrf.mxu1 }
 0xa58   : > { %7990 = vmatmul.mubr.msk.f32.vlgmr.msra.gmra.mxu1 %vm3138_vm12, %v5424_v16  ;;  %v5752_v18 = vadd.f32 %v5751_v37, %v5674_v56  ;;  %v8032_v56 = vld [vmem:[%s10606_s14 + $0x228] sm:$0xff]  ;;  %v8090_v16 = vld [vmem:[%s10606_s14 + $0x320] sm:$0xff]  ;;  %v8089_v37 = vld [vmem:[%s10606_s14 + $0x318] sm:$0xff] }
 0xa59   : > { %8709 = vmatpush3.msk.msra.mxu1 %vm755_vm1, %v10042_v36  ;;  %v8682_v30 = vpop.f32.mrf.mxu1  ;;  %8710 = vmatprep.mubr.msk.f32.mxu1 %vm8833_vm3, %v8823_v34 }
 0xa5a   : > { %8718 = vmatprep.subr.mxu1 %v8823_v34  ;;  %v5755_v17 = vadd.f32 %v5752_v18, %v5598_v23  ;;  %v8088_v30 = vld [vmem:[%s10606_s14 + $0x310] sm:$0xff]  ;;  %v8086_v18 = vld [vmem:[%s10606_s14 + $0x300] sm:$0xff] }
 0xa5b   : > { %v5902_v21 = vpop.f32.mrf.mxu1  ;;  %v8084_v23 = vld [vmem:[%s10606_s14 + $0x2f0] sm:$0xff] }
 0xa5c   : > { %v5903_v24 = vadd.f32 %v5902_v21, %v5829_v58  ;;  %8711 = vmatmul.mubr.msk.f32.vlgmr.msra.gmra.mxu1 %vm751_vm2, %v7991_v12  ;;  %v8030_v58 = vld [vmem:[%s10606_s14 + $0x218] sm:$0xff]  ;;  %v8087_v12 = vld [vmem:[%s10606_s14 + $0x308] sm:$0xff] }
 0xa5d   : > { %8719 = vmatpush3.msk.msra.mxu1 %vm755_vm1, %v10053_v39  ;;  %v8692_v36 = vpop.f32.mrf.mxu1  ;;  %8720 = vmatprep.mubr.msk.f32.mxu1 %vm8833_vm3, %v8823_v34  ;;  %v8085_v21 = vld [vmem:[%s10606_s14 + $0x2f8] sm:$0xff] }
 0xa5e   : > { %8728 = vmatprep.subr.mxu1 %v8823_v34  ;;  %v5906_v32 = vadd.f32 %v5903_v24, %v5755_v17  ;;  %v8083_v24 = vld [vmem:[%s10606_s14 + $0x2e8] sm:$0xff]  ;;  %v8082_v36 = vld [vmem:[%s10606_s14 + $0x2e0] sm:$0xff] }
 0xa5f   : > { %v6057_v19 = vpop.f32.mrf.mxu1 }
 0xa60   : > { %v6058_v33 = vadd.f32 %v6057_v19, %v5980_v60  ;;  %8721 = vmatmul.mubr.msk.f32.vlgmr.msra.gmra.mxu1 %vm751_vm2, %v7997_v27  ;;  %v8028_v60 = vld [vmem:[%s10606_s14 + $0x208] sm:$0xff]  ;;  %v8081_v27 = vld [vmem:[%s10606_s14 + $0x2d8] sm:$0xff] }
 0xa61   : > { %8729 = vmatpush3.msk.msra.mxu1 %vm755_vm1, %v6630_v28  ;;  %v8702_v35 = vpop.f32.mrf.mxu1  ;;  %8730 = vmatprep.mubr.msk.f32.mxu1 %vm8833_vm3, %v8823_v34 }
 0xa62   : > { %v6061_v40 = vadd.f32 %v6058_v33, %v5906_v32  ;;  %8738 = vmatprep.subr.mxu1 %v8823_v34 }
 0xa64   : > { %v6062_v42 = vadd.f32 %v6061_v40, %v10268_v10  ;;  %8731 = vmatmul.mubr.msk.f32.vlgmr.msra.gmra.mxu1 %vm751_vm2, %v8003_v38 }
 0xa65   : > { %8739 = vmatpush3.msk.msra.mxu1 %vm755_vm1, %v6785_v41  ;;  %8740 = vmatprep.mubr.msk.f32.mxu1 %vm8833_vm3, %v8823_v34 }
 0xa66   : > { %v6063_v44 = vmax.f32 %v6062_v42, 0.0  ;;  %8743 = vmatprep.subr.mxu1 %v8823_v34 }
 0xa68   : > { %7987 = vmatmul.mubr.msk.f32.vlgmr.msra.gmra.mxu0 %vm3138_vm12, %v6063_v44  ;;  %8741 = vmatmul.mubr.msk.f32.vlgmr.msra.gmra.mxu1 %vm751_vm2, %v8009_v43 }
 0xa69   : > { %8704 = vmatpush3.msk.msra.mxu0 %vm755_vm1, %v9571_v20  ;;  %8744 = vmatpush3.msk.msra.mxu1 %vm755_vm1, %v9581_v22  ;;  %v7998_v20 = vld [vmem:[%s10604_s12 + $0x24] sm:$0xf] }
 0xa6a   : > { %8705 = vmatprep.mubr.msk.f32.mxu0 %vm8833_vm3, %v8823_v34  ;;  %8713 = vmatprep.subr.mxu0 %v8823_v34 }
 0xa6b   : > { %8745 = vmatprep.mubr.msk.f32.mxu1 %vm8833_vm3, %v8823_v34  ;;  %8748 = vmatprep.subr.mxu1 %v8823_v34 }
 0xa6c   : > { %8706 = vmatmul.mubr.msk.f32.vlgmr.msra.gmra.mxu0 %vm751_vm2, %v7992_v45  ;;  %8746 = vmatmul.mubr.msk.f32.vlgmr.msra.gmra.mxu1 %vm751_vm2, %v8045_v47 }
 0xa6d   : > { %8714 = vmatpush3.msk.msra.mxu0 %vm755_vm1, %v9581_v22  ;;  %8749 = vmatpush3.msk.msra.mxu1 %vm755_vm1, %v10053_v39  ;;  %v8004_v22 = vld [vmem:[%s10604_s12 + $0x28] sm:$0xf]  ;;  %v8051_v39 = vld [vmem:[%s10604_s12 + $0x34] sm:$0xf] }
 0xa6e   : > { %8715 = vmatprep.mubr.msk.f32.mxu0 %vm8833_vm3, %v8823_v34  ;;  %8723 = vmatprep.subr.mxu0 %v8823_v34 }
 0xa6f   : > { %8750 = vmatprep.mubr.msk.f32.mxu1 %vm8833_vm3, %v8823_v34  ;;  %8753 = vmatprep.subr.mxu1 %v8823_v34 }
 0xa70   : > { %8716 = vmatmul.mubr.msk.f32.vlgmr.msra.gmra.mxu0 %vm751_vm2, %v7998_v20  ;;  %8751 = vmatmul.mubr.msk.f32.vlgmr.msra.gmra.mxu1 %vm751_vm2, %v8044_v48 }
 0xa71   : > { %8724 = vmatpush3.msk.msra.mxu0 %vm755_vm1, %v9600_v26  ;;  %8754 = vmatpush3.msk.msra.mxu1 %vm755_vm1, %v9598_v25  ;;  %v8010_v25 = vld [vmem:[%s10604_s12 + $0x2c] sm:$0xf]  ;;  %v8050_v26 = vld [vmem:[%s10603_s11 + $0x34] sm:$0xf] }
 0xa72   : > { %8725 = vmatprep.mubr.msk.f32.mxu0 %vm8833_vm3, %v8823_v34  ;;  %8733 = vmatprep.subr.mxu0 %v8823_v34 }
 0xa73   : > { %8755 = vmatprep.mubr.msk.f32.mxu1 %vm8833_vm3, %v8823_v34  ;;  %8758 = vmatprep.subr.mxu1 %v8823_v34 }
 0xa74   : > { %8726 = vmatmul.mubr.msk.f32.vlgmr.msra.gmra.mxu0 %vm751_vm2, %v8004_v22  ;;  %8756 = vmatmul.mubr.msk.f32.vlgmr.msra.gmra.mxu1 %vm751_vm2, %v8051_v39 }
 0xa75   : > { %8734 = vmatpush3.msk.msra.mxu0 %vm755_vm1, %v9631_v31  ;;  %8759 = vmatpush3.msk.msra.mxu1 %vm755_vm1, %v10093_v46  ;;  %v8057_v46 = vld [vmem:[%s10604_s12 + $0x38] sm:$0xf] }
 0xa76   : > { %8735 = vmatprep.mubr.msk.f32.mxu0 %vm8833_vm3, %v8823_v34  ;;  %8760 = vmatprep.mubr.msk.f32.mxu1 %vm8833_vm3, %v8823_v34 }
 0xa77   : > { %8763 = vmatprep.subr.mxu1 %v8823_v34  ;;  %8041 = vmatprep.subr.msk.mxu0 %vm755_vm1, %v8040_v49 }
 0xa78   : > { %8736 = vmatmul.mubr.msk.f32.vlgmr.msra.gmra.mxu0 %vm751_vm2, %v8010_v25  ;;  %8761 = vmatmul.mubr.msk.f32.vlgmr.msra.gmra.mxu1 %vm751_vm2, %v8050_v26 }
 0xa79   : > { %8764 = vmatpush3.msk.msra.mxu1 %vm755_vm1, %v9631_v31  ;;  %8765 = vmatprep.mubr.msk.f32.mxu1 %vm8833_vm3, %v8823_v34  ;;  %v8056_v31 = vld [vmem:[%s10603_s11 + $0x38] sm:$0xf] }
 0xa7a   : > { %8768 = vmatprep.subr.mxu1 %v8823_v34  ;;  %6964 = vmatprep.mubr.f32.mxu0 %v8823_v34 }
 0xa7b   : > { %8042 = vmatpush1.msk.msra.mxu0 %vm755_vm1, %v8039_v50 }
 0xa7c   : > { %8766 = vmatmul.mubr.msk.f32.vlgmr.msra.gmra.mxu1 %vm751_vm2, %v8057_v46  ;;  %6908 = vmatprep.subr.mxu0 %v8038_v51 }
 0xa7d   : > { %8769 = vmatpush3.msk.msra.mxu1 %vm755_vm1, %v6785_v41  ;;  %8770 = vmatprep.mubr.msk.f32.mxu1 %vm8833_vm3, %v8823_v34 }
 0xa7e   : > { %8773 = vmatprep.subr.mxu1 %v8823_v34 }
 0xa80   : > { %8771 = vmatmul.mubr.msk.f32.vlgmr.msra.gmra.mxu1 %vm751_vm2, %v8056_v31 }
 0xa81   : > { %8774 = vmatpush3.msk.msra.mxu1 %vm755_vm1, %v9620_v29  ;;  %8775 = vmatprep.mubr.msk.f32.mxu1 %vm8833_vm3, %v8823_v34  ;;  %v8037_v29 = vld [vmem:[%s10606_s14 + $0x250] sm:$0xff] }
 0xa82   : > { %6909 = vmatpush1.msra.mxu0 %v8037_v29  ;;  %8094 = vmatprep.subr.msk.mxu1 %vm755_vm1, %v8093_v11 }
 0xa83   : > { %6910 = vmatprep.subr.mxu0 %v8036_v52 }
 0xa84   : > { %6911 = vmatpush1.msra.mxu0 %v8035_v53  ;;  %8776 = vmatmul.mubr.msk.f32.vlgmr.msra.gmra.mxu1 %vm751_vm2, %v8063_v9 }
 0xa85   : > { %6912 = vmatprep.subr.mxu0 %v8034_v54  ;;  %7682 = vmatprep.mubr.f32.mxu1 %v8823_v34 }
 0xa86   : > { %6913 = vmatpush1.msra.mxu0 %v8033_v55  ;;  %8095 = vmatpush1.msk.msra.mxu1 %vm755_vm1, %v8092_v14  ;;  %v8080_v14 = vld [vmem:[%s10606_s14 + $0x2d0] sm:$0xff] }
 0xa87   : > { %6914 = vmatprep.subr.mxu0 %v8032_v56  ;;  %7626 = vmatprep.subr.mxu1 %v8091_v15  ;;  %v8079_v15 = vld [vmem:[%s10606_s14 + $0x2c8] sm:$0xff] }
 0xa88   : > { %6915 = vmatpush1.msra.mxu0 %v8031_v57  ;;  %7627 = vmatpush1.msra.mxu1 %v8090_v16  ;;  %v8077_v16 = vld [vmem:[%s10606_s14 + $0x2b8] sm:$0xff] }
 0xa89   : > { %6916 = vmatprep.subr.mxu0 %v8030_v58  ;;  %7628 = vmatprep.subr.mxu1 %v8089_v37 }
 0xa8a   : > { %6917 = vmatpush1.msra.mxu0 %v8029_v59  ;;  %7629 = vmatpush1.msra.mxu1 %v8088_v30  ;;  %v8076_v30 = vld [vmem:[%s10606_s14 + $0x2b0] sm:$0xff] }
 0xa8b   : > { %6918 = vmatprep.subr.mxu0 %v8028_v60  ;;  %7630 = vmatprep.subr.mxu1 %v8087_v12 }
 0xa8c   : > { %6919 = vmatpush1.msra.mxu0 %v8027_v61  ;;  %7631 = vmatpush1.msra.mxu1 %v8086_v18  ;;  %v8075_v18 = vld [vmem:[%s10606_s14 + $0x2a8] sm:$0xff] }
 0xa8d   : > { %6920 = vmatprep.subr.mxu0 %v8026_v62  ;;  %7632 = vmatprep.subr.mxu1 %v8085_v21  ;;  %v8074_v21 = vld [vmem:[%s10606_s14 + $0x2a0] sm:$0xff] }
 0xa8e   : > { %6921 = vmatpush1.msra.mxu0 %v8025_v63  ;;  %7633 = vmatpush1.msra.mxu1 %v8084_v23  ;;  %v8073_v23 = vld [vmem:[%s10606_s14 + $0x298] sm:$0xff] }
 0xa8f   : > { %6922 = vmatprep.subr.mxu0 %v8024_v0  ;;  %7634 = vmatprep.subr.mxu1 %v8083_v24  ;;  %v8072_v24 = vld [vmem:[%s10606_s14 + $0x290] sm:$0xff] }
 0xa90   : > { %6923 = vmatpush1.msra.mxu0 %v8023_v13  ;;  %7635 = vmatpush1.msra.mxu1 %v8082_v36  ;;  %v8071_v36 = vld [vmem:[%s10606_s14 + $0x288] sm:$0xff] }
 0xa91   : > { %6924 = vmatprep.subr.mxu0 %v8022_v1  ;;  %7636 = vmatprep.subr.mxu1 %v8081_v27  ;;  %v8070_v27 = vld [vmem:[%s10606_s14 + $0x280] sm:$0xff] }
 0xa92   : > { %6925 = vmatpush1.msra.mxu0 %v8021_v2  ;;  %7637 = vmatpush1.msra.mxu1 %v8080_v14 }
 0xa93   : > { %6926 = vmatprep.subr.mxu0 %v8020_v3  ;;  %7638 = vmatprep.subr.mxu1 %v8079_v15 }
 0xa94   : > { %6927 = vmatpush1.msra.mxu0 %v8019_v4 }
 0xa95   : > { %6928 = vmatprep.subr.mxu0 %v8018_v5 }
 0xa96   : > { %6929 = vmatpush1.msra.mxu0 %v8017_v6  ;;  %v7503_v6 = vpop.permute.xlu0 %7502 }
 0xa97   : > { %6930 = vmatprep.subr.mxu0 %v8016_v7 }
 0xa98   : > { %6931 = vmatpush1.msra.mxu0 %v8015_v8  ;;  %v8062_v8 = vld [vmem:[%s10603_s11 + $0x3c] sm:$0xf] }
 0xa99   : > { %8778 = vmatprep.subr.mxu0 %v8823_v34 }
 0xb18   : > { %v6246_v17 = vpop.f32.mrf.mxu1 }
 0xb1a   : > { %v6248_v19 = vpop.f32.mrf.mxu1 }
 0xb1c   : > { %v6397_v28 = vpop.f32.mrf.mxu1 }
 0xb1e   : > { %v8712_v32 = vpop.f32.mrf.mxu1 }
 0xb20   : > { %v6547_v33 = vpop.f32.mrf.mxu1 }
 0xb22   : > { %v8722_v35 = vpop.f32.mrf.mxu1 }
 0xb24   : > { %v6702_v38 = vpop.f32.mrf.mxu1 }
 0xb26   : > { %v8732_v40 = vpop.f32.mrf.mxu1 }
 0xb28   : > { %v6166_v41 = vpop.f32.mrf.mxu0  ;;  %v6857_v42 = vpop.f32.mrf.mxu1 }
 0xb29   : > { %v10528_v43 = vadd.f32 %v6246_v17, %v6166_v41  ;;  %v8069_v17 = vld [vmem:[%s10606_s14 + $0x278] sm:$0xff] }
 0xb2a   : > { %v6168_v44 = vpop.f32.mrf.mxu0  ;;  %v8742_v45 = vpop.f32.mrf.mxu1 }
 0xb2b   : > { %v10530_v47 = vadd.f32 %v6248_v19, %v6168_v44  ;;  %v8068_v19 = vld [vmem:[%s10606_s14 + $0x270] sm:$0xff] }
 0xb2c   : > { %v6324_v20 = vpop.f32.mrf.mxu0  ;;  %v7046_v48 = vpop.f32.mrf.mxu1 }
 0xb2d   : > { %v6398_v52 = vadd.f32 %v6397_v28, %v6324_v20 }
 0xb2e   : > { %v8707_v22 = vpop.f32.mrf.mxu0  ;;  %v8747_v39 = vpop.f32.mrf.mxu1 }
 0xb30   : > { %v6474_v25 = vpop.f32.mrf.mxu0  ;;  %v7119_v26 = vpop.f32.mrf.mxu1 }
 0xb31   : > { %v7120_v46 = vadd.f32 %v7119_v26, %v7046_v48  ;;  %v6548_v50 = vadd.f32 %v6547_v33, %v6474_v25 }
 0xb32   : > { %v8717_v31 = vpop.f32.mrf.mxu0  ;;  %v8752_v49 = vpop.f32.mrf.mxu1 }
 0xb33   : > { %v6551_v56 = vadd.f32 %v6548_v50, %v6398_v52 }
 0xb34   : > { %v6625_v51 = vpop.f32.mrf.mxu0  ;;  %v7196_v29 = vpop.f32.mrf.mxu1 }
 0xb35   : > { %v6703_v53 = vadd.f32 %v6702_v38, %v6625_v51 }
 0xb36   : > { %v8727_v54 = vpop.f32.mrf.mxu0  ;;  %v8757_v55 = vpop.f32.mrf.mxu1 }
 0xb37   : > { %v6706_v59 = vadd.f32 %v6703_v53, %v6551_v56 }
 0xb38   : > { %v6780_v57 = vpop.f32.mrf.mxu0  ;;  %v7269_v58 = vpop.f32.mrf.mxu1 }
 0xb39   : > { %v6858_v60 = vadd.f32 %v6857_v42, %v6780_v57  ;;  %v7270_v61 = vadd.f32 %v7269_v58, %v7196_v29 }
 0xb3a   : > { %v8737_v62 = vpop.f32.mrf.mxu0  ;;  %v8762_v63 = vpop.f32.mrf.mxu1 }
 0xb3b   : > { %v6861_v0 = vadd.f32 %v6858_v60, %v6706_v59  ;;  %v7273_v13 = vadd.f32 %v7270_v61, %v7120_v46 }
 0xb3c   : > { %v7347_v1 = vpop.f32.mrf.mxu1 }
 0xb3d   : > { %v6862_v2 = vadd.f32 %v6861_v0, %v10268_v10 }
 0xb3e   : > { %v8767_v3 = vpop.f32.mrf.mxu1 }
 0xb3f   : > { %v6863_v4 = vmax.f32 %v6862_v2, 0.0 }
 0xb40   : > { %v7420_v5 = vpop.f32.mrf.mxu1 }
 0xb41   : > { %8043 = vmatmul.mubr.msk.f32.vlgmr.msra.gmra.mxu0 %vm3138_vm12, %v6863_v4  ;;  %v7421_v7 = vadd.f32 %v7420_v5, %v7347_v1 }
 0xb42   : > { %8779 = vmatpush3.msk.msra.mxu0 %vm755_vm1, %v7503_v6  ;;  %8780 = vmatprep.mubr.msk.f32.mxu0 %vm8833_vm3, %v8823_v34  ;;  %v8772_v9 = vpop.f32.mrf.mxu1  ;;  %v8078_v34 = vld [vmem:[%s10606_s14 + $0x2c0] sm:$0xff] }
 0xb43   : > { %v7424_v11 = vadd.f32 %v7421_v7, %v7273_v13  ;;  %7639 = vmatpush1.msra.mxu1 %v8078_v34 }
 0xb44   : > { %v7498_v37 = vpop.f32.mrf.mxu1  ;;  %7640 = vmatprep.subr.mxu1 %v8077_v16 }
 0xb45   : > { %8781 = vmatmul.mubr.msk.f32.vlgmr.msra.gmra.mxu0 %vm751_vm2, %v8062_v8  ;;  %7641 = vmatpush1.msra.mxu1 %v8076_v30 }
 0xb46   : > { %v8777_v12 = vpop.f32.mrf.mxu1  ;;  %7642 = vmatprep.subr.mxu1 %v8075_v18 }
 0xb47   : > { %7643 = vmatpush1.msra.mxu1 %v8074_v21 }
 0xb48   : > { %7644 = vmatprep.subr.mxu1 %v8073_v23 }
 0xb49   : > { %7645 = vmatpush1.msra.mxu1 %v8072_v24 }
 0xb4a   : > { %7646 = vmatprep.subr.mxu1 %v8071_v36 }
 0xb4b   : > { %7647 = vmatpush1.msra.mxu1 %v8070_v27 }
 0xb4c   : > { %7648 = vmatprep.subr.mxu1 %v8069_v17 }
 0xb4d   : > { %7649 = vmatpush1.msra.mxu1 %v8068_v19 }
 0xc01   : > { %v6966_v28 = vpop.f32.mrf.mxu0 }
 0xc02   : > { %v6971_v32 = vadd.f32 %v6966_v28, %v10528_v43 }
 0xc03   : > { %v6968_v33 = vpop.f32.mrf.mxu0 }
 0xc04   : > { %v6972_v35 = vadd.f32 %v6968_v33, %v10530_v47 }
 0xc05   : > { %v7575_v38 = vpop.f32.mrf.mxu0 }
 0xc06   : > { %v7576_v40 = vadd.f32 %v7575_v38, %v7498_v37 }
 0xc07   : > { %v8782_v41 = vpop.f32.mrf.mxu0 }
 0xc08   : > { %v7579_v42 = vadd.f32 %v7576_v40, %v7424_v11 }
 0xc0a   : > { %v7580_v44 = vadd.f32 %v7579_v42, %v10268_v10 }
 0xc0c   : > { %v7581_v45 = vmax.f32 %v7580_v44, 0.0 }
 0xc0e   : > { %8096 = vmatmul.mubr.msk.f32.vlgmr.msra.gmra.mxu1 %vm3138_vm12, %v7581_v45 }
 0xcce   : > { %v7684_v20 = vpop.f32.mrf.mxu1 }
 0xccf   : > { %v7689_v22 = vadd.f32 %v7684_v20, %v6971_v32 }
 0xcd0   : > { %v7686_v48 = vpop.f32.mrf.mxu1 }
 0xcd1   : > { %v7690_v39 = vadd.f32 %v7686_v48, %v6972_v35 }
 0xcd3   : > { %v7693_v43 = vcombine.low %v7689_v22, %v7690_v39 }
 0xcd5   : > { %7695 = vst [vmem:[%s494_s17] sm:$0xff] %v7693_v43 }
 0xcd6 PF: > { %s25_s18 = sadd.s32 1, %s8821_s18  }
 0xcd7   : > { %p22_p4 = scmp.ge.s32.totalorder %s25_s18, 4  }
 0xcd9   :  { %24 = sbr.rel (!%p22_p4) target bundleno = 1 (0x1), region = 177 }

</bundles_post_ra>
